<compile_context>
chip_gen: v7x
topology: tpu7x:2x2x1
jax: 0.10.0
libtpu: 0.0.40
codegen_flags: <defaults>
</compile_context>

<pallas_src>
import functools

import jax
import jax.numpy as jnp
from jax.experimental import pallas as pl
from jax.experimental.pallas import tpu as pltpu

# ----------------------- scaled-down wav2vec2 config -----------------------
CONV_DIM = (32, 32, 32)        # conv_dim (full model: (512,)*7)
CONV_KERNEL = (10, 3, 3)       # conv_kernel (full model: (10,3,3,3,3,2,2))
CONV_STRIDE = (5, 2, 2)        # conv_stride (full model: (5,2,2,2,2,2,2))
HIDDEN = 64                    # hidden_size (full model: 1024)
NUM_HEADS = 4                  # num_attention_heads (full model: 16)
HEAD_DIM = HIDDEN // NUM_HEADS
FFN_DIM = 128                  # intermediate_size (full model: 4096)
NUM_LAYERS = 2                 # num_hidden_layers (full model: 24)
POS_CONV_KERNEL = 16           # num_conv_pos_embeddings (full model: 128, even)
POS_CONV_GROUPS = 4            # num_conv_pos_embedding_groups (full model: 16)
LN_EPS = 1e-5
FE_EPS = 1e-7                  # Wav2Vec2FeatureExtractor zero_mean_unit_var eps


# TODO(synk): HF GELUActivation uses exact erf-GELU; tanh-approximate GELU is
# used because erf lowering inside Mosaic is not guaranteed.
def _gelu(x):
    return jax.nn.gelu(x, approximate=True)


def _ln(x, g, b):
    """LayerNorm over the last dim (f32 math); x:(M,C), g/b:(1,C)."""
    mean = jnp.mean(x, axis=-1, keepdims=True)
    var = jnp.mean((x - mean) ** 2, axis=-1, keepdims=True)
    return (x - mean) * jax.lax.rsqrt(var + LN_EPS) * g + b


# ------------------------------ Pallas kernels ------------------------------

def _conv_block_kernel(xb_ref, w_ref, b_ref, g_ref, beta_ref, o_ref, *,
                       out_len, n_slabs, norm_count):
    """Fused [optional per-utterance znorm] + strided conv (folded-slab single
    dot) + bias + LayerNorm(channels) + GELU.

    xb_ref : (1, nb, s*cin)  stride-folded input rows for one utterance
    w_ref  : (n_slabs*s*cin, cout) bf16 (phantom-tap rows are zero)
    o_ref  : (1, out_len, cout) bf16
    """
    x = xb_ref[0].astype(jnp.float32)                        # (nb, s*cin)
    if norm_count is not None:
        # Wav2Vec2FeatureExtractor zero-mean/unit-var over the real samples
        # (pad rows are zero so the sums are exact; divide by the true count).
        s1 = jnp.sum(x, axis=(0, 1), keepdims=True)
        s2 = jnp.sum(x * x, axis=(0, 1), keepdims=True)
        mean = s1 / norm_count
        var = s2 / norm_count - mean * mean
        # Pad rows become (0 - mean) but only ever multiply zero phantom-tap
        # weight rows, so the conv result is unaffected.
        x = (x - mean) * jax.lax.rsqrt(var + FE_EPS)
    # Single folded-slab contraction: K = n_slabs*s*cin (128 for conv2/3).
    win = jnp.concatenate([x[a:a + out_len, :] for a in range(n_slabs)],
                          axis=-1)                           # (L, n_slabs*s*cin)
    acc = jnp.dot(win.astype(jnp.bfloat16), w_ref[...],
                  preferred_element_type=jnp.float32)
    y = _gelu(_ln(acc + b_ref[...], g_ref[...], beta_ref[...]))
    o_ref[0] = y.astype(o_ref.dtype)


def conv_block(x, cl, kernel_size, stride, norm_count=None):
    """x:(B,T,Cin) channels-last -> (B,L,Cout) bf16.  One fused call."""
    B, T, cin = x.shape
    cout = cl["w"].shape[-1]
    n_slabs = -(-kernel_size // stride)                      # ceil(K/stride)
    L = (T - kernel_size) // stride + 1
    # Keep every real sample (znorm fusion needs them) AND keep every slab
    # slice in-bounds; extra padded samples only meet zero phantom-tap weights.
    nb = max(-(-T // stride), L + n_slabs - 1)
    Tp = nb * stride
    if Tp > T:
        x = jnp.pad(x, ((0, 0), (0, Tp - T), (0, 0)))
    xb = x.reshape(B, nb, stride * cin)                      # free HBM reshape
    kernel = functools.partial(_conv_block_kernel, out_len=L, n_slabs=n_slabs,
                               norm_count=norm_count)
    return pl.pallas_call(
        kernel,
        out_shape=jax.ShapeDtypeStruct((B, L, cout), jnp.bfloat16),
        grid=(B,),
        in_specs=[
            pl.BlockSpec((1, nb, stride * cin), lambda i: (i, 0, 0)),
            pl.BlockSpec((n_slabs * stride * cin, cout), lambda i: (0, 0)),
            pl.BlockSpec((1, cout), lambda i: (0, 0)),
            pl.BlockSpec((1, cout), lambda i: (0, 0)),
            pl.BlockSpec((1, cout), lambda i: (0, 0)),
        ],
        out_specs=pl.BlockSpec((1, L, cout), lambda i: (i, 0, 0)),
        compiler_params=pltpu.CompilerParams(dimension_semantics=("parallel",)),
    )(xb, cl["w"], cl["b"], cl["g"], cl["beta"])


def _fp_posconv_kernel(h_ref, fpg_ref, fpb_ref, fpw_ref, fpbias_ref,
                       pw_ref, pb_ref, o_ref, *, seq, s_pad, ksize, groups):
    """Fused feature projection (LN folded into matmul) + grouped positional
    conv embedding (folded-K per-group contraction) + GELU + residual.
    Output is padded to s_pad rows (zeros) for the transformer stage.

    pw_ref : (groups, ksize*gio, gio) bf16 folded-K grouped conv weights.
    """
    hdim = fpw_ref.shape[-1]
    gio = hdim // groups
    # Feature projection: LayerNorm -> linear (bf16 MXU, f32 accumulate).
    xn = _ln(h_ref[0].astype(jnp.float32), fpg_ref[...], fpb_ref[...])
    feat = jnp.dot(xn.astype(jnp.bfloat16), fpw_ref[...],
                   preferred_element_type=jnp.float32) + fpbias_ref[...]  # (S,H)
    # Zero-padded window buffer built in-register (SamePad drops last frame,
    # which is simply never computed here).
    pad = ksize // 2
    zpad = jnp.zeros((pad, hdim), jnp.float32)
    xp = jnp.concatenate([zpad, feat, zpad], axis=0)         # (S+2*pad, H)
    cols = []
    for g in range(groups):
        win = jnp.concatenate(
            [xp[k:k + seq, g * gio:(g + 1) * gio] for k in range(ksize)],
            axis=-1)                                         # (S, K*gio)
        cols.append(jnp.dot(win.astype(jnp.bfloat16), pw_ref[g],
                            preferred_element_type=jnp.float32))   # (S, gio)
    conv = jnp.concatenate(cols, axis=-1)                    # (S, H)
    y = feat + _gelu(conv + pb_ref[...])
    if s_pad > seq:
        y = jnp.concatenate(
            [y, jnp.zeros((s_pad - seq, hdim), jnp.float32)], axis=0)
    o_ref[0] = y.astype(o_ref.dtype)


def feature_proj_pos_conv(h, pp, s_pad):
    B, seq, C = h.shape
    H = HIDDEN
    gio = H // POS_CONV_GROUPS
    kernel = functools.partial(_fp_posconv_kernel, seq=seq, s_pad=s_pad,
                               ksize=POS_CONV_KERNEL, groups=POS_CONV_GROUPS)
    return pl.pallas_call(
        kernel,
        out_shape=jax.ShapeDtypeStruct((B, s_pad, H), jnp.bfloat16),
        grid=(B,),
        in_specs=[
            pl.BlockSpec((1, seq, C), lambda b: (b, 0, 0)),
            pl.BlockSpec((1, C), lambda b: (0, 0)),
            pl.BlockSpec((1, C), lambda b: (0, 0)),
            pl.BlockSpec((C, H), lambda b: (0, 0)),
            pl.BlockSpec((1, H), lambda b: (0, 0)),
            pl.BlockSpec((POS_CONV_GROUPS, POS_CONV_KERNEL * gio, gio),
                         lambda b: (0, 0, 0)),
            pl.BlockSpec((1, H), lambda b: (0, 0)),
        ],
        out_specs=pl.BlockSpec((1, s_pad, H), lambda b: (b, 0, 0)),
        compiler_params=pltpu.CompilerParams(dimension_semantics=("parallel",)),
    )(h, pp["fp_g"], pp["fp_beta"], pp["fp_w"], pp["fp_b"],
      pp["pos_w"], pp["pos_b"])


def _encoder_stack_kernel(x_ref, ln1_g_ref, ln1_b_ref, wqkv_ref, bqkv_ref,
                          wo_ref, bo_ref, ln2_g_ref, ln2_b_ref,
                          w1_ref, b1_ref, w2_ref, b2_ref, fg_ref, fb_ref,
                          o_ref, acc_ref, *, hidden, num_heads, head_dim,
                          seq_len):
    """All transformer layers fused into one call: grid=(B, NUM_LAYERS).
    Residual stream lives in VMEM scratch across the layer axis; per-layer
    weights are streamed (double-buffered) by the BlockSpec pipeline.
    LN1 -> fused QKV -> masked attention (concat-heads single out-proj dot) +
    residual -> LN2 -> FFN(gelu) + residual; final LN fused at the last layer.
    """
    layer = pl.program_id(1)
    n_layers = pl.num_programs(1)

    @pl.when(layer == 0)
    def _():                                                  # load residual
        acc_ref[...] = x_ref[0].astype(jnp.float32)

    x = acc_ref[...]                                          # (S_pad, H) f32
    s_pad = x.shape[0]
    scale = head_dim ** -0.5

    # --- LN1 folded into the fused QKV projection ----------------------------
    xn = _ln(x, ln1_g_ref[0], ln1_b_ref[0])
    qkv = jnp.dot(xn.astype(jnp.bfloat16), wqkv_ref[0],
                  preferred_element_type=jnp.float32) + bqkv_ref[0]   # (S,3H)

    # key mask for the padded sequence tail
    kmask = jax.lax.broadcasted_iota(jnp.int32, (1, s_pad), 1) < seq_len

    # --- attention: per-head softmax, single concat-heads output projection ---
    # TODO(synk): at full scale (16 heads, long S) replace with flash-style
    # online-softmax KV tiling + lax.fori_loop instead of the unrolled loop.
    ctxs = []
    for h in range(num_heads):
        q = qkv[:, h * head_dim:(h + 1) * head_dim] * scale
        k = qkv[:, hidden + h * head_dim: hidden + (h + 1) * head_dim]
        v = qkv[:, 2 * hidden + h * head_dim: 2 * hidden + (h + 1) * head_dim]
        s = jnp.einsum("qd,kd->qk", q.astype(jnp.bfloat16),
                       k.astype(jnp.bfloat16),
                       preferred_element_type=jnp.float32)            # (S,S)
        s = jnp.where(kmask, s, -1e30)
        m = jnp.max(s, axis=-1, keepdims=True)
        p = jnp.exp(s - m)
        p = p * pl.reciprocal(jnp.sum(p, axis=-1, keepdims=True), approx=True)
        ctxs.append(jnp.dot(p.astype(jnp.bfloat16), v.astype(jnp.bfloat16),
                            preferred_element_type=jnp.float32))      # (S,Dh)
    ctx = jnp.concatenate(ctxs, axis=-1)                              # (S,H)
    attn = jnp.dot(ctx.astype(jnp.bfloat16), wo_ref[0],
                   preferred_element_type=jnp.float32) + bo_ref[0]
    h1 = x + attn                                             # residual folded

    # --- LN2 + FFN (gelu) + residual ------------------------------------------
    hn = _ln(h1, ln2_g_ref[0], ln2_b_ref[0])
    ff = _gelu(jnp.dot(hn.astype(jnp.bfloat16), w1_ref[0],
                       preferred_element_type=jnp.float32) + b1_ref[0])
    ff = jnp.dot(ff.astype(jnp.bfloat16), w2_ref[0],
                 preferred_element_type=jnp.float32) + b2_ref[0]
    out = h1 + ff

    @pl.when(layer < n_layers - 1)
    def _():
        acc_ref[...] = out                                    # stays in VMEM

    @pl.when(layer == n_layers - 1)
    def _():                                                  # final LN fused
        o_ref[0] = _ln(out, fg_ref[...], fb_ref[...]).astype(o_ref.dtype)


def encoder_stack(h, pp, seq_len):
    """h:(B,S_pad,H) bf16 -> (B,S_pad,H) f32; one fused call for all layers."""
    B, S_pad, H = h.shape
    nl = pp["wqkv"].shape[0]
    kernel = functools.partial(_encoder_stack_kernel, hidden=H,
                               num_heads=NUM_HEADS, head_dim=HEAD_DIM,
                               seq_len=seq_len)
    # NOTE(v7x): with B on the "parallel" axis both TCs stream the same layer
    # weights; for small B at full scale prefer splitting S across cores.
    return pl.pallas_call(
        kernel,
        out_shape=jax.ShapeDtypeStruct((B, S_pad, H), jnp.float32),
        grid=(B, nl),
        in_specs=[
            pl.BlockSpec((1, S_pad, H), lambda b, l: (b, 0, 0)),      # x
            pl.BlockSpec((1, 1, H), lambda b, l: (l, 0, 0)),          # ln1 g
            pl.BlockSpec((1, 1, H), lambda b, l: (l, 0, 0)),          # ln1 b
            pl.BlockSpec((1, H, 3 * H), lambda b, l: (l, 0, 0)),      # wqkv
            pl.BlockSpec((1, 1, 3 * H), lambda b, l: (l, 0, 0)),      # bqkv
            pl.BlockSpec((1, H, H), lambda b, l: (l, 0, 0)),          # wo
            pl.BlockSpec((1, 1, H), lambda b, l: (l, 0, 0)),          # bo
            pl.BlockSpec((1, 1, H), lambda b, l: (l, 0, 0)),          # ln2 g
            pl.BlockSpec((1, 1, H), lambda b, l: (l, 0, 0)),          # ln2 b
            pl.BlockSpec((1, H, FFN_DIM), lambda b, l: (l, 0, 0)),    # w1
            pl.BlockSpec((1, 1, FFN_DIM), lambda b, l: (l, 0, 0)),    # b1
            pl.BlockSpec((1, FFN_DIM, H), lambda b, l: (l, 0, 0)),    # w2
            pl.BlockSpec((1, 1, H), lambda b, l: (l, 0, 0)),          # b2
            pl.BlockSpec((1, H), lambda b, l: (0, 0)),                # final g
            pl.BlockSpec((1, H), lambda b, l: (0, 0)),                # final b
        ],
        out_specs=pl.BlockSpec((1, S_pad, H), lambda b, l: (b, 0, 0)),
        scratch_shapes=[pltpu.VMEM((S_pad, H), jnp.float32)],
        compiler_params=pltpu.CompilerParams(
            dimension_semantics=("parallel", "arbitrary")),
    )(h, pp["ln1_g"], pp["ln1_b"], pp["wqkv"], pp["bqkv"], pp["wo"], pp["bo"],
      pp["ln2_g"], pp["ln2_b"], pp["w1"], pp["b1"], pp["w2"], pp["b2"],
      pp["final_g"], pp["final_b"])


# ------------------------------ model definition -----------------------------

def init_params(key):
    """Synthetic weights in PyTorch layouts (Conv1d: (Cout, Cin, K))."""
    kit = iter(jax.random.split(key, 128))

    def nrm(shape, scale=0.02):
        return jax.random.normal(next(kit), shape, jnp.float32) * scale

    p = {}
    convs = []
    cin = 1
    for cout, k in zip(CONV_DIM, CONV_KERNEL):
        convs.append(dict(w=nrm((cout, cin, k)), b=nrm((cout,)),
                          ln_g=jnp.ones((cout,), jnp.float32),
                          ln_b=jnp.zeros((cout,), jnp.float32)))
        cin = cout
    p["conv_layers"] = convs
    p["fp_ln_g"] = jnp.ones((CONV_DIM[-1],), jnp.float32)
    p["fp_ln_b"] = jnp.zeros((CONV_DIM[-1],), jnp.float32)
    p["fp_w"] = nrm((CONV_DIM[-1], HIDDEN))
    p["fp_b"] = nrm((HIDDEN,))
    # TODO(synk): HF applies weight_norm to the positional conv; not modeled
    # (weights are synthetic, not a checkpoint load).
    p["pos_conv_w"] = nrm((HIDDEN, HIDDEN // POS_CONV_GROUPS, POS_CONV_KERNEL))
    p["pos_conv_b"] = nrm((HIDDEN,))
    layers = []
    for _ in range(NUM_LAYERS):
        layers.append(dict(
            ln1_g=jnp.ones((HIDDEN,), jnp.float32),
            ln1_b=jnp.zeros((HIDDEN,), jnp.float32),
            wq=nrm((HIDDEN, HIDDEN)), bq=nrm((HIDDEN,)),
            wk=nrm((HIDDEN, HIDDEN)), bk=jnp.zeros((HIDDEN,), jnp.float32),
            wv=nrm((HIDDEN, HIDDEN)), bv=nrm((HIDDEN,)),
            wo=nrm((HIDDEN, HIDDEN)), bo=nrm((HIDDEN,)),
            ln2_g=jnp.ones((HIDDEN,), jnp.float32),
            ln2_b=jnp.zeros((HIDDEN,), jnp.float32),
            w1=nrm((HIDDEN, FFN_DIM)), b1=nrm((FFN_DIM,)),
            w2=nrm((FFN_DIM, HIDDEN)), b2=nrm((HIDDEN,)),
        ))
    p["layers"] = layers
    p["final_ln_g"] = jnp.ones((HIDDEN,), jnp.float32)
    p["final_ln_b"] = jnp.zeros((HIDDEN,), jnp.float32)
    return p


def pack_params(p):
    """One-time repack into kernel-friendly form:
    conv weights -> folded-slab matmul rows, grouped pos-conv -> folded-K
    per-group weights, QKV concatenated, per-layer weights stacked along a
    leading layer axis for the fused encoder stack, matmuls cast to bf16."""
    pp = {"conv": []}
    cin = 1
    for layer, k, s in zip(p["conv_layers"], CONV_KERNEL, CONV_STRIDE):
        w = layer["w"]                                    # (Cout, Cin, K)
        cout = w.shape[0]
        n_slabs = -(-k // s)
        ws = jnp.zeros((n_slabs * s * cin, cout), jnp.float32)
        for tap in range(k):                              # phantom taps stay 0
            ws = ws.at[tap * cin:(tap + 1) * cin, :].set(w[:, :, tap].T)
        pp["conv"].append(dict(w=ws.astype(jnp.bfloat16),
                               b=layer["b"].reshape(1, cout),
                               g=layer["ln_g"].reshape(1, cout),
                               beta=layer["ln_b"].reshape(1, cout)))
        cin = cout

    c_last = CONV_DIM[-1]
    pp["fp_g"] = p["fp_ln_g"].reshape(1, c_last)
    pp["fp_beta"] = p["fp_ln_b"].reshape(1, c_last)
    pp["fp_w"] = p["fp_w"].astype(jnp.bfloat16)
    pp["fp_b"] = p["fp_b"].reshape(1, HIDDEN)

    gio = HIDDEN // POS_CONV_GROUPS
    pw = jnp.zeros((POS_CONV_GROUPS, POS_CONV_KERNEL * gio, gio), jnp.float32)
    for g in range(POS_CONV_GROUPS):
        blk = p["pos_conv_w"][g * gio:(g + 1) * gio]      # (gio_out, gio_in, K)
        blk = jnp.transpose(blk, (2, 1, 0)).reshape(POS_CONV_KERNEL * gio, gio)
        pw = pw.at[g].set(blk)
    pp["pos_w"] = pw.astype(jnp.bfloat16)
    pp["pos_b"] = p["pos_conv_b"].reshape(1, HIDDEN)

    ls = p["layers"]
    pp["ln1_g"] = jnp.stack([l["ln1_g"].reshape(1, HIDDEN) for l in ls])
    pp["ln1_b"] = jnp.stack([l["ln1_b"].reshape(1, HIDDEN) for l in ls])
    pp["wqkv"] = jnp.stack(
        [jnp.concatenate([l["wq"], l["wk"], l["wv"]], axis=1) for l in ls]
    ).astype(jnp.bfloat16)
    pp["bqkv"] = jnp.stack(
        [jnp.concatenate([l["bq"], l["bk"], l["bv"]]).reshape(1, 3 * HIDDEN)
         for l in ls])
    pp["wo"] = jnp.stack([l["wo"] for l in ls]).astype(jnp.bfloat16)
    pp["bo"] = jnp.stack([l["bo"].reshape(1, HIDDEN) for l in ls])
    pp["ln2_g"] = jnp.stack([l["ln2_g"].reshape(1, HIDDEN) for l in ls])
    pp["ln2_b"] = jnp.stack([l["ln2_b"].reshape(1, HIDDEN) for l in ls])
    pp["w1"] = jnp.stack([l["w1"] for l in ls]).astype(jnp.bfloat16)
    pp["b1"] = jnp.stack([l["b1"].reshape(1, FFN_DIM) for l in ls])
    pp["w2"] = jnp.stack([l["w2"] for l in ls]).astype(jnp.bfloat16)
    pp["b2"] = jnp.stack([l["b2"].reshape(1, HIDDEN) for l in ls])
    pp["final_g"] = p["final_ln_g"].reshape(1, HIDDEN)
    pp["final_b"] = p["final_ln_b"].reshape(1, HIDDEN)
    return pp


def wav2vec2_encoder_forward(audio, pp):
    """audio: (B, T) float32 -> last_hidden_state (B, S, HIDDEN) float32."""
    B, T = audio.shape
    h = audio[:, :, None]                               # (B, T, 1), channels-last

    # Feature encoder (feat_extract_norm="layer"): conv -> LN(channels) -> GELU.
    # The feature-extractor zero-mean/unit-var normalization is fused into the
    # first conv block (whole utterance is resident in its block).
    for idx, (cl, k, s) in enumerate(zip(pp["conv"], CONV_KERNEL, CONV_STRIDE)):
        h = conv_block(h, cl, k, s, norm_count=(T if idx == 0 else None))

    seq = h.shape[1]
    s_pad = -(-seq // 8) * 8                            # pad S to sublane mult.

    # Feature projection + positional conv embedding + residual, one call.
    h = feature_proj_pos_conv(h, pp, s_pad)             # (B, S_pad, H) bf16

    # All transformer layers + final LN, one call; padded keys masked inside.
    h = encoder_stack(h, pp, seq)                       # (B, S_pad, H) f32

    return h[:, :seq, :]


# ----------------------------------- main ------------------------------------

if __name__ == "__main__":
    key = jax.random.PRNGKey(0)
    k_audio, k_params = jax.random.split(key)

    B, T = 2, 400                       # 2 utterances of 400 samples (synthetic)
    audio = jax.random.normal(k_audio, (B, T), jnp.float32)
    params = pack_params(init_params(k_params))

    fwd = jax.jit(wav2vec2_encoder_forward)
    out = jax.block_until_ready(fwd(audio, params))

    # (400-10)//5+1=79 -> (79-3)//2+1=39 -> (39-3)//2+1=19 frames
    assert out.shape == (B, 19, HIDDEN), out.shape
    assert out.dtype == jnp.float32
    assert bool(jnp.all(jnp.isfinite(out)))
    print("KERNEL_OK")
</pallas_src>

<mosaic_0001>
module attributes {stable_mosaic.version = 11 : i64} {
  func.func @_conv_block_kernel(%arg0: i32, %arg1: memref<1x80x5xf32, #tpu.memory_space<vmem>>, %arg2: memref<10x32xbf16, #tpu.memory_space<vmem>>, %arg3: memref<1x32xf32, #tpu.memory_space<vmem>>, %arg4: memref<1x32xf32, #tpu.memory_space<vmem>>, %arg5: memref<1x32xf32, #tpu.memory_space<vmem>>, %arg6: memref<1x79x32xbf16, #tpu.memory_space<vmem>>) attributes {dimension_semantics = [#tpu.dimension_semantics<parallel>], iteration_bounds = array<i64: 2>, scalar_prefetch = 0 : i64, scratch_operands = 0 : i64, tpu.core_type = #tpu.core_type<tc>, window_params = [{transform_indices = @transform_0, window_bounds = array<i64: 1, 80, 5>}, {pipeline_mode = #tpu.pipeline_mode<synchronous>, transform_indices = @transform_1, window_bounds = array<i64: 10, 32>}, {pipeline_mode = #tpu.pipeline_mode<synchronous>, transform_indices = @transform_2, window_bounds = array<i64: 1, 32>}, {pipeline_mode = #tpu.pipeline_mode<synchronous>, transform_indices = @transform_3, window_bounds = array<i64: 1, 32>}, {pipeline_mode = #tpu.pipeline_mode<synchronous>, transform_indices = @transform_4, window_bounds = array<i64: 1, 32>}, {transform_indices = @transform_5, window_bounds = array<i64: 1, 79, 32>}]} {
    %c0 = arith.constant 0 : index
    %c0_0 = arith.constant 0 : index
    %c0_1 = arith.constant 0 : index
    %0 = vector.load %arg1[%c0, %c0_0, %c0_1] : memref<1x80x5xf32, #tpu.memory_space<vmem>>, vector<1x80x5xf32>
    %1 = vector.shape_cast %0 : vector<1x80x5xf32> to vector<80x5xf32>
    %2 = vector.shape_cast %1 : vector<80x5xf32> to vector<1x80x5xf32>
    %cst = arith.constant dense<0.000000e+00> : vector<1xf32>
    %3 = vector.multi_reduction <add>, %2, %cst [1, 2] : vector<1x80x5xf32> to vector<1xf32>
    %4 = vector.shape_cast %3 : vector<1xf32> to vector<1x1x1xf32>
    %5 = vector.extract %4[0, 0, 0] : f32 from vector<1x1x1xf32>
    %6 = vector.broadcast %5 : f32 to vector<1x1xf32>
    %7 = arith.mulf %1, %1 : vector<80x5xf32>
    %8 = vector.shape_cast %7 : vector<80x5xf32> to vector<1x80x5xf32>
    %cst_2 = arith.constant dense<0.000000e+00> : vector<1xf32>
    %9 = vector.multi_reduction <add>, %8, %cst_2 [1, 2] : vector<1x80x5xf32> to vector<1xf32>
    %10 = vector.shape_cast %9 : vector<1xf32> to vector<1x1x1xf32>
    %11 = vector.extract %10[0, 0, 0] : f32 from vector<1x1x1xf32>
    %12 = vector.broadcast %11 : f32 to vector<1x1xf32>
    %cst_3 = arith.constant 4.000000e+02 : f32
    %13 = vector.broadcast %cst_3 : f32 to vector<1x1xf32>
    %14 = arith.divf %6, %13 : vector<1x1xf32>
    %cst_4 = arith.constant 4.000000e+02 : f32
    %15 = vector.broadcast %cst_4 : f32 to vector<1x1xf32>
    %16 = arith.divf %12, %15 : vector<1x1xf32>
    %17 = arith.mulf %14, %14 : vector<1x1xf32>
    %18 = arith.subf %16, %17 : vector<1x1xf32>
    %19 = vector.broadcast %14 : vector<1x1xf32> to vector<80x5xf32>
    %20 = arith.subf %1, %19 : vector<80x5xf32>
    %cst_5 = arith.constant 1.000000e-07 : f32
    %21 = vector.broadcast %cst_5 : f32 to vector<1x1xf32>
    %22 = arith.addf %18, %21 : vector<1x1xf32>
    %23 = math.rsqrt %22 : vector<1x1xf32>
    %24 = vector.broadcast %23 : vector<1x1xf32> to vector<80x5xf32>
    %25 = arith.mulf %20, %24 : vector<80x5xf32>
    %26 = vector.extract_strided_slice %25 {offsets = [0, 0], sizes = [79, 5], strides = [1, 1]} : vector<80x5xf32> to vector<79x5xf32>
    %27 = vector.extract_strided_slice %25 {offsets = [1, 0], sizes = [79, 5], strides = [1, 1]} : vector<80x5xf32> to vector<79x5xf32>
    %28 = tpu.concatenate %26, %27 in 1 : vector<79x5xf32>, vector<79x5xf32> -> vector<79x10xf32>
    %29 = arith.truncf %28 : vector<79x10xf32> to vector<79x10xbf16>
    %c0_6 = arith.constant 0 : index
    %c0_7 = arith.constant 0 : index
    %30 = vector.load %arg2[%c0_6, %c0_7] : memref<10x32xbf16, #tpu.memory_space<vmem>>, vector<10x32xbf16>
    %cst_8 = arith.constant dense<0.000000e+00> : vector<79x32xf32>
    %31 = tpu.matmul %29, %30, %cst_8 {dimension_numbers = #tpu.dot_dimension_numbers<[1], [0], [0], [1], [0, 0, 1, 1], [], []>} : vector<79x10xbf16>, vector<10x32xbf16>, vector<79x32xf32> -> vector<79x32xf32>
    %c0_9 = arith.constant 0 : index
    %c0_10 = arith.constant 0 : index
    %32 = vector.load %arg3[%c0_9, %c0_10] : memref<1x32xf32, #tpu.memory_space<vmem>>, vector<1x32xf32>
    %33 = vector.broadcast %32 : vector<1x32xf32> to vector<79x32xf32>
    %34 = arith.addf %31, %33 : vector<79x32xf32>
    %c0_11 = arith.constant 0 : index
    %c0_12 = arith.constant 0 : index
    %35 = vector.load %arg4[%c0_11, %c0_12] : memref<1x32xf32, #tpu.memory_space<vmem>>, vector<1x32xf32>
    %c0_13 = arith.constant 0 : index
    %c0_14 = arith.constant 0 : index
    %36 = vector.load %arg5[%c0_13, %c0_14] : memref<1x32xf32, #tpu.memory_space<vmem>>, vector<1x32xf32>
    %cst_15 = arith.constant dense<0.000000e+00> : vector<79xf32>
    %37 = vector.multi_reduction <add>, %34, %cst_15 [1] : vector<79x32xf32> to vector<79xf32>
    %38 = vector.shape_cast %37 : vector<79xf32> to vector<79x1xf32>
    %cst_16 = arith.constant 3.200000e+01 : f32
    %39 = vector.broadcast %cst_16 : f32 to vector<79x1xf32>
    %40 = arith.divf %38, %39 : vector<79x1xf32>
    %41 = vector.broadcast %40 : vector<79x1xf32> to vector<79x32xf32>
    %42 = arith.subf %34, %41 : vector<79x32xf32>
    %43 = arith.mulf %42, %42 : vector<79x32xf32>
    %cst_17 = arith.constant dense<0.000000e+00> : vector<79xf32>
    %44 = vector.multi_reduction <add>, %43, %cst_17 [1] : vector<79x32xf32> to vector<79xf32>
    %45 = vector.shape_cast %44 : vector<79xf32> to vector<79x1xf32>
    %cst_18 = arith.constant 3.200000e+01 : f32
    %46 = vector.broadcast %cst_18 : f32 to vector<79x1xf32>
    %47 = arith.divf %45, %46 : vector<79x1xf32>
    %48 = vector.broadcast %40 : vector<79x1xf32> to vector<79x32xf32>
    %49 = arith.subf %34, %48 : vector<79x32xf32>
    %cst_19 = arith.constant 9.99999974E-6 : f32
    %50 = vector.broadcast %cst_19 : f32 to vector<79x1xf32>
    %51 = arith.addf %47, %50 : vector<79x1xf32>
    %52 = math.rsqrt %51 : vector<79x1xf32>
    %53 = vector.broadcast %52 : vector<79x1xf32> to vector<79x32xf32>
    %54 = arith.mulf %49, %53 : vector<79x32xf32>
    %55 = vector.broadcast %35 : vector<1x32xf32> to vector<79x32xf32>
    %56 = arith.mulf %54, %55 : vector<79x32xf32>
    %57 = vector.broadcast %36 : vector<1x32xf32> to vector<79x32xf32>
    %58 = arith.addf %56, %57 : vector<79x32xf32>
    %59 = arith.mulf %58, %58 : vector<79x32xf32>
    %60 = arith.mulf %58, %59 : vector<79x32xf32>
    %cst_20 = arith.constant 4.471500e-02 : f32
    %61 = vector.broadcast %cst_20 : f32 to vector<79x32xf32>
    %62 = arith.mulf %61, %60 : vector<79x32xf32>
    %63 = arith.addf %58, %62 : vector<79x32xf32>
    %cst_21 = arith.constant 0.797884583 : f32
    %64 = vector.broadcast %cst_21 : f32 to vector<79x32xf32>
    %65 = arith.mulf %64, %63 : vector<79x32xf32>
    %66 = math.tanh %65 : vector<79x32xf32>
    %cst_22 = arith.constant 1.000000e+00 : f32
    %67 = vector.broadcast %cst_22 : f32 to vector<79x32xf32>
    %68 = arith.addf %67, %66 : vector<79x32xf32>
    %cst_23 = arith.constant 5.000000e-01 : f32
    %69 = vector.broadcast %cst_23 : f32 to vector<79x32xf32>
    %70 = arith.mulf %69, %68 : vector<79x32xf32>
    %71 = arith.mulf %58, %70 : vector<79x32xf32>
    %72 = arith.truncf %71 : vector<79x32xf32> to vector<79x32xbf16>
    %c0_24 = arith.constant 0 : index
    %c0_25 = arith.constant 0 : index
    %c0_26 = arith.constant 0 : index
    %73 = vector.load %arg6[%c0_24, %c0_25, %c0_26] : memref<1x79x32xbf16, #tpu.memory_space<vmem>>, vector<1x79x32xbf16>
    %74 = vector.shape_cast %73 : vector<1x79x32xbf16> to vector<79x32xbf16>
    %75 = vector.shape_cast %72 : vector<79x32xbf16> to vector<1x79x32xbf16>
    tpu.vector_store %arg6[%c0_24, %c0_25, %c0_26], %75 {strides = array<i32>} : memref<1x79x32xbf16, #tpu.memory_space<vmem>>, vector<1x79x32xbf16>,
    return
  }
  func.func @transform_0(%arg0: i32) -> (i32, i32, i32) {
    %c0_i32 = arith.constant 0 : i32
    %c0_i32_0 = arith.constant 0 : i32
    %c0_i32_1 = arith.constant 0 : i32
    return %arg0, %c0_i32, %c0_i32_0 : i32, i32, i32
  }
  func.func @transform_1(%arg0: i32) -> (i32, i32) {
    %c0_i32 = arith.constant 0 : i32
    %c0_i32_0 = arith.constant 0 : i32
    %c0_i32_1 = arith.constant 0 : i32
    return %c0_i32, %c0_i32_0 : i32, i32
  }
  func.func @transform_2(%arg0: i32) -> (i32, i32) {
    %c0_i32 = arith.constant 0 : i32
    %c0_i32_0 = arith.constant 0 : i32
    %c0_i32_1 = arith.constant 0 : i32
    return %c0_i32, %c0_i32_0 : i32, i32
  }
  func.func @transform_3(%arg0: i32) -> (i32, i32) {
    %c0_i32 = arith.constant 0 : i32
    %c0_i32_0 = arith.constant 0 : i32
    %c0_i32_1 = arith.constant 0 : i32
    return %c0_i32, %c0_i32_0 : i32, i32
  }
  func.func @transform_4(%arg0: i32) -> (i32, i32) {
    %c0_i32 = arith.constant 0 : i32
    %c0_i32_0 = arith.constant 0 : i32
    %c0_i32_1 = arith.constant 0 : i32
    return %c0_i32, %c0_i32_0 : i32, i32
  }
  func.func @transform_5(%arg0: i32) -> (i32, i32, i32) {
    %c0_i32 = arith.constant 0 : i32
    %c0_i32_0 = arith.constant 0 : i32
    %c0_i32_1 = arith.constant 0 : i32
    return %arg0, %c0_i32, %c0_i32_0 : i32, i32, i32
  }
}

module attributes {stable_mosaic.version = 11 : i64} {
  func.func @_conv_block_kernel(%arg0: i32, %arg1: memref<1x40x64xbf16, #tpu.memory_space<vmem>>, %arg2: memref<128x32xbf16, #tpu.memory_space<vmem>>, %arg3: memref<1x32xf32, #tpu.memory_space<vmem>>, %arg4: memref<1x32xf32, #tpu.memory_space<vmem>>, %arg5: memref<1x32xf32, #tpu.memory_space<vmem>>, %arg6: memref<1x39x32xbf16, #tpu.memory_space<vmem>>) attributes {dimension_semantics = [#tpu.dimension_semantics<parallel>], iteration_bounds = array<i64: 2>, scalar_prefetch = 0 : i64, scratch_operands = 0 : i64, tpu.core_type = #tpu.core_type<tc>, window_params = [{transform_indices = @transform_0, window_bounds = array<i64: 1, 40, 64>}, {pipeline_mode = #tpu.pipeline_mode<synchronous>, transform_indices = @transform_1, window_bounds = array<i64: 128, 32>}, {pipeline_mode = #tpu.pipeline_mode<synchronous>, transform_indices = @transform_2, window_bounds = array<i64: 1, 32>}, {pipeline_mode = #tpu.pipeline_mode<synchronous>, transform_indices = @transform_3, window_bounds = array<i64: 1, 32>}, {pipeline_mode = #tpu.pipeline_mode<synchronous>, transform_indices = @transform_4, window_bounds = array<i64: 1, 32>}, {transform_indices = @transform_5, window_bounds = array<i64: 1, 39, 32>}]} {
    %c0 = arith.constant 0 : index
    %c0_0 = arith.constant 0 : index
    %c0_1 = arith.constant 0 : index
    %0 = vector.load %arg1[%c0, %c0_0, %c0_1] : memref<1x40x64xbf16, #tpu.memory_space<vmem>>, vector<1x40x64xbf16>
    %1 = vector.shape_cast %0 : vector<1x40x64xbf16> to vector<40x64xbf16>
    %2 = arith.extf %1 : vector<40x64xbf16> to vector<40x64xf32>
    %3 = vector.extract_strided_slice %2 {offsets = [0, 0], sizes = [39, 64], strides = [1, 1]} : vector<40x64xf32> to vector<39x64xf32>
    %4 = vector.extract_strided_slice %2 {offsets = [1, 0], sizes = [39, 64], strides = [1, 1]} : vector<40x64xf32> to vector<39x64xf32>
    %5 = tpu.concatenate %3, %4 in 1 : vector<39x64xf32>, vector<39x64xf32> -> vector<39x128xf32>
    %6 = arith.truncf %5 : vector<39x128xf32> to vector<39x128xbf16>
    %c0_2 = arith.constant 0 : index
    %c0_3 = arith.constant 0 : index
    %7 = vector.load %arg2[%c0_2, %c0_3] : memref<128x32xbf16, #tpu.memory_space<vmem>>, vector<128x32xbf16>
    %cst = arith.constant dense<0.000000e+00> : vector<39x32xf32>
    %8 = tpu.matmul %6, %7, %cst {dimension_numbers = #tpu.dot_dimension_numbers<[1], [0], [0], [1], [0, 0, 1, 1], [], []>} : vector<39x128xbf16>, vector<128x32xbf16>, vector<39x32xf32> -> vector<39x32xf32>
    %c0_4 = arith.constant 0 : index
    %c0_5 = arith.constant 0 : index
    %9 = vector.load %arg3[%c0_4, %c0_5] : memref<1x32xf32, #tpu.memory_space<vmem>>, vector<1x32xf32>
    %10 = vector.broadcast %9 : vector<1x32xf32> to vector<39x32xf32>
    %11 = arith.addf %8, %10 : vector<39x32xf32>
    %c0_6 = arith.constant 0 : index
    %c0_7 = arith.constant 0 : index
    %12 = vector.load %arg4[%c0_6, %c0_7] : memref<1x32xf32, #tpu.memory_space<vmem>>, vector<1x32xf32>
    %c0_8 = arith.constant 0 : index
    %c0_9 = arith.constant 0 : index
    %13 = vector.load %arg5[%c0_8, %c0_9] : memref<1x32xf32, #tpu.memory_space<vmem>>, vector<1x32xf32>
    %cst_10 = arith.constant dense<0.000000e+00> : vector<39xf32>
    %14 = vector.multi_reduction <add>, %11, %cst_10 [1] : vector<39x32xf32> to vector<39xf32>
    %15 = vector.shape_cast %14 : vector<39xf32> to vector<39x1xf32>
    %cst_11 = arith.constant 3.200000e+01 : f32
    %16 = vector.broadcast %cst_11 : f32 to vector<39x1xf32>
    %17 = arith.divf %15, %16 : vector<39x1xf32>
    %18 = vector.broadcast %17 : vector<39x1xf32> to vector<39x32xf32>
    %19 = arith.subf %11, %18 : vector<39x32xf32>
    %20 = arith.mulf %19, %19 : vector<39x32xf32>
    %cst_12 = arith.constant dense<0.000000e+00> : vector<39xf32>
    %21 = vector.multi_reduction <add>, %20, %cst_12 [1] : vector<39x32xf32> to vector<39xf32>
    %22 = vector.shape_cast %21 : vector<39xf32> to vector<39x1xf32>
    %cst_13 = arith.constant 3.200000e+01 : f32
    %23 = vector.broadcast %cst_13 : f32 to vector<39x1xf32>
    %24 = arith.divf %22, %23 : vector<39x1xf32>
    %25 = vector.broadcast %17 : vector<39x1xf32> to vector<39x32xf32>
    %26 = arith.subf %11, %25 : vector<39x32xf32>
    %cst_14 = arith.constant 9.99999974E-6 : f32
    %27 = vector.broadcast %cst_14 : f32 to vector<39x1xf32>
    %28 = arith.addf %24, %27 : vector<39x1xf32>
    %29 = math.rsqrt %28 : vector<39x1xf32>
    %30 = vector.broadcast %29 : vector<39x1xf32> to vector<39x32xf32>
    %31 = arith.mulf %26, %30 : vector<39x32xf32>
    %32 = vector.broadcast %12 : vector<1x32xf32> to vector<39x32xf32>
    %33 = arith.mulf %31, %32 : vector<39x32xf32>
    %34 = vector.broadcast %13 : vector<1x32xf32> to vector<39x32xf32>
    %35 = arith.addf %33, %34 : vector<39x32xf32>
    %36 = arith.mulf %35, %35 : vector<39x32xf32>
    %37 = arith.mulf %35, %36 : vector<39x32xf32>
    %cst_15 = arith.constant 4.471500e-02 : f32
    %38 = vector.broadcast %cst_15 : f32 to vector<39x32xf32>
    %39 = arith.mulf %38, %37 : vector<39x32xf32>
    %40 = arith.addf %35, %39 : vector<39x32xf32>
    %cst_16 = arith.constant 0.797884583 : f32
    %41 = vector.broadcast %cst_16 : f32 to vector<39x32xf32>
    %42 = arith.mulf %41, %40 : vector<39x32xf32>
    %43 = math.tanh %42 : vector<39x32xf32>
    %cst_17 = arith.constant 1.000000e+00 : f32
    %44 = vector.broadcast %cst_17 : f32 to vector<39x32xf32>
    %45 = arith.addf %44, %43 : vector<39x32xf32>
    %cst_18 = arith.constant 5.000000e-01 : f32
    %46 = vector.broadcast %cst_18 : f32 to vector<39x32xf32>
    %47 = arith.mulf %46, %45 : vector<39x32xf32>
    %48 = arith.mulf %35, %47 : vector<39x32xf32>
    %49 = arith.truncf %48 : vector<39x32xf32> to vector<39x32xbf16>
    %c0_19 = arith.constant 0 : index
    %c0_20 = arith.constant 0 : index
    %c0_21 = arith.constant 0 : index
    %50 = vector.load %arg6[%c0_19, %c0_20, %c0_21] : memref<1x39x32xbf16, #tpu.memory_space<vmem>>, vector<1x39x32xbf16>
    %51 = vector.shape_cast %50 : vector<1x39x32xbf16> to vector<39x32xbf16>
    %52 = vector.shape_cast %49 : vector<39x32xbf16> to vector<1x39x32xbf16>
    tpu.vector_store %arg6[%c0_19, %c0_20, %c0_21], %52 {strides = array<i32>} : memref<1x39x32xbf16, #tpu.memory_space<vmem>>, vector<1x39x32xbf16>,
    return
  }
  func.func @transform_0(%arg0: i32) -> (i32, i32, i32) {
    %c0_i32 = arith.constant 0 : i32
    %c0_i32_0 = arith.constant 0 : i32
    %c0_i32_1 = arith.constant 0 : i32
    return %arg0, %c0_i32, %c0_i32_0 : i32, i32, i32
  }
  func.func @transform_1(%arg0: i32) -> (i32, i32) {
    %c0_i32 = arith.constant 0 : i32
    %c0_i32_0 = arith.constant 0 : i32
    %c0_i32_1 = arith.constant 0 : i32
    return %c0_i32, %c0_i32_0 : i32, i32
  }
  func.func @transform_2(%arg0: i32) -> (i32, i32) {
    %c0_i32 = arith.constant 0 : i32
    %c0_i32_0 = arith.constant 0 : i32
    %c0_i32_1 = arith.constant 0 : i32
    return %c0_i32, %c0_i32_0 : i32, i32
  }
  func.func @transform_3(%arg0: i32) -> (i32, i32) {
    %c0_i32 = arith.constant 0 : i32
    %c0_i32_0 = arith.constant 0 : i32
    %c0_i32_1 = arith.constant 0 : i32
    return %c0_i32, %c0_i32_0 : i32, i32
  }
  func.func @transform_4(%arg0: i32) -> (i32, i32) {
    %c0_i32 = arith.constant 0 : i32
    %c0_i32_0 = arith.constant 0 : i32
    %c0_i32_1 = arith.constant 0 : i32
    return %c0_i32, %c0_i32_0 : i32, i32
  }
  func.func @transform_5(%arg0: i32) -> (i32, i32, i32) {
    %c0_i32 = arith.constant 0 : i32
    %c0_i32_0 = arith.constant 0 : i32
    %c0_i32_1 = arith.constant 0 : i32
    return %arg0, %c0_i32, %c0_i32_0 : i32, i32, i32
  }
}

module attributes {stable_mosaic.version = 11 : i64} {
  func.func @_conv_block_kernel(%arg0: i32, %arg1: memref<1x20x64xbf16, #tpu.memory_space<vmem>>, %arg2: memref<128x32xbf16, #tpu.memory_space<vmem>>, %arg3: memref<1x32xf32, #tpu.memory_space<vmem>>, %arg4: memref<1x32xf32, #tpu.memory_space<vmem>>, %arg5: memref<1x32xf32, #tpu.memory_space<vmem>>, %arg6: memref<1x19x32xbf16, #tpu.memory_space<vmem>>) attributes {dimension_semantics = [#tpu.dimension_semantics<parallel>], iteration_bounds = array<i64: 2>, scalar_prefetch = 0 : i64, scratch_operands = 0 : i64, tpu.core_type = #tpu.core_type<tc>, window_params = [{transform_indices = @transform_0, window_bounds = array<i64: 1, 20, 64>}, {pipeline_mode = #tpu.pipeline_mode<synchronous>, transform_indices = @transform_1, window_bounds = array<i64: 128, 32>}, {pipeline_mode = #tpu.pipeline_mode<synchronous>, transform_indices = @transform_2, window_bounds = array<i64: 1, 32>}, {pipeline_mode = #tpu.pipeline_mode<synchronous>, transform_indices = @transform_3, window_bounds = array<i64: 1, 32>}, {pipeline_mode = #tpu.pipeline_mode<synchronous>, transform_indices = @transform_4, window_bounds = array<i64: 1, 32>}, {transform_indices = @transform_5, window_bounds = array<i64: 1, 19, 32>}]} {
    %c0 = arith.constant 0 : index
    %c0_0 = arith.constant 0 : index
    %c0_1 = arith.constant 0 : index
    %0 = vector.load %arg1[%c0, %c0_0, %c0_1] : memref<1x20x64xbf16, #tpu.memory_space<vmem>>, vector<1x20x64xbf16>
    %1 = vector.shape_cast %0 : vector<1x20x64xbf16> to vector<20x64xbf16>
    %2 = arith.extf %1 : vector<20x64xbf16> to vector<20x64xf32>
    %3 = vector.extract_strided_slice %2 {offsets = [0, 0], sizes = [19, 64], strides = [1, 1]} : vector<20x64xf32> to vector<19x64xf32>
    %4 = vector.extract_strided_slice %2 {offsets = [1, 0], sizes = [19, 64], strides = [1, 1]} : vector<20x64xf32> to vector<19x64xf32>
    %5 = tpu.concatenate %3, %4 in 1 : vector<19x64xf32>, vector<19x64xf32> -> vector<19x128xf32>
    %6 = arith.truncf %5 : vector<19x128xf32> to vector<19x128xbf16>
    %c0_2 = arith.constant 0 : index
    %c0_3 = arith.constant 0 : index
    %7 = vector.load %arg2[%c0_2, %c0_3] : memref<128x32xbf16, #tpu.memory_space<vmem>>, vector<128x32xbf16>
    %cst = arith.constant dense<0.000000e+00> : vector<19x32xf32>
    %8 = tpu.matmul %6, %7, %cst {dimension_numbers = #tpu.dot_dimension_numbers<[1], [0], [0], [1], [0, 0, 1, 1], [], []>} : vector<19x128xbf16>, vector<128x32xbf16>, vector<19x32xf32> -> vector<19x32xf32>
    %c0_4 = arith.constant 0 : index
    %c0_5 = arith.constant 0 : index
    %9 = vector.load %arg3[%c0_4, %c0_5] : memref<1x32xf32, #tpu.memory_space<vmem>>, vector<1x32xf32>
    %10 = vector.broadcast %9 : vector<1x32xf32> to vector<19x32xf32>
    %11 = arith.addf %8, %10 : vector<19x32xf32>
    %c0_6 = arith.constant 0 : index
    %c0_7 = arith.constant 0 : index
    %12 = vector.load %arg4[%c0_6, %c0_7] : memref<1x32xf32, #tpu.memory_space<vmem>>, vector<1x32xf32>
    %c0_8 = arith.constant 0 : index
    %c0_9 = arith.constant 0 : index
    %13 = vector.load %arg5[%c0_8, %c0_9] : memref<1x32xf32, #tpu.memory_space<vmem>>, vector<1x32xf32>
    %cst_10 = arith.constant dense<0.000000e+00> : vector<19xf32>
    %14 = vector.multi_reduction <add>, %11, %cst_10 [1] : vector<19x32xf32> to vector<19xf32>
    %15 = vector.shape_cast %14 : vector<19xf32> to vector<19x1xf32>
    %cst_11 = arith.constant 3.200000e+01 : f32
    %16 = vector.broadcast %cst_11 : f32 to vector<19x1xf32>
    %17 = arith.divf %15, %16 : vector<19x1xf32>
    %18 = vector.broadcast %17 : vector<19x1xf32> to vector<19x32xf32>
    %19 = arith.subf %11, %18 : vector<19x32xf32>
    %20 = arith.mulf %19, %19 : vector<19x32xf32>
    %cst_12 = arith.constant dense<0.000000e+00> : vector<19xf32>
    %21 = vector.multi_reduction <add>, %20, %cst_12 [1] : vector<19x32xf32> to vector<19xf32>
    %22 = vector.shape_cast %21 : vector<19xf32> to vector<19x1xf32>
    %cst_13 = arith.constant 3.200000e+01 : f32
    %23 = vector.broadcast %cst_13 : f32 to vector<19x1xf32>
    %24 = arith.divf %22, %23 : vector<19x1xf32>
    %25 = vector.broadcast %17 : vector<19x1xf32> to vector<19x32xf32>
    %26 = arith.subf %11, %25 : vector<19x32xf32>
    %cst_14 = arith.constant 9.99999974E-6 : f32
    %27 = vector.broadcast %cst_14 : f32 to vector<19x1xf32>
    %28 = arith.addf %24, %27 : vector<19x1xf32>
    %29 = math.rsqrt %28 : vector<19x1xf32>
    %30 = vector.broadcast %29 : vector<19x1xf32> to vector<19x32xf32>
    %31 = arith.mulf %26, %30 : vector<19x32xf32>
    %32 = vector.broadcast %12 : vector<1x32xf32> to vector<19x32xf32>
    %33 = arith.mulf %31, %32 : vector<19x32xf32>
    %34 = vector.broadcast %13 : vector<1x32xf32> to vector<19x32xf32>
    %35 = arith.addf %33, %34 : vector<19x32xf32>
    %36 = arith.mulf %35, %35 : vector<19x32xf32>
    %37 = arith.mulf %35, %36 : vector<19x32xf32>
    %cst_15 = arith.constant 4.471500e-02 : f32
    %38 = vector.broadcast %cst_15 : f32 to vector<19x32xf32>
    %39 = arith.mulf %38, %37 : vector<19x32xf32>
    %40 = arith.addf %35, %39 : vector<19x32xf32>
    %cst_16 = arith.constant 0.797884583 : f32
    %41 = vector.broadcast %cst_16 : f32 to vector<19x32xf32>
    %42 = arith.mulf %41, %40 : vector<19x32xf32>
    %43 = math.tanh %42 : vector<19x32xf32>
    %cst_17 = arith.constant 1.000000e+00 : f32
    %44 = vector.broadcast %cst_17 : f32 to vector<19x32xf32>
    %45 = arith.addf %44, %43 : vector<19x32xf32>
    %cst_18 = arith.constant 5.000000e-01 : f32
    %46 = vector.broadcast %cst_18 : f32 to vector<19x32xf32>
    %47 = arith.mulf %46, %45 : vector<19x32xf32>
    %48 = arith.mulf %35, %47 : vector<19x32xf32>
    %49 = arith.truncf %48 : vector<19x32xf32> to vector<19x32xbf16>
    %c0_19 = arith.constant 0 : index
    %c0_20 = arith.constant 0 : index
    %c0_21 = arith.constant 0 : index
    %50 = vector.load %arg6[%c0_19, %c0_20, %c0_21] : memref<1x19x32xbf16, #tpu.memory_space<vmem>>, vector<1x19x32xbf16>
    %51 = vector.shape_cast %50 : vector<1x19x32xbf16> to vector<19x32xbf16>
    %52 = vector.shape_cast %49 : vector<19x32xbf16> to vector<1x19x32xbf16>
    tpu.vector_store %arg6[%c0_19, %c0_20, %c0_21], %52 {strides = array<i32>} : memref<1x19x32xbf16, #tpu.memory_space<vmem>>, vector<1x19x32xbf16>,
    return
  }
  func.func @transform_0(%arg0: i32) -> (i32, i32, i32) {
    %c0_i32 = arith.constant 0 : i32
    %c0_i32_0 = arith.constant 0 : i32
    %c0_i32_1 = arith.constant 0 : i32
    return %arg0, %c0_i32, %c0_i32_0 : i32, i32, i32
  }
  func.func @transform_1(%arg0: i32) -> (i32, i32) {
    %c0_i32 = arith.constant 0 : i32
    %c0_i32_0 = arith.constant 0 : i32
    %c0_i32_1 = arith.constant 0 : i32
    return %c0_i32, %c0_i32_0 : i32, i32
  }
  func.func @transform_2(%arg0: i32) -> (i32, i32) {
    %c0_i32 = arith.constant 0 : i32
    %c0_i32_0 = arith.constant 0 : i32
    %c0_i32_1 = arith.constant 0 : i32
    return %c0_i32, %c0_i32_0 : i32, i32
  }
  func.func @transform_3(%arg0: i32) -> (i32, i32) {
    %c0_i32 = arith.constant 0 : i32
    %c0_i32_0 = arith.constant 0 : i32
    %c0_i32_1 = arith.constant 0 : i32
    return %c0_i32, %c0_i32_0 : i32, i32
  }
  func.func @transform_4(%arg0: i32) -> (i32, i32) {
    %c0_i32 = arith.constant 0 : i32
    %c0_i32_0 = arith.constant 0 : i32
    %c0_i32_1 = arith.constant 0 : i32
    return %c0_i32, %c0_i32_0 : i32, i32
  }
  func.func @transform_5(%arg0: i32) -> (i32, i32, i32) {
    %c0_i32 = arith.constant 0 : i32
    %c0_i32_0 = arith.constant 0 : i32
    %c0_i32_1 = arith.constant 0 : i32
    return %arg0, %c0_i32, %c0_i32_0 : i32, i32, i32
  }
}

module attributes {stable_mosaic.version = 11 : i64} {
  func.func @_fp_posconv_kernel(%arg0: i32, %arg1: memref<1x19x32xbf16, #tpu.memory_space<vmem>>, %arg2: memref<1x32xf32, #tpu.memory_space<vmem>>, %arg3: memref<1x32xf32, #tpu.memory_space<vmem>>, %arg4: memref<32x64xbf16, #tpu.memory_space<vmem>>, %arg5: memref<1x64xf32, #tpu.memory_space<vmem>>, %arg6: memref<4x256x16xbf16, #tpu.memory_space<vmem>>, %arg7: memref<1x64xf32, #tpu.memory_space<vmem>>, %arg8: memref<1x24x64xbf16, #tpu.memory_space<vmem>>) attributes {dimension_semantics = [#tpu.dimension_semantics<parallel>], iteration_bounds = array<i64: 2>, scalar_prefetch = 0 : i64, scratch_operands = 0 : i64, tpu.core_type = #tpu.core_type<tc>, window_params = [{transform_indices = @transform_0, window_bounds = array<i64: 1, 19, 32>}, {pipeline_mode = #tpu.pipeline_mode<synchronous>, transform_indices = @transform_1, window_bounds = array<i64: 1, 32>}, {pipeline_mode = #tpu.pipeline_mode<synchronous>, transform_indices = @transform_2, window_bounds = array<i64: 1, 32>}, {pipeline_mode = #tpu.pipeline_mode<synchronous>, transform_indices = @transform_3, window_bounds = array<i64: 32, 64>}, {pipeline_mode = #tpu.pipeline_mode<synchronous>, transform_indices = @transform_4, window_bounds = array<i64: 1, 64>}, {pipeline_mode = #tpu.pipeline_mode<synchronous>, transform_indices = @transform_5, window_bounds = array<i64: 4, 256, 16>}, {pipeline_mode = #tpu.pipeline_mode<synchronous>, transform_indices = @transform_6, window_bounds = array<i64: 1, 64>}, {transform_indices = @transform_7, window_bounds = array<i64: 1, 24, 64>}]} {
    %c0 = arith.constant 0 : index
    %c0_0 = arith.constant 0 : index
    %c0_1 = arith.constant 0 : index
    %0 = vector.load %arg1[%c0, %c0_0, %c0_1] : memref<1x19x32xbf16, #tpu.memory_space<vmem>>, vector<1x19x32xbf16>
    %1 = vector.shape_cast %0 : vector<1x19x32xbf16> to vector<19x32xbf16>
    %2 = arith.extf %1 : vector<19x32xbf16> to vector<19x32xf32>
    %c0_2 = arith.constant 0 : index
    %c0_3 = arith.constant 0 : index
    %3 = vector.load %arg2[%c0_2, %c0_3] : memref<1x32xf32, #tpu.memory_space<vmem>>, vector<1x32xf32>
    %c0_4 = arith.constant 0 : index
    %c0_5 = arith.constant 0 : index
    %4 = vector.load %arg3[%c0_4, %c0_5] : memref<1x32xf32, #tpu.memory_space<vmem>>, vector<1x32xf32>
    %cst = arith.constant dense<0.000000e+00> : vector<19xf32>
    %5 = vector.multi_reduction <add>, %2, %cst [1] : vector<19x32xf32> to vector<19xf32>
    %6 = vector.shape_cast %5 : vector<19xf32> to vector<19x1xf32>
    %cst_6 = arith.constant 3.200000e+01 : f32
    %7 = vector.broadcast %cst_6 : f32 to vector<19x1xf32>
    %8 = arith.divf %6, %7 : vector<19x1xf32>
    %9 = vector.broadcast %8 : vector<19x1xf32> to vector<19x32xf32>
    %10 = arith.subf %2, %9 : vector<19x32xf32>
    %11 = arith.mulf %10, %10 : vector<19x32xf32>
    %cst_7 = arith.constant dense<0.000000e+00> : vector<19xf32>
    %12 = vector.multi_reduction <add>, %11, %cst_7 [1] : vector<19x32xf32> to vector<19xf32>
    %13 = vector.shape_cast %12 : vector<19xf32> to vector<19x1xf32>
    %cst_8 = arith.constant 3.200000e+01 : f32
    %14 = vector.broadcast %cst_8 : f32 to vector<19x1xf32>
    %15 = arith.divf %13, %14 : vector<19x1xf32>
    %16 = vector.broadcast %8 : vector<19x1xf32> to vector<19x32xf32>
    %17 = arith.subf %2, %16 : vector<19x32xf32>
    %cst_9 = arith.constant 9.99999974E-6 : f32
    %18 = vector.broadcast %cst_9 : f32 to vector<19x1xf32>
    %19 = arith.addf %15, %18 : vector<19x1xf32>
    %20 = math.rsqrt %19 : vector<19x1xf32>
    %21 = vector.broadcast %20 : vector<19x1xf32> to vector<19x32xf32>
    %22 = arith.mulf %17, %21 : vector<19x32xf32>
    %23 = vector.broadcast %3 : vector<1x32xf32> to vector<19x32xf32>
    %24 = arith.mulf %22, %23 : vector<19x32xf32>
    %25 = vector.broadcast %4 : vector<1x32xf32> to vector<19x32xf32>
    %26 = arith.addf %24, %25 : vector<19x32xf32>
    %27 = arith.truncf %26 : vector<19x32xf32> to vector<19x32xbf16>
    %c0_10 = arith.constant 0 : index
    %c0_11 = arith.constant 0 : index
    %28 = vector.load %arg4[%c0_10, %c0_11] : memref<32x64xbf16, #tpu.memory_space<vmem>>, vector<32x64xbf16>
    %cst_12 = arith.constant dense<0.000000e+00> : vector<19x64xf32>
    %29 = tpu.matmul %27, %28, %cst_12 {dimension_numbers = #tpu.dot_dimension_numbers<[1], [0], [0], [1], [0, 0, 1, 1], [], []>} : vector<19x32xbf16>, vector<32x64xbf16>, vector<19x64xf32> -> vector<19x64xf32>
    %c0_13 = arith.constant 0 : index
    %c0_14 = arith.constant 0 : index
    %30 = vector.load %arg5[%c0_13, %c0_14] : memref<1x64xf32, #tpu.memory_space<vmem>>, vector<1x64xf32>
    %31 = vector.broadcast %30 : vector<1x64xf32> to vector<19x64xf32>
    %32 = arith.addf %29, %31 : vector<19x64xf32>
    %cst_15 = arith.constant 0.000000e+00 : f32
    %33 = vector.broadcast %cst_15 : f32 to vector<8x64xf32>
    %34 = tpu.concatenate %33, %32, %33 in 0 : vector<8x64xf32>, vector<19x64xf32>, vector<8x64xf32> -> vector<35x64xf32>
    %35 = vector.extract_strided_slice %34 {offsets = [0, 0], sizes = [19, 16], strides = [1, 1]} : vector<35x64xf32> to vector<19x16xf32>
    %36 = vector.extract_strided_slice %34 {offsets = [1, 0], sizes = [19, 16], strides = [1, 1]} : vector<35x64xf32> to vector<19x16xf32>
    %37 = vector.extract_strided_slice %34 {offsets = [2, 0], sizes = [19, 16], strides = [1, 1]} : vector<35x64xf32> to vector<19x16xf32>
    %38 = vector.extract_strided_slice %34 {offsets = [3, 0], sizes = [19, 16], strides = [1, 1]} : vector<35x64xf32> to vector<19x16xf32>
    %39 = vector.extract_strided_slice %34 {offsets = [4, 0], sizes = [19, 16], strides = [1, 1]} : vector<35x64xf32> to vector<19x16xf32>
    %40 = vector.extract_strided_slice %34 {offsets = [5, 0], sizes = [19, 16], strides = [1, 1]} : vector<35x64xf32> to vector<19x16xf32>
    %41 = vector.extract_strided_slice %34 {offsets = [6, 0], sizes = [19, 16], strides = [1, 1]} : vector<35x64xf32> to vector<19x16xf32>
    %42 = vector.extract_strided_slice %34 {offsets = [7, 0], sizes = [19, 16], strides = [1, 1]} : vector<35x64xf32> to vector<19x16xf32>
    %43 = vector.extract_strided_slice %34 {offsets = [8, 0], sizes = [19, 16], strides = [1, 1]} : vector<35x64xf32> to vector<19x16xf32>
    %44 = vector.extract_strided_slice %34 {offsets = [9, 0], sizes = [19, 16], strides = [1, 1]} : vector<35x64xf32> to vector<19x16xf32>
    %45 = vector.extract_strided_slice %34 {offsets = [10, 0], sizes = [19, 16], strides = [1, 1]} : vector<35x64xf32> to vector<19x16xf32>
    %46 = vector.extract_strided_slice %34 {offsets = [11, 0], sizes = [19, 16], strides = [1, 1]} : vector<35x64xf32> to vector<19x16xf32>
    %47 = vector.extract_strided_slice %34 {offsets = [12, 0], sizes = [19, 16], strides = [1, 1]} : vector<35x64xf32> to vector<19x16xf32>
    %48 = vector.extract_strided_slice %34 {offsets = [13, 0], sizes = [19, 16], strides = [1, 1]} : vector<35x64xf32> to vector<19x16xf32>
    %49 = vector.extract_strided_slice %34 {offsets = [14, 0], sizes = [19, 16], strides = [1, 1]} : vector<35x64xf32> to vector<19x16xf32>
    %50 = vector.extract_strided_slice %34 {offsets = [15, 0], sizes = [19, 16], strides = [1, 1]} : vector<35x64xf32> to vector<19x16xf32>
    %51 = tpu.concatenate %35, %36, %37, %38, %39, %40, %41, %42, %43, %44, %45, %46, %47, %48, %49, %50 in 1 : vector<19x16xf32>, vector<19x16xf32>, vector<19x16xf32>, vector<19x16xf32>, vector<19x16xf32>, vector<19x16xf32>, vector<19x16xf32>, vector<19x16xf32>, vector<19x16xf32>, vector<19x16xf32>, vector<19x16xf32>, vector<19x16xf32>, vector<19x16xf32>, vector<19x16xf32>, vector<19x16xf32>, vector<19x16xf32> -> vector<19x256xf32>
    %52 = arith.truncf %51 : vector<19x256xf32> to vector<19x256xbf16>
    %c0_16 = arith.constant 0 : index
    %c0_17 = arith.constant 0 : index
    %c0_18 = arith.constant 0 : index
    %53 = vector.load %arg6[%c0_16, %c0_17, %c0_18] : memref<4x256x16xbf16, #tpu.memory_space<vmem>>, vector<1x256x16xbf16>
    %54 = vector.shape_cast %53 : vector<1x256x16xbf16> to vector<256x16xbf16>
    %cst_19 = arith.constant dense<0.000000e+00> : vector<19x16xf32>
    %55 = tpu.matmul %52, %54, %cst_19 {dimension_numbers = #tpu.dot_dimension_numbers<[1], [0], [0], [1], [0, 0, 1, 1], [], []>} : vector<19x256xbf16>, vector<256x16xbf16>, vector<19x16xf32> -> vector<19x16xf32>
    %56 = vector.extract_strided_slice %34 {offsets = [0, 16], sizes = [19, 16], strides = [1, 1]} : vector<35x64xf32> to vector<19x16xf32>
    %57 = vector.extract_strided_slice %34 {offsets = [1, 16], sizes = [19, 16], strides = [1, 1]} : vector<35x64xf32> to vector<19x16xf32>
    %58 = vector.extract_strided_slice %34 {offsets = [2, 16], sizes = [19, 16], strides = [1, 1]} : vector<35x64xf32> to vector<19x16xf32>
    %59 = vector.extract_strided_slice %34 {offsets = [3, 16], sizes = [19, 16], strides = [1, 1]} : vector<35x64xf32> to vector<19x16xf32>
    %60 = vector.extract_strided_slice %34 {offsets = [4, 16], sizes = [19, 16], strides = [1, 1]} : vector<35x64xf32> to vector<19x16xf32>
    %61 = vector.extract_strided_slice %34 {offsets = [5, 16], sizes = [19, 16], strides = [1, 1]} : vector<35x64xf32> to vector<19x16xf32>
    %62 = vector.extract_strided_slice %34 {offsets = [6, 16], sizes = [19, 16], strides = [1, 1]} : vector<35x64xf32> to vector<19x16xf32>
    %63 = vector.extract_strided_slice %34 {offsets = [7, 16], sizes = [19, 16], strides = [1, 1]} : vector<35x64xf32> to vector<19x16xf32>
    %64 = vector.extract_strided_slice %34 {offsets = [8, 16], sizes = [19, 16], strides = [1, 1]} : vector<35x64xf32> to vector<19x16xf32>
    %65 = vector.extract_strided_slice %34 {offsets = [9, 16], sizes = [19, 16], strides = [1, 1]} : vector<35x64xf32> to vector<19x16xf32>
    %66 = vector.extract_strided_slice %34 {offsets = [10, 16], sizes = [19, 16], strides = [1, 1]} : vector<35x64xf32> to vector<19x16xf32>
    %67 = vector.extract_strided_slice %34 {offsets = [11, 16], sizes = [19, 16], strides = [1, 1]} : vector<35x64xf32> to vector<19x16xf32>
    %68 = vector.extract_strided_slice %34 {offsets = [12, 16], sizes = [19, 16], strides = [1, 1]} : vector<35x64xf32> to vector<19x16xf32>
    %69 = vector.extract_strided_slice %34 {offsets = [13, 16], sizes = [19, 16], strides = [1, 1]} : vector<35x64xf32> to vector<19x16xf32>
    %70 = vector.extract_strided_slice %34 {offsets = [14, 16], sizes = [19, 16], strides = [1, 1]} : vector<35x64xf32> to vector<19x16xf32>
    %71 = vector.extract_strided_slice %34 {offsets = [15, 16], sizes = [19, 16], strides = [1, 1]} : vector<35x64xf32> to vector<19x16xf32>
    %72 = tpu.concatenate %56, %57, %58, %59, %60, %61, %62, %63, %64, %65, %66, %67, %68, %69, %70, %71 in 1 : vector<19x16xf32>, vector<19x16xf32>, vector<19x16xf32>, vector<19x16xf32>, vector<19x16xf32>, vector<19x16xf32>, vector<19x16xf32>, vector<19x16xf32>, vector<19x16xf32>, vector<19x16xf32>, vector<19x16xf32>, vector<19x16xf32>, vector<19x16xf32>, vector<19x16xf32>, vector<19x16xf32>, vector<19x16xf32> -> vector<19x256xf32>
    %73 = arith.truncf %72 : vector<19x256xf32> to vector<19x256xbf16>
    %c1 = arith.constant 1 : index
    %c0_20 = arith.constant 0 : index
    %c0_21 = arith.constant 0 : index
    %74 = vector.load %arg6[%c1, %c0_20, %c0_21] : memref<4x256x16xbf16, #tpu.memory_space<vmem>>, vector<1x256x16xbf16>
    %75 = vector.shape_cast %74 : vector<1x256x16xbf16> to vector<256x16xbf16>
    %cst_22 = arith.constant dense<0.000000e+00> : vector<19x16xf32>
    %76 = tpu.matmul %73, %75, %cst_22 {dimension_numbers = #tpu.dot_dimension_numbers<[1], [0], [0], [1], [0, 0, 1, 1], [], []>} : vector<19x256xbf16>, vector<256x16xbf16>, vector<19x16xf32> -> vector<19x16xf32>
    %77 = vector.extract_strided_slice %34 {offsets = [0, 32], sizes = [19, 16], strides = [1, 1]} : vector<35x64xf32> to vector<19x16xf32>
    %78 = vector.extract_strided_slice %34 {offsets = [1, 32], sizes = [19, 16], strides = [1, 1]} : vector<35x64xf32> to vector<19x16xf32>
    %79 = vector.extract_strided_slice %34 {offsets = [2, 32], sizes = [19, 16], strides = [1, 1]} : vector<35x64xf32> to vector<19x16xf32>
    %80 = vector.extract_strided_slice %34 {offsets = [3, 32], sizes = [19, 16], strides = [1, 1]} : vector<35x64xf32> to vector<19x16xf32>
    %81 = vector.extract_strided_slice %34 {offsets = [4, 32], sizes = [19, 16], strides = [1, 1]} : vector<35x64xf32> to vector<19x16xf32>
    %82 = vector.extract_strided_slice %34 {offsets = [5, 32], sizes = [19, 16], strides = [1, 1]} : vector<35x64xf32> to vector<19x16xf32>
    %83 = vector.extract_strided_slice %34 {offsets = [6, 32], sizes = [19, 16], strides = [1, 1]} : vector<35x64xf32> to vector<19x16xf32>
    %84 = vector.extract_strided_slice %34 {offsets = [7, 32], sizes = [19, 16], strides = [1, 1]} : vector<35x64xf32> to vector<19x16xf32>
    %85 = vector.extract_strided_slice %34 {offsets = [8, 32], sizes = [19, 16], strides = [1, 1]} : vector<35x64xf32> to vector<19x16xf32>
    %86 = vector.extract_strided_slice %34 {offsets = [9, 32], sizes = [19, 16], strides = [1, 1]} : vector<35x64xf32> to vector<19x16xf32>
    %87 = vector.extract_strided_slice %34 {offsets = [10, 32], sizes = [19, 16], strides = [1, 1]} : vector<35x64xf32> to vector<19x16xf32>
    %88 = vector.extract_strided_slice %34 {offsets = [11, 32], sizes = [19, 16], strides = [1, 1]} : vector<35x64xf32> to vector<19x16xf32>
    %89 = vector.extract_strided_slice %34 {offsets = [12, 32], sizes = [19, 16], strides = [1, 1]} : vector<35x64xf32> to vector<19x16xf32>
    %90 = vector.extract_strided_slice %34 {offsets = [13, 32], sizes = [19, 16], strides = [1, 1]} : vector<35x64xf32> to vector<19x16xf32>
    %91 = vector.extract_strided_slice %34 {offsets = [14, 32], sizes = [19, 16], strides = [1, 1]} : vector<35x64xf32> to vector<19x16xf32>
    %92 = vector.extract_strided_slice %34 {offsets = [15, 32], sizes = [19, 16], strides = [1, 1]} : vector<35x64xf32> to vector<19x16xf32>
    %93 = tpu.concatenate %77, %78, %79, %80, %81, %82, %83, %84, %85, %86, %87, %88, %89, %90, %91, %92 in 1 : vector<19x16xf32>, vector<19x16xf32>, vector<19x16xf32>, vector<19x16xf32>, vector<19x16xf32>, vector<19x16xf32>, vector<19x16xf32>, vector<19x16xf32>, vector<19x16xf32>, vector<19x16xf32>, vector<19x16xf32>, vector<19x16xf32>, vector<19x16xf32>, vector<19x16xf32>, vector<19x16xf32>, vector<19x16xf32> -> vector<19x256xf32>
    %94 = arith.truncf %93 : vector<19x256xf32> to vector<19x256xbf16>
    %c2 = arith.constant 2 : index
    %c0_23 = arith.constant 0 : index
    %c0_24 = arith.constant 0 : index
    %95 = vector.load %arg6[%c2, %c0_23, %c0_24] : memref<4x256x16xbf16, #tpu.memory_space<vmem>>, vector<1x256x16xbf16>
    %96 = vector.shape_cast %95 : vector<1x256x16xbf16> to vector<256x16xbf16>
    %cst_25 = arith.constant dense<0.000000e+00> : vector<19x16xf32>
    %97 = tpu.matmul %94, %96, %cst_25 {dimension_numbers = #tpu.dot_dimension_numbers<[1], [0], [0], [1], [0, 0, 1, 1], [], []>} : vector<19x256xbf16>, vector<256x16xbf16>, vector<19x16xf32> -> vector<19x16xf32>
    %98 = vector.extract_strided_slice %34 {offsets = [0, 48], sizes = [19, 16], strides = [1, 1]} : vector<35x64xf32> to vector<19x16xf32>
    %99 = vector.extract_strided_slice %34 {offsets = [1, 48], sizes = [19, 16], strides = [1, 1]} : vector<35x64xf32> to vector<19x16xf32>
    %100 = vector.extract_strided_slice %34 {offsets = [2, 48], sizes = [19, 16], strides = [1, 1]} : vector<35x64xf32> to vector<19x16xf32>
    %101 = vector.extract_strided_slice %34 {offsets = [3, 48], sizes = [19, 16], strides = [1, 1]} : vector<35x64xf32> to vector<19x16xf32>
    %102 = vector.extract_strided_slice %34 {offsets = [4, 48], sizes = [19, 16], strides = [1, 1]} : vector<35x64xf32> to vector<19x16xf32>
    %103 = vector.extract_strided_slice %34 {offsets = [5, 48], sizes = [19, 16], strides = [1, 1]} : vector<35x64xf32> to vector<19x16xf32>
    %104 = vector.extract_strided_slice %34 {offsets = [6, 48], sizes = [19, 16], strides = [1, 1]} : vector<35x64xf32> to vector<19x16xf32>
    %105 = vector.extract_strided_slice %34 {offsets = [7, 48], sizes = [19, 16], strides = [1, 1]} : vector<35x64xf32> to vector<19x16xf32>
    %106 = vector.extract_strided_slice %34 {offsets = [8, 48], sizes = [19, 16], strides = [1, 1]} : vector<35x64xf32> to vector<19x16xf32>
    %107 = vector.extract_strided_slice %34 {offsets = [9, 48], sizes = [19, 16], strides = [1, 1]} : vector<35x64xf32> to vector<19x16xf32>
    %108 = vector.extract_strided_slice %34 {offsets = [10, 48], sizes = [19, 16], strides = [1, 1]} : vector<35x64xf32> to vector<19x16xf32>
    %109 = vector.extract_strided_slice %34 {offsets = [11, 48], sizes = [19, 16], strides = [1, 1]} : vector<35x64xf32> to vector<19x16xf32>
    %110 = vector.extract_strided_slice %34 {offsets = [12, 48], sizes = [19, 16], strides = [1, 1]} : vector<35x64xf32> to vector<19x16xf32>
    %111 = vector.extract_strided_slice %34 {offsets = [13, 48], sizes = [19, 16], strides = [1, 1]} : vector<35x64xf32> to vector<19x16xf32>
    %112 = vector.extract_strided_slice %34 {offsets = [14, 48], sizes = [19, 16], strides = [1, 1]} : vector<35x64xf32> to vector<19x16xf32>
    %113 = vector.extract_strided_slice %34 {offsets = [15, 48], sizes = [19, 16], strides = [1, 1]} : vector<35x64xf32> to vector<19x16xf32>
    %114 = tpu.concatenate %98, %99, %100, %101, %102, %103, %104, %105, %106, %107, %108, %109, %110, %111, %112, %113 in 1 : vector<19x16xf32>, vector<19x16xf32>, vector<19x16xf32>, vector<19x16xf32>, vector<19x16xf32>, vector<19x16xf32>, vector<19x16xf32>, vector<19x16xf32>, vector<19x16xf32>, vector<19x16xf32>, vector<19x16xf32>, vector<19x16xf32>, vector<19x16xf32>, vector<19x16xf32>, vector<19x16xf32>, vector<19x16xf32> -> vector<19x256xf32>
    %115 = arith.truncf %114 : vector<19x256xf32> to vector<19x256xbf16>
    %c3 = arith.constant 3 : index
    %c0_26 = arith.constant 0 : index
    %c0_27 = arith.constant 0 : index
    %116 = vector.load %arg6[%c3, %c0_26, %c0_27] : memref<4x256x16xbf16, #tpu.memory_space<vmem>>, vector<1x256x16xbf16>
    %117 = vector.shape_cast %116 : vector<1x256x16xbf16> to vector<256x16xbf16>
    %cst_28 = arith.constant dense<0.000000e+00> : vector<19x16xf32>
    %118 = tpu.matmul %115, %117, %cst_28 {dimension_numbers = #tpu.dot_dimension_numbers<[1], [0], [0], [1], [0, 0, 1, 1], [], []>} : vector<19x256xbf16>, vector<256x16xbf16>, vector<19x16xf32> -> vector<19x16xf32>
    %119 = tpu.concatenate %55, %76, %97, %118 in 1 : vector<19x16xf32>, vector<19x16xf32>, vector<19x16xf32>, vector<19x16xf32> -> vector<19x64xf32>
    %c0_29 = arith.constant 0 : index
    %c0_30 = arith.constant 0 : index
    %120 = vector.load %arg7[%c0_29, %c0_30] : memref<1x64xf32, #tpu.memory_space<vmem>>, vector<1x64xf32>
    %121 = vector.broadcast %120 : vector<1x64xf32> to vector<19x64xf32>
    %122 = arith.addf %119, %121 : vector<19x64xf32>
    %123 = arith.mulf %122, %122 : vector<19x64xf32>
    %124 = arith.mulf %122, %123 : vector<19x64xf32>
    %cst_31 = arith.constant 4.471500e-02 : f32
    %125 = vector.broadcast %cst_31 : f32 to vector<19x64xf32>
    %126 = arith.mulf %125, %124 : vector<19x64xf32>
    %127 = arith.addf %122, %126 : vector<19x64xf32>
    %cst_32 = arith.constant 0.797884583 : f32
    %128 = vector.broadcast %cst_32 : f32 to vector<19x64xf32>
    %129 = arith.mulf %128, %127 : vector<19x64xf32>
    %130 = math.tanh %129 : vector<19x64xf32>
    %cst_33 = arith.constant 1.000000e+00 : f32
    %131 = vector.broadcast %cst_33 : f32 to vector<19x64xf32>
    %132 = arith.addf %131, %130 : vector<19x64xf32>
    %cst_34 = arith.constant 5.000000e-01 : f32
    %133 = vector.broadcast %cst_34 : f32 to vector<19x64xf32>
    %134 = arith.mulf %133, %132 : vector<19x64xf32>
    %135 = arith.mulf %122, %134 : vector<19x64xf32>
    %136 = arith.addf %32, %135 : vector<19x64xf32>
    %cst_35 = arith.constant 0.000000e+00 : f32
    %137 = vector.broadcast %cst_35 : f32 to vector<5x64xf32>
    %138 = tpu.concatenate %136, %137 in 0 : vector<19x64xf32>, vector<5x64xf32> -> vector<24x64xf32>
    %139 = arith.truncf %138 : vector<24x64xf32> to vector<24x64xbf16>
    %c0_36 = arith.constant 0 : index
    %c0_37 = arith.constant 0 : index
    %c0_38 = arith.constant 0 : index
    %140 = vector.load %arg8[%c0_36, %c0_37, %c0_38] : memref<1x24x64xbf16, #tpu.memory_space<vmem>>, vector<1x24x64xbf16>
    %141 = vector.shape_cast %140 : vector<1x24x64xbf16> to vector<24x64xbf16>
    %142 = vector.shape_cast %139 : vector<24x64xbf16> to vector<1x24x64xbf16>
    tpu.vector_store %arg8[%c0_36, %c0_37, %c0_38], %142 {strides = array<i32>} : memref<1x24x64xbf16, #tpu.memory_space<vmem>>, vector<1x24x64xbf16>,
    return
  }
  func.func @transform_0(%arg0: i32) -> (i32, i32, i32) {
    %c0_i32 = arith.constant 0 : i32
    %c0_i32_0 = arith.constant 0 : i32
    %c0_i32_1 = arith.constant 0 : i32
    return %arg0, %c0_i32, %c0_i32_0 : i32, i32, i32
  }
  func.func @transform_1(%arg0: i32) -> (i32, i32) {
    %c0_i32 = arith.constant 0 : i32
    %c0_i32_0 = arith.constant 0 : i32
    %c0_i32_1 = arith.constant 0 : i32
    return %c0_i32, %c0_i32_0 : i32, i32
  }
  func.func @transform_2(%arg0: i32) -> (i32, i32) {
    %c0_i32 = arith.constant 0 : i32
    %c0_i32_0 = arith.constant 0 : i32
    %c0_i32_1 = arith.constant 0 : i32
    return %c0_i32, %c0_i32_0 : i32, i32
  }
  func.func @transform_3(%arg0: i32) -> (i32, i32) {
    %c0_i32 = arith.constant 0 : i32
    %c0_i32_0 = arith.constant 0 : i32
    %c0_i32_1 = arith.constant 0 : i32
    return %c0_i32, %c0_i32_0 : i32, i32
  }
  func.func @transform_4(%arg0: i32) -> (i32, i32) {
    %c0_i32 = arith.constant 0 : i32
    %c0_i32_0 = arith.constant 0 : i32
    %c0_i32_1 = arith.constant 0 : i32
    return %c0_i32, %c0_i32_0 : i32, i32
  }
  func.func @transform_5(%arg0: i32) -> (i32, i32, i32) {
    %c0_i32 = arith.constant 0 : i32
    %c0_i32_0 = arith.constant 0 : i32
    %c0_i32_1 = arith.constant 0 : i32
    %c0_i32_2 = arith.constant 0 : i32
    return %c0_i32, %c0_i32_0, %c0_i32_1 : i32, i32, i32
  }
  func.func @transform_6(%arg0: i32) -> (i32, i32) {
    %c0_i32 = arith.constant 0 : i32
    %c0_i32_0 = arith.constant 0 : i32
    %c0_i32_1 = arith.constant 0 : i32
    return %c0_i32, %c0_i32_0 : i32, i32
  }
  func.func @transform_7(%arg0: i32) -> (i32, i32, i32) {
    %c0_i32 = arith.constant 0 : i32
    %c0_i32_0 = arith.constant 0 : i32
    %c0_i32_1 = arith.constant 0 : i32
    return %arg0, %c0_i32, %c0_i32_0 : i32, i32, i32
  }
}

module attributes {stable_mosaic.version = 11 : i64} {
  func.func @_encoder_stack_kernel(%arg0: i32, %arg1: i32, %arg2: memref<1x24x64xbf16, #tpu.memory_space<vmem>>, %arg3: memref<1x1x64xf32, #tpu.memory_space<vmem>>, %arg4: memref<1x1x64xf32, #tpu.memory_space<vmem>>, %arg5: memref<1x64x192xbf16, #tpu.memory_space<vmem>>, %arg6: memref<1x1x192xf32, #tpu.memory_space<vmem>>, %arg7: memref<1x64x64xbf16, #tpu.memory_space<vmem>>, %arg8: memref<1x1x64xf32, #tpu.memory_space<vmem>>, %arg9: memref<1x1x64xf32, #tpu.memory_space<vmem>>, %arg10: memref<1x1x64xf32, #tpu.memory_space<vmem>>, %arg11: memref<1x64x128xbf16, #tpu.memory_space<vmem>>, %arg12: memref<1x1x128xf32, #tpu.memory_space<vmem>>, %arg13: memref<1x128x64xbf16, #tpu.memory_space<vmem>>, %arg14: memref<1x1x64xf32, #tpu.memory_space<vmem>>, %arg15: memref<1x64xf32, #tpu.memory_space<vmem>>, %arg16: memref<1x64xf32, #tpu.memory_space<vmem>>, %arg17: memref<1x24x64xf32, #tpu.memory_space<vmem>>, %arg18: memref<24x64xf32, #tpu.memory_space<vmem>>) attributes {dimension_semantics = [#tpu.dimension_semantics<parallel>, #tpu.dimension_semantics<arbitrary>], iteration_bounds = array<i64: 2, 2>, scalar_prefetch = 0 : i64, scratch_operands = 1 : i64, tpu.core_type = #tpu.core_type<tc>, window_params = [{transform_indices = @transform_0, window_bounds = array<i64: 1, 24, 64>}, {transform_indices = @transform_1, window_bounds = array<i64: 1, 1, 64>}, {transform_indices = @transform_2, window_bounds = array<i64: 1, 1, 64>}, {transform_indices = @transform_3, window_bounds = array<i64: 1, 64, 192>}, {transform_indices = @transform_4, window_bounds = array<i64: 1, 1, 192>}, {transform_indices = @transform_5, window_bounds = array<i64: 1, 64, 64>}, {transform_indices = @transform_6, window_bounds = array<i64: 1, 1, 64>}, {transform_indices = @transform_7, window_bounds = array<i64: 1, 1, 64>}, {transform_indices = @transform_8, window_bounds = array<i64: 1, 1, 64>}, {transform_indices = @transform_9, window_bounds = array<i64: 1, 64, 128>}, {transform_indices = @transform_10, window_bounds = array<i64: 1, 1, 128>}, {transform_indices = @transform_11, window_bounds = array<i64: 1, 128, 64>}, {transform_indices = @transform_12, window_bounds = array<i64: 1, 1, 64>}, {pipeline_mode = #tpu.pipeline_mode<synchronous>, transform_indices = @transform_13, window_bounds = array<i64: 1, 64>}, {pipeline_mode = #tpu.pipeline_mode<synchronous>, transform_indices = @transform_14, window_bounds = array<i64: 1, 64>}, {transform_indices = @transform_15, window_bounds = array<i64: 1, 24, 64>}]} {
    %c0_i32 = arith.constant 0 : i32
    %0 = arith.cmpi eq, %arg1, %c0_i32 : i32
    %1 = arith.extui %0 : i1 to i32
    %c0_i32_0 = arith.constant 0 : i32
    %2 = arith.cmpi ne, %1, %c0_i32_0 : i32
    scf.if %2 {
      %c0_82 = arith.constant 0 : index
      %c0_83 = arith.constant 0 : index
      %c0_84 = arith.constant 0 : index
      %213 = vector.load %arg2[%c0_82, %c0_83, %c0_84] : memref<1x24x64xbf16, #tpu.memory_space<vmem>>, vector<1x24x64xbf16>
      %214 = vector.shape_cast %213 : vector<1x24x64xbf16> to vector<24x64xbf16>
      %215 = arith.extf %214 : vector<24x64xbf16> to vector<24x64xf32>
      %c0_85 = arith.constant 0 : index
      %c0_86 = arith.constant 0 : index
      %216 = vector.load %arg18[%c0_85, %c0_86] : memref<24x64xf32, #tpu.memory_space<vmem>>, vector<24x64xf32>
      tpu.vector_store %arg18[%c0_85, %c0_86], %215 {strides = array<i32>} : memref<24x64xf32, #tpu.memory_space<vmem>>, vector<24x64xf32>,
    } else {
    }
    %c0 = arith.constant 0 : index
    %c0_1 = arith.constant 0 : index
    %3 = vector.load %arg18[%c0, %c0_1] : memref<24x64xf32, #tpu.memory_space<vmem>>, vector<24x64xf32>
    %c0_2 = arith.constant 0 : index
    %c0_3 = arith.constant 0 : index
    %c0_4 = arith.constant 0 : index
    %4 = vector.load %arg3[%c0_2, %c0_3, %c0_4] : memref<1x1x64xf32, #tpu.memory_space<vmem>>, vector<1x1x64xf32>
    %5 = vector.shape_cast %4 : vector<1x1x64xf32> to vector<1x64xf32>
    %c0_5 = arith.constant 0 : index
    %c0_6 = arith.constant 0 : index
    %c0_7 = arith.constant 0 : index
    %6 = vector.load %arg4[%c0_5, %c0_6, %c0_7] : memref<1x1x64xf32, #tpu.memory_space<vmem>>, vector<1x1x64xf32>
    %7 = vector.shape_cast %6 : vector<1x1x64xf32> to vector<1x64xf32>
    %cst = arith.constant dense<0.000000e+00> : vector<24xf32>
    %8 = vector.multi_reduction <add>, %3, %cst [1] : vector<24x64xf32> to vector<24xf32>
    %9 = vector.shape_cast %8 : vector<24xf32> to vector<24x1xf32>
    %cst_8 = arith.constant 6.400000e+01 : f32
    %10 = vector.broadcast %cst_8 : f32 to vector<24x1xf32>
    %11 = arith.divf %9, %10 : vector<24x1xf32>
    %12 = vector.broadcast %11 : vector<24x1xf32> to vector<24x64xf32>
    %13 = arith.subf %3, %12 : vector<24x64xf32>
    %14 = arith.mulf %13, %13 : vector<24x64xf32>
    %cst_9 = arith.constant dense<0.000000e+00> : vector<24xf32>
    %15 = vector.multi_reduction <add>, %14, %cst_9 [1] : vector<24x64xf32> to vector<24xf32>
    %16 = vector.shape_cast %15 : vector<24xf32> to vector<24x1xf32>
    %cst_10 = arith.constant 6.400000e+01 : f32
    %17 = vector.broadcast %cst_10 : f32 to vector<24x1xf32>
    %18 = arith.divf %16, %17 : vector<24x1xf32>
    %19 = vector.broadcast %11 : vector<24x1xf32> to vector<24x64xf32>
    %20 = arith.subf %3, %19 : vector<24x64xf32>
    %cst_11 = arith.constant 9.99999974E-6 : f32
    %21 = vector.broadcast %cst_11 : f32 to vector<24x1xf32>
    %22 = arith.addf %18, %21 : vector<24x1xf32>
    %23 = math.rsqrt %22 : vector<24x1xf32>
    %24 = vector.broadcast %23 : vector<24x1xf32> to vector<24x64xf32>
    %25 = arith.mulf %20, %24 : vector<24x64xf32>
    %26 = vector.broadcast %5 : vector<1x64xf32> to vector<24x64xf32>
    %27 = arith.mulf %25, %26 : vector<24x64xf32>
    %28 = vector.broadcast %7 : vector<1x64xf32> to vector<24x64xf32>
    %29 = arith.addf %27, %28 : vector<24x64xf32>
    %30 = arith.truncf %29 : vector<24x64xf32> to vector<24x64xbf16>
    %c0_12 = arith.constant 0 : index
    %c0_13 = arith.constant 0 : index
    %c0_14 = arith.constant 0 : index
    %31 = vector.load %arg5[%c0_12, %c0_13, %c0_14] : memref<1x64x192xbf16, #tpu.memory_space<vmem>>, vector<1x64x192xbf16>
    %32 = vector.shape_cast %31 : vector<1x64x192xbf16> to vector<64x192xbf16>
    %cst_15 = arith.constant dense<0.000000e+00> : vector<24x192xf32>
    %33 = tpu.matmul %30, %32, %cst_15 {dimension_numbers = #tpu.dot_dimension_numbers<[1], [0], [0], [1], [0, 0, 1, 1], [], []>} : vector<24x64xbf16>, vector<64x192xbf16>, vector<24x192xf32> -> vector<24x192xf32>
    %c0_16 = arith.constant 0 : index
    %c0_17 = arith.constant 0 : index
    %c0_18 = arith.constant 0 : index
    %34 = vector.load %arg6[%c0_16, %c0_17, %c0_18] : memref<1x1x192xf32, #tpu.memory_space<vmem>>, vector<1x1x192xf32>
    %35 = vector.shape_cast %34 : vector<1x1x192xf32> to vector<1x192xf32>
    %36 = vector.broadcast %35 : vector<1x192xf32> to vector<24x192xf32>
    %37 = arith.addf %33, %36 : vector<24x192xf32>
    %38 = tpu.iota {dimensions = array<i32: 1>} : vector<1x24xi32>
    %c19_i32 = arith.constant 19 : i32
    %39 = vector.broadcast %c19_i32 : i32 to vector<1x24xi32>
    %40 = arith.cmpi slt, %38, %39 : vector<1x24xi32>
    %41 = vector.extract_strided_slice %37 {offsets = [0, 0], sizes = [24, 16], strides = [1, 1]} : vector<24x192xf32> to vector<24x16xf32>
    %cst_19 = arith.constant 2.500000e-01 : f32
    %42 = vector.broadcast %cst_19 : f32 to vector<24x16xf32>
    %43 = arith.mulf %41, %42 : vector<24x16xf32>
    %44 = vector.extract_strided_slice %37 {offsets = [0, 64], sizes = [24, 16], strides = [1, 1]} : vector<24x192xf32> to vector<24x16xf32>
    %45 = vector.extract_strided_slice %37 {offsets = [0, 128], sizes = [24, 16], strides = [1, 1]} : vector<24x192xf32> to vector<24x16xf32>
    %46 = arith.truncf %43 : vector<24x16xf32> to vector<24x16xbf16>
    %47 = arith.truncf %44 : vector<24x16xf32> to vector<24x16xbf16>
    "tpu.trace_start"() <{level = 10 : i32, message = "qd,kd->qk"}> : () -> ()
    %cst_20 = arith.constant dense<0.000000e+00> : vector<24x24xf32>
    %48 = tpu.matmul %46, %47, %cst_20 {dimension_numbers = #tpu.dot_dimension_numbers<[1], [1], [0], [0], [0, 0, 1, 0], [], []>} : vector<24x16xbf16>, vector<24x16xbf16>, vector<24x24xf32> -> vector<24x24xf32>
    %cst_21 = arith.constant -1.000000e+30 : f32
    "tpu.trace_stop"() : () -> ()
    %49 = vector.shape_cast %40 : vector<1x24xi1> to vector<1x24xi1>
    %50 = vector.broadcast %49 : vector<1x24xi1> to vector<24x24xi1>
    %51 = vector.broadcast %cst_21 : f32 to vector<24x24xf32>
    %52 = arith.select %50, %48, %51 : vector<24x24xi1>, vector<24x24xf32>
    %cst_22 = arith.constant dense<0xFF800000> : vector<24xf32>
    %53 = vector.multi_reduction <maximumf>, %52, %cst_22 [1] : vector<24x24xf32> to vector<24xf32>
    %54 = vector.shape_cast %53 : vector<24xf32> to vector<24x1xf32>
    %55 = vector.broadcast %54 : vector<24x1xf32> to vector<24x24xf32>
    %56 = arith.subf %52, %55 : vector<24x24xf32>
    %57 = math.exp %56 : vector<24x24xf32>
    %cst_23 = arith.constant dense<0.000000e+00> : vector<24xf32>
    %58 = vector.multi_reduction <add>, %57, %cst_23 [1] : vector<24x24xf32> to vector<24xf32>
    %59 = vector.shape_cast %58 : vector<24xf32> to vector<24x1xf32>
    %60 = tpu.reciprocal %59 {approx = true} : vector<24x1xf32> -> vector<24x1xf32>
    %61 = vector.broadcast %60 : vector<24x1xf32> to vector<24x24xf32>
    %62 = arith.mulf %57, %61 : vector<24x24xf32>
    %63 = arith.truncf %62 : vector<24x24xf32> to vector<24x24xbf16>
    %64 = arith.truncf %45 : vector<24x16xf32> to vector<24x16xbf16>
    %cst_24 = arith.constant dense<0.000000e+00> : vector<24x16xf32>
    %65 = tpu.matmul %63, %64, %cst_24 {dimension_numbers = #tpu.dot_dimension_numbers<[1], [0], [0], [1], [0, 0, 1, 1], [], []>} : vector<24x24xbf16>, vector<24x16xbf16>, vector<24x16xf32> -> vector<24x16xf32>
    %66 = vector.extract_strided_slice %37 {offsets = [0, 16], sizes = [24, 16], strides = [1, 1]} : vector<24x192xf32> to vector<24x16xf32>
    %cst_25 = arith.constant 2.500000e-01 : f32
    %67 = vector.broadcast %cst_25 : f32 to vector<24x16xf32>
    %68 = arith.mulf %66, %67 : vector<24x16xf32>
    %69 = vector.extract_strided_slice %37 {offsets = [0, 80], sizes = [24, 16], strides = [1, 1]} : vector<24x192xf32> to vector<24x16xf32>
    %70 = vector.extract_strided_slice %37 {offsets = [0, 144], sizes = [24, 16], strides = [1, 1]} : vector<24x192xf32> to vector<24x16xf32>
    %71 = arith.truncf %68 : vector<24x16xf32> to vector<24x16xbf16>
    %72 = arith.truncf %69 : vector<24x16xf32> to vector<24x16xbf16>
    "tpu.trace_start"() <{level = 10 : i32, message = "qd,kd->qk"}> : () -> ()
    %cst_26 = arith.constant dense<0.000000e+00> : vector<24x24xf32>
    %73 = tpu.matmul %71, %72, %cst_26 {dimension_numbers = #tpu.dot_dimension_numbers<[1], [1], [0], [0], [0, 0, 1, 0], [], []>} : vector<24x16xbf16>, vector<24x16xbf16>, vector<24x24xf32> -> vector<24x24xf32>
    %cst_27 = arith.constant -1.000000e+30 : f32
    "tpu.trace_stop"() : () -> ()
    %74 = vector.shape_cast %40 : vector<1x24xi1> to vector<1x24xi1>
    %75 = vector.broadcast %74 : vector<1x24xi1> to vector<24x24xi1>
    %76 = vector.broadcast %cst_27 : f32 to vector<24x24xf32>
    %77 = arith.select %75, %73, %76 : vector<24x24xi1>, vector<24x24xf32>
    %cst_28 = arith.constant dense<0xFF800000> : vector<24xf32>
    %78 = vector.multi_reduction <maximumf>, %77, %cst_28 [1] : vector<24x24xf32> to vector<24xf32>
    %79 = vector.shape_cast %78 : vector<24xf32> to vector<24x1xf32>
    %80 = vector.broadcast %79 : vector<24x1xf32> to vector<24x24xf32>
    %81 = arith.subf %77, %80 : vector<24x24xf32>
    %82 = math.exp %81 : vector<24x24xf32>
    %cst_29 = arith.constant dense<0.000000e+00> : vector<24xf32>
    %83 = vector.multi_reduction <add>, %82, %cst_29 [1] : vector<24x24xf32> to vector<24xf32>
    %84 = vector.shape_cast %83 : vector<24xf32> to vector<24x1xf32>
    %85 = tpu.reciprocal %84 {approx = true} : vector<24x1xf32> -> vector<24x1xf32>
    %86 = vector.broadcast %85 : vector<24x1xf32> to vector<24x24xf32>
    %87 = arith.mulf %82, %86 : vector<24x24xf32>
    %88 = arith.truncf %87 : vector<24x24xf32> to vector<24x24xbf16>
    %89 = arith.truncf %70 : vector<24x16xf32> to vector<24x16xbf16>
    %cst_30 = arith.constant dense<0.000000e+00> : vector<24x16xf32>
    %90 = tpu.matmul %88, %89, %cst_30 {dimension_numbers = #tpu.dot_dimension_numbers<[1], [0], [0], [1], [0, 0, 1, 1], [], []>} : vector<24x24xbf16>, vector<24x16xbf16>, vector<24x16xf32> -> vector<24x16xf32>
    %91 = vector.extract_strided_slice %37 {offsets = [0, 32], sizes = [24, 16], strides = [1, 1]} : vector<24x192xf32> to vector<24x16xf32>
    %cst_31 = arith.constant 2.500000e-01 : f32
    %92 = vector.broadcast %cst_31 : f32 to vector<24x16xf32>
    %93 = arith.mulf %91, %92 : vector<24x16xf32>
    %94 = vector.extract_strided_slice %37 {offsets = [0, 96], sizes = [24, 16], strides = [1, 1]} : vector<24x192xf32> to vector<24x16xf32>
    %95 = vector.extract_strided_slice %37 {offsets = [0, 160], sizes = [24, 16], strides = [1, 1]} : vector<24x192xf32> to vector<24x16xf32>
    %96 = arith.truncf %93 : vector<24x16xf32> to vector<24x16xbf16>
    %97 = arith.truncf %94 : vector<24x16xf32> to vector<24x16xbf16>
    "tpu.trace_start"() <{level = 10 : i32, message = "qd,kd->qk"}> : () -> ()
    %cst_32 = arith.constant dense<0.000000e+00> : vector<24x24xf32>
    %98 = tpu.matmul %96, %97, %cst_32 {dimension_numbers = #tpu.dot_dimension_numbers<[1], [1], [0], [0], [0, 0, 1, 0], [], []>} : vector<24x16xbf16>, vector<24x16xbf16>, vector<24x24xf32> -> vector<24x24xf32>
    %cst_33 = arith.constant -1.000000e+30 : f32
    "tpu.trace_stop"() : () -> ()
    %99 = vector.shape_cast %40 : vector<1x24xi1> to vector<1x24xi1>
    %100 = vector.broadcast %99 : vector<1x24xi1> to vector<24x24xi1>
    %101 = vector.broadcast %cst_33 : f32 to vector<24x24xf32>
    %102 = arith.select %100, %98, %101 : vector<24x24xi1>, vector<24x24xf32>
    %cst_34 = arith.constant dense<0xFF800000> : vector<24xf32>
    %103 = vector.multi_reduction <maximumf>, %102, %cst_34 [1] : vector<24x24xf32> to vector<24xf32>
    %104 = vector.shape_cast %103 : vector<24xf32> to vector<24x1xf32>
    %105 = vector.broadcast %104 : vector<24x1xf32> to vector<24x24xf32>
    %106 = arith.subf %102, %105 : vector<24x24xf32>
    %107 = math.exp %106 : vector<24x24xf32>
    %cst_35 = arith.constant dense<0.000000e+00> : vector<24xf32>
    %108 = vector.multi_reduction <add>, %107, %cst_35 [1] : vector<24x24xf32> to vector<24xf32>
    %109 = vector.shape_cast %108 : vector<24xf32> to vector<24x1xf32>
    %110 = tpu.reciprocal %109 {approx = true} : vector<24x1xf32> -> vector<24x1xf32>
    %111 = vector.broadcast %110 : vector<24x1xf32> to vector<24x24xf32>
    %112 = arith.mulf %107, %111 : vector<24x24xf32>
    %113 = arith.truncf %112 : vector<24x24xf32> to vector<24x24xbf16>
    %114 = arith.truncf %95 : vector<24x16xf32> to vector<24x16xbf16>
    %cst_36 = arith.constant dense<0.000000e+00> : vector<24x16xf32>
    %115 = tpu.matmul %113, %114, %cst_36 {dimension_numbers = #tpu.dot_dimension_numbers<[1], [0], [0], [1], [0, 0, 1, 1], [], []>} : vector<24x24xbf16>, vector<24x16xbf16>, vector<24x16xf32> -> vector<24x16xf32>
    %116 = vector.extract_strided_slice %37 {offsets = [0, 48], sizes = [24, 16], strides = [1, 1]} : vector<24x192xf32> to vector<24x16xf32>
    %cst_37 = arith.constant 2.500000e-01 : f32
    %117 = vector.broadcast %cst_37 : f32 to vector<24x16xf32>
    %118 = arith.mulf %116, %117 : vector<24x16xf32>
    %119 = vector.extract_strided_slice %37 {offsets = [0, 112], sizes = [24, 16], strides = [1, 1]} : vector<24x192xf32> to vector<24x16xf32>
    %120 = vector.extract_strided_slice %37 {offsets = [0, 176], sizes = [24, 16], strides = [1, 1]} : vector<24x192xf32> to vector<24x16xf32>
    %121 = arith.truncf %118 : vector<24x16xf32> to vector<24x16xbf16>
    %122 = arith.truncf %119 : vector<24x16xf32> to vector<24x16xbf16>
    "tpu.trace_start"() <{level = 10 : i32, message = "qd,kd->qk"}> : () -> ()
    %cst_38 = arith.constant dense<0.000000e+00> : vector<24x24xf32>
    %123 = tpu.matmul %121, %122, %cst_38 {dimension_numbers = #tpu.dot_dimension_numbers<[1], [1], [0], [0], [0, 0, 1, 0], [], []>} : vector<24x16xbf16>, vector<24x16xbf16>, vector<24x24xf32> -> vector<24x24xf32>
    %cst_39 = arith.constant -1.000000e+30 : f32
    "tpu.trace_stop"() : () -> ()
    %124 = vector.shape_cast %40 : vector<1x24xi1> to vector<1x24xi1>
    %125 = vector.broadcast %124 : vector<1x24xi1> to vector<24x24xi1>
    %126 = vector.broadcast %cst_39 : f32 to vector<24x24xf32>
    %127 = arith.select %125, %123, %126 : vector<24x24xi1>, vector<24x24xf32>
    %cst_40 = arith.constant dense<0xFF800000> : vector<24xf32>
    %128 = vector.multi_reduction <maximumf>, %127, %cst_40 [1] : vector<24x24xf32> to vector<24xf32>
    %129 = vector.shape_cast %128 : vector<24xf32> to vector<24x1xf32>
    %130 = vector.broadcast %129 : vector<24x1xf32> to vector<24x24xf32>
    %131 = arith.subf %127, %130 : vector<24x24xf32>
    %132 = math.exp %131 : vector<24x24xf32>
    %cst_41 = arith.constant dense<0.000000e+00> : vector<24xf32>
    %133 = vector.multi_reduction <add>, %132, %cst_41 [1] : vector<24x24xf32> to vector<24xf32>
    %134 = vector.shape_cast %133 : vector<24xf32> to vector<24x1xf32>
    %135 = tpu.reciprocal %134 {approx = true} : vector<24x1xf32> -> vector<24x1xf32>
    %136 = vector.broadcast %135 : vector<24x1xf32> to vector<24x24xf32>
    %137 = arith.mulf %132, %136 : vector<24x24xf32>
    %138 = arith.truncf %137 : vector<24x24xf32> to vector<24x24xbf16>
    %139 = arith.truncf %120 : vector<24x16xf32> to vector<24x16xbf16>
    %cst_42 = arith.constant dense<0.000000e+00> : vector<24x16xf32>
    %140 = tpu.matmul %138, %139, %cst_42 {dimension_numbers = #tpu.dot_dimension_numbers<[1], [0], [0], [1], [0, 0, 1, 1], [], []>} : vector<24x24xbf16>, vector<24x16xbf16>, vector<24x16xf32> -> vector<24x16xf32>
    %141 = tpu.concatenate %65, %90, %115, %140 in 1 : vector<24x16xf32>, vector<24x16xf32>, vector<24x16xf32>, vector<24x16xf32> -> vector<24x64xf32>
    %142 = arith.truncf %141 : vector<24x64xf32> to vector<24x64xbf16>
    %c0_43 = arith.constant 0 : index
    %c0_44 = arith.constant 0 : index
    %c0_45 = arith.constant 0 : index
    %143 = vector.load %arg7[%c0_43, %c0_44, %c0_45] : memref<1x64x64xbf16, #tpu.memory_space<vmem>>, vector<1x64x64xbf16>
    %144 = vector.shape_cast %143 : vector<1x64x64xbf16> to vector<64x64xbf16>
    %cst_46 = arith.constant dense<0.000000e+00> : vector<24x64xf32>
    %145 = tpu.matmul %142, %144, %cst_46 {dimension_numbers = #tpu.dot_dimension_numbers<[1], [0], [0], [1], [0, 0, 1, 1], [], []>} : vector<24x64xbf16>, vector<64x64xbf16>, vector<24x64xf32> -> vector<24x64xf32>
    %c0_47 = arith.constant 0 : index
    %c0_48 = arith.constant 0 : index
    %c0_49 = arith.constant 0 : index
    %146 = vector.load %arg8[%c0_47, %c0_48, %c0_49] : memref<1x1x64xf32, #tpu.memory_space<vmem>>, vector<1x1x64xf32>
    %147 = vector.shape_cast %146 : vector<1x1x64xf32> to vector<1x64xf32>
    %148 = vector.broadcast %147 : vector<1x64xf32> to vector<24x64xf32>
    %149 = arith.addf %145, %148 : vector<24x64xf32>
    %150 = arith.addf %3, %149 : vector<24x64xf32>
    %c0_50 = arith.constant 0 : index
    %c0_51 = arith.constant 0 : index
    %c0_52 = arith.constant 0 : index
    %151 = vector.load %arg9[%c0_50, %c0_51, %c0_52] : memref<1x1x64xf32, #tpu.memory_space<vmem>>, vector<1x1x64xf32>
    %152 = vector.shape_cast %151 : vector<1x1x64xf32> to vector<1x64xf32>
    %c0_53 = arith.constant 0 : index
    %c0_54 = arith.constant 0 : index
    %c0_55 = arith.constant 0 : index
    %153 = vector.load %arg10[%c0_53, %c0_54, %c0_55] : memref<1x1x64xf32, #tpu.memory_space<vmem>>, vector<1x1x64xf32>
    %154 = vector.shape_cast %153 : vector<1x1x64xf32> to vector<1x64xf32>
    %cst_56 = arith.constant dense<0.000000e+00> : vector<24xf32>
    %155 = vector.multi_reduction <add>, %150, %cst_56 [1] : vector<24x64xf32> to vector<24xf32>
    %156 = vector.shape_cast %155 : vector<24xf32> to vector<24x1xf32>
    %cst_57 = arith.constant 6.400000e+01 : f32
    %157 = vector.broadcast %cst_57 : f32 to vector<24x1xf32>
    %158 = arith.divf %156, %157 : vector<24x1xf32>
    %159 = vector.broadcast %158 : vector<24x1xf32> to vector<24x64xf32>
    %160 = arith.subf %150, %159 : vector<24x64xf32>
    %161 = arith.mulf %160, %160 : vector<24x64xf32>
    %cst_58 = arith.constant dense<0.000000e+00> : vector<24xf32>
    %162 = vector.multi_reduction <add>, %161, %cst_58 [1] : vector<24x64xf32> to vector<24xf32>
    %163 = vector.shape_cast %162 : vector<24xf32> to vector<24x1xf32>
    %cst_59 = arith.constant 6.400000e+01 : f32
    %164 = vector.broadcast %cst_59 : f32 to vector<24x1xf32>
    %165 = arith.divf %163, %164 : vector<24x1xf32>
    %166 = vector.broadcast %158 : vector<24x1xf32> to vector<24x64xf32>
    %167 = arith.subf %150, %166 : vector<24x64xf32>
    %cst_60 = arith.constant 9.99999974E-6 : f32
    %168 = vector.broadcast %cst_60 : f32 to vector<24x1xf32>
    %169 = arith.addf %165, %168 : vector<24x1xf32>
    %170 = math.rsqrt %169 : vector<24x1xf32>
    %171 = vector.broadcast %170 : vector<24x1xf32> to vector<24x64xf32>
    %172 = arith.mulf %167, %171 : vector<24x64xf32>
    %173 = vector.broadcast %152 : vector<1x64xf32> to vector<24x64xf32>
    %174 = arith.mulf %172, %173 : vector<24x64xf32>
    %175 = vector.broadcast %154 : vector<1x64xf32> to vector<24x64xf32>
    %176 = arith.addf %174, %175 : vector<24x64xf32>
    %177 = arith.truncf %176 : vector<24x64xf32> to vector<24x64xbf16>
    %c0_61 = arith.constant 0 : index
    %c0_62 = arith.constant 0 : index
    %c0_63 = arith.constant 0 : index
    %178 = vector.load %arg11[%c0_61, %c0_62, %c0_63] : memref<1x64x128xbf16, #tpu.memory_space<vmem>>, vector<1x64x128xbf16>
    %179 = vector.shape_cast %178 : vector<1x64x128xbf16> to vector<64x128xbf16>
    %cst_64 = arith.constant dense<0.000000e+00> : vector<24x128xf32>
    %180 = tpu.matmul %177, %179, %cst_64 {dimension_numbers = #tpu.dot_dimension_numbers<[1], [0], [0], [1], [0, 0, 1, 1], [], []>} : vector<24x64xbf16>, vector<64x128xbf16>, vector<24x128xf32> -> vector<24x128xf32>
    %c0_65 = arith.constant 0 : index
    %c0_66 = arith.constant 0 : index
    %c0_67 = arith.constant 0 : index
    %181 = vector.load %arg12[%c0_65, %c0_66, %c0_67] : memref<1x1x128xf32, #tpu.memory_space<vmem>>, vector<1x1x128xf32>
    %182 = vector.shape_cast %181 : vector<1x1x128xf32> to vector<1x128xf32>
    %183 = vector.broadcast %182 : vector<1x128xf32> to vector<24x128xf32>
    %184 = arith.addf %180, %183 : vector<24x128xf32>
    %185 = arith.mulf %184, %184 : vector<24x128xf32>
    %186 = arith.mulf %184, %185 : vector<24x128xf32>
    %cst_68 = arith.constant 4.471500e-02 : f32
    %187 = vector.broadcast %cst_68 : f32 to vector<24x128xf32>
    %188 = arith.mulf %187, %186 : vector<24x128xf32>
    %189 = arith.addf %184, %188 : vector<24x128xf32>
    %cst_69 = arith.constant 0.797884583 : f32
    %190 = vector.broadcast %cst_69 : f32 to vector<24x128xf32>
    %191 = arith.mulf %190, %189 : vector<24x128xf32>
    %192 = math.tanh %191 : vector<24x128xf32>
    %cst_70 = arith.constant 1.000000e+00 : f32
    %193 = vector.broadcast %cst_70 : f32 to vector<24x128xf32>
    %194 = arith.addf %193, %192 : vector<24x128xf32>
    %cst_71 = arith.constant 5.000000e-01 : f32
    %195 = vector.broadcast %cst_71 : f32 to vector<24x128xf32>
    %196 = arith.mulf %195, %194 : vector<24x128xf32>
    %197 = arith.mulf %184, %196 : vector<24x128xf32>
    %198 = arith.truncf %197 : vector<24x128xf32> to vector<24x128xbf16>
    %c0_72 = arith.constant 0 : index
    %c0_73 = arith.constant 0 : index
    %c0_74 = arith.constant 0 : index
    %199 = vector.load %arg13[%c0_72, %c0_73, %c0_74] : memref<1x128x64xbf16, #tpu.memory_space<vmem>>, vector<1x128x64xbf16>
    %200 = vector.shape_cast %199 : vector<1x128x64xbf16> to vector<128x64xbf16>
    %cst_75 = arith.constant dense<0.000000e+00> : vector<24x64xf32>
    %201 = tpu.matmul %198, %200, %cst_75 {dimension_numbers = #tpu.dot_dimension_numbers<[1], [0], [0], [1], [0, 0, 1, 1], [], []>} : vector<24x128xbf16>, vector<128x64xbf16>, vector<24x64xf32> -> vector<24x64xf32>
    %c0_76 = arith.constant 0 : index
    %c0_77 = arith.constant 0 : index
    %c0_78 = arith.constant 0 : index
    %202 = vector.load %arg14[%c0_76, %c0_77, %c0_78] : memref<1x1x64xf32, #tpu.memory_space<vmem>>, vector<1x1x64xf32>
    %203 = vector.shape_cast %202 : vector<1x1x64xf32> to vector<1x64xf32>
    %204 = vector.broadcast %203 : vector<1x64xf32> to vector<24x64xf32>
    %205 = arith.addf %201, %204 : vector<24x64xf32>
    %206 = arith.addf %150, %205 : vector<24x64xf32>
    %c1_i32 = arith.constant 1 : i32
    %207 = arith.cmpi slt, %arg1, %c1_i32 : i32
    %208 = arith.extui %207 : i1 to i32
    %c0_i32_79 = arith.constant 0 : i32
    %209 = arith.cmpi ne, %208, %c0_i32_79 : i32
    scf.if %209 {
      %c0_82 = arith.constant 0 : index
      %c0_83 = arith.constant 0 : index
      %213 = vector.load %arg18[%c0_82, %c0_83] : memref<24x64xf32, #tpu.memory_space<vmem>>, vector<24x64xf32>
      tpu.vector_store %arg18[%c0_82, %c0_83], %206 {strides = array<i32>} : memref<24x64xf32, #tpu.memory_space<vmem>>, vector<24x64xf32>,
    } else {
    }
    %c1_i32_80 = arith.constant 1 : i32
    %210 = arith.cmpi eq, %arg1, %c1_i32_80 : i32
    %211 = arith.extui %210 : i1 to i32
    %c0_i32_81 = arith.constant 0 : i32
    %212 = arith.cmpi ne, %211, %c0_i32_81 : i32
    scf.if %212 {
      %c0_82 = arith.constant 0 : index
      %c0_83 = arith.constant 0 : index
      %213 = vector.load %arg15[%c0_82, %c0_83] : memref<1x64xf32, #tpu.memory_space<vmem>>, vector<1x64xf32>
      %c0_84 = arith.constant 0 : index
      %c0_85 = arith.constant 0 : index
      %214 = vector.load %arg16[%c0_84, %c0_85] : memref<1x64xf32, #tpu.memory_space<vmem>>, vector<1x64xf32>
      %cst_86 = arith.constant dense<0.000000e+00> : vector<24xf32>
      %215 = vector.multi_reduction <add>, %206, %cst_86 [1] : vector<24x64xf32> to vector<24xf32>
      %216 = vector.shape_cast %215 : vector<24xf32> to vector<24x1xf32>
      %cst_87 = arith.constant 6.400000e+01 : f32
      %217 = vector.broadcast %cst_87 : f32 to vector<24x1xf32>
      %218 = arith.divf %216, %217 : vector<24x1xf32>
      %219 = vector.broadcast %218 : vector<24x1xf32> to vector<24x64xf32>
      %220 = arith.subf %206, %219 : vector<24x64xf32>
      %221 = arith.mulf %220, %220 : vector<24x64xf32>
      %cst_88 = arith.constant dense<0.000000e+00> : vector<24xf32>
      %222 = vector.multi_reduction <add>, %221, %cst_88 [1] : vector<24x64xf32> to vector<24xf32>
      %223 = vector.shape_cast %222 : vector<24xf32> to vector<24x1xf32>
      %cst_89 = arith.constant 6.400000e+01 : f32
      %224 = vector.broadcast %cst_89 : f32 to vector<24x1xf32>
      %225 = arith.divf %223, %224 : vector<24x1xf32>
      %226 = vector.broadcast %218 : vector<24x1xf32> to vector<24x64xf32>
      %227 = arith.subf %206, %226 : vector<24x64xf32>
      %cst_90 = arith.constant 9.99999974E-6 : f32
      %228 = vector.broadcast %cst_90 : f32 to vector<24x1xf32>
      %229 = arith.addf %225, %228 : vector<24x1xf32>
      %230 = math.rsqrt %229 : vector<24x1xf32>
      %231 = vector.broadcast %230 : vector<24x1xf32> to vector<24x64xf32>
      %232 = arith.mulf %227, %231 : vector<24x64xf32>
      %233 = vector.broadcast %213 : vector<1x64xf32> to vector<24x64xf32>
      %234 = arith.mulf %232, %233 : vector<24x64xf32>
      %235 = vector.broadcast %214 : vector<1x64xf32> to vector<24x64xf32>
      %236 = arith.addf %234, %235 : vector<24x64xf32>
      %c0_91 = arith.constant 0 : index
      %c0_92 = arith.constant 0 : index
      %c0_93 = arith.constant 0 : index
      %237 = vector.load %arg17[%c0_91, %c0_92, %c0_93] : memref<1x24x64xf32, #tpu.memory_space<vmem>>, vector<1x24x64xf32>
      %238 = vector.shape_cast %237 : vector<1x24x64xf32> to vector<24x64xf32>
      %239 = vector.shape_cast %236 : vector<24x64xf32> to vector<1x24x64xf32>
      tpu.vector_store %arg17[%c0_91, %c0_92, %c0_93], %239 {strides = array<i32>} : memref<1x24x64xf32, #tpu.memory_space<vmem>>, vector<1x24x64xf32>,
    } else {
    }
    return
  }
  func.func @transform_0(%arg0: i32, %arg1: i32) -> (i32, i32, i32) {
    %c0_i32 = arith.constant 0 : i32
    %c0_i32_0 = arith.constant 0 : i32
    %c0_i32_1 = arith.constant 0 : i32
    return %arg0, %c0_i32, %c0_i32_0 : i32, i32, i32
  }
  func.func @transform_1(%arg0: i32, %arg1: i32) -> (i32, i32, i32) {
    %c0_i32 = arith.constant 0 : i32
    %c0_i32_0 = arith.constant 0 : i32
    %c0_i32_1 = arith.constant 0 : i32
    return %arg1, %c0_i32, %c0_i32_0 : i32, i32, i32
  }
  func.func @transform_2(%arg0: i32, %arg1: i32) -> (i32, i32, i32) {
    %c0_i32 = arith.constant 0 : i32
    %c0_i32_0 = arith.constant 0 : i32
    %c0_i32_1 = arith.constant 0 : i32
    return %arg1, %c0_i32, %c0_i32_0 : i32, i32, i32
  }
  func.func @transform_3(%arg0: i32, %arg1: i32) -> (i32, i32, i32) {
    %c0_i32 = arith.constant 0 : i32
    %c0_i32_0 = arith.constant 0 : i32
    %c0_i32_1 = arith.constant 0 : i32
    return %arg1, %c0_i32, %c0_i32_0 : i32, i32, i32
  }
  func.func @transform_4(%arg0: i32, %arg1: i32) -> (i32, i32, i32) {
    %c0_i32 = arith.constant 0 : i32
    %c0_i32_0 = arith.constant 0 : i32
    %c0_i32_1 = arith.constant 0 : i32
    return %arg1, %c0_i32, %c0_i32_0 : i32, i32, i32
  }
  func.func @transform_5(%arg0: i32, %arg1: i32) -> (i32, i32, i32) {
    %c0_i32 = arith.constant 0 : i32
    %c0_i32_0 = arith.constant 0 : i32
    %c0_i32_1 = arith.constant 0 : i32
    return %arg1, %c0_i32, %c0_i32_0 : i32, i32, i32
  }
  func.func @transform_6(%arg0: i32, %arg1: i32) -> (i32, i32, i32) {
    %c0_i32 = arith.constant 0 : i32
    %c0_i32_0 = arith.constant 0 : i32
    %c0_i32_1 = arith.constant 0 : i32
    return %arg1, %c0_i32, %c0_i32_0 : i32, i32, i32
  }
  func.func @transform_7(%arg0: i32, %arg1: i32) -> (i32, i32, i32) {
    %c0_i32 = arith.constant 0 : i32
    %c0_i32_0 = arith.constant 0 : i32
    %c0_i32_1 = arith.constant 0 : i32
    return %arg1, %c0_i32, %c0_i32_0 : i32, i32, i32
  }
  func.func @transform_8(%arg0: i32, %arg1: i32) -> (i32, i32, i32) {
    %c0_i32 = arith.constant 0 : i32
    %c0_i32_0 = arith.constant 0 : i32
    %c0_i32_1 = arith.constant 0 : i32
    return %arg1, %c0_i32, %c0_i32_0 : i32, i32, i32
  }
  func.func @transform_9(%arg0: i32, %arg1: i32) -> (i32, i32, i32) {
    %c0_i32 = arith.constant 0 : i32
    %c0_i32_0 = arith.constant 0 : i32
    %c0_i32_1 = arith.constant 0 : i32
    return %arg1, %c0_i32, %c0_i32_0 : i32, i32, i32
  }
  func.func @transform_10(%arg0: i32, %arg1: i32) -> (i32, i32, i32) {
    %c0_i32 = arith.constant 0 : i32
    %c0_i32_0 = arith.constant 0 : i32
    %c0_i32_1 = arith.constant 0 : i32
    return %arg1, %c0_i32, %c0_i32_0 : i32, i32, i32
  }
  func.func @transform_11(%arg0: i32, %arg1: i32) -> (i32, i32, i32) {
    %c0_i32 = arith.constant 0 : i32
    %c0_i32_0 = arith.constant 0 : i32
    %c0_i32_1 = arith.constant 0 : i32
    return %arg1, %c0_i32, %c0_i32_0 : i32, i32, i32
  }
  func.func @transform_12(%arg0: i32, %arg1: i32) -> (i32, i32, i32) {
    %c0_i32 = arith.constant 0 : i32
    %c0_i32_0 = arith.constant 0 : i32
    %c0_i32_1 = arith.constant 0 : i32
    return %arg1, %c0_i32, %c0_i32_0 : i32, i32, i32
  }
  func.func @transform_13(%arg0: i32, %arg1: i32) -> (i32, i32) {
    %c0_i32 = arith.constant 0 : i32
    %c0_i32_0 = arith.constant 0 : i32
    %c0_i32_1 = arith.constant 0 : i32
    return %c0_i32, %c0_i32_0 : i32, i32
  }
  func.func @transform_14(%arg0: i32, %arg1: i32) -> (i32, i32) {
    %c0_i32 = arith.constant 0 : i32
    %c0_i32_0 = arith.constant 0 : i32
    %c0_i32_1 = arith.constant 0 : i32
    return %c0_i32, %c0_i32_0 : i32, i32
  }
  func.func @transform_15(%arg0: i32, %arg1: i32) -> (i32, i32, i32) {
    %c0_i32 = arith.constant 0 : i32
    %c0_i32_0 = arith.constant 0 : i32
    %c0_i32_1 = arith.constant 0 : i32
    return %arg0, %c0_i32, %c0_i32_0 : i32, i32, i32
  }
}

</mosaic_0001>

<bundles_post_ra>
// kernel: wav2vec2_encoder_forward.7
= control target key start
LH: loop header
LB: loop body
LE: loop exit
PB: predicated region body
PF: predicated region fallthrough
CT: control target
= control target key end

     0   :  { %s675_s18 = smov 0   ;;  %s738_s0 = inlined_call_operand.vmem [shape: bf16[2,20,64], index: 0, kind: input, shape index: {}]   ;;  %s739_s1 = inlined_call_operand.vmem [shape: bf16[128,32], index: 1, kind: input, shape index: {}]   ;;  %s740_s2 = inlined_call_operand.vmem [shape: f32[1,32], index: 2, kind: input, shape index: {}]   ;;  %s741_s3 = inlined_call_operand.vmem [shape: f32[1,32], index: 3, kind: input, shape index: {}]   ;;  %s742_s4 = inlined_call_operand.vmem [shape: f32[1,32], index: 4, kind: input, shape index: {}]   ;;  %s743_s5 = inlined_call_operand.vmem [shape: bf16[2,19,32], index: 5, kind: output, shape index: {}]  }
   0x1 LB: > { %s541_s19 = sadd.s32 4294967295, %s642_s18   ;;  %p545_p0 = scmp.ge.s32.totalorder %s642_s18, 1  ;;  %s642_s18 = sphi %s675_s18, %s15_s18  }
   0x2   : > { %p187_p1 = scmp.lt.s32.totalorder %s642_s18, 3 }
   0x4   : > { %p188_p2 = pnand %p545_p0, %p187_p1 }
   0x5   : > { %p215_p3 = scmp.lt.s32.totalorder (!%p188_p2), %s541_s19, 1  ;;  %v616_v0 = vld [vmem:[%s739_s1] sm:$0xff] (!%p188_p2)   ;;  %v617_v1 = vld [vmem:[%s739_s1 + $0x8] sm:$0xff] (!%p188_p2)   ;;  %v618_v2 = vld [vmem:[%s739_s1 + $0x10] sm:$0xff] (!%p188_p2)   ;;  %vm235_vm0 = vcmask (!%p188_p2), 1046528   ;;  %s644_s9 = smov (!%p188_p2), 64  }
   0x6   : > { %191 = sbr.rel (%p188_p2) target bundleno = 712 (0x2c8), region = 40  ;;  %581 = vmatprep.subr.bf16.mxu0 (!%p188_p2), %v616_v0  ;;  %v619_v8 = vld [vmem:[%s739_s1 + $0x18] sm:$0xff] (!%p188_p2)   ;;  %v620_v14 = vld [vmem:[%s739_s1 + $0x20] sm:$0xff] (!%p188_p2)   ;;  %v621_v16 = vld [vmem:[%s739_s1 + $0x28] sm:$0xff] (!%p188_p2)   ;;  %vm250_vm1 = vcmask (!%p188_p2), 523264   ;;  %vm384_vm2 = vcmask (!%p188_p2), 256000  }
   0x7   : > { %582 = vmatpush3.bf16.msra.mxu0 (!%p188_p2), %v616_v0  ;;  %v622_v17 = vld [vmem:[%s739_s1 + $0x30] sm:$0xff] (!%p188_p2)   ;;  %v623_v18 = vld [vmem:[%s739_s1 + $0x38] sm:$0xff] (!%p188_p2)   ;;  %v548_v28 = vld [vmem:[%s740_s2] ss:$0 sm:$0xff] (!%p188_p2)  ;;  %vm377_vm3 = vcmask (!%p188_p2), 261120   ;;  %vm480_vm4 = vcmask (!%p188_p2), 254976  }
   0x8   : > { %583 = vmatprep.subr.bf16.mxu0 (!%p188_p2), %v617_v1  ;;  %v557_v0 = vld [vmem:[%s741_s3] ss:$0 sm:$0xff] (!%p188_p2)  ;;  %vm481_vm5 = vsmask.f32 (!%p188_p2), 1280  ;;  %vm477_vm7 = vcmask (!%p188_p2), 257024  }
   0x9   : > { %vm482_vm6 = vmand (!%p188_p2), %vm480_vm4, %vm481_vm5 }
   0xb   : > { %584 = vmatpush3.bf16.msra.mxu0 (!%p188_p2), %v617_v1 }
   0xc   : > { %585 = vmatprep.subr.bf16.mxu0 (!%p188_p2), %v618_v2 }
   0xd   : > { %s745_s19 = smov (!%p215_p3, %s541_s19), 1 }
   0xe   : > { %s601_s24 = smul.u32 12, %s745_s19 }
   0xf   : > { %586 = vmatpush3.bf16.msra.mxu0 %v618_v2  ;;  %v558_v2 = vld [vmem:[%s742_s4] ss:$0 sm:$0xff] }
  0x10   : > { %s219_s29 = scalar_lea.vmem %s738_s0, %s601_s24  ;;  %587 = vmatprep.subr.bf16.mxu0 %v619_v8  ;;  %s224_s27 = scalar_lea.vmem %s743_s5, %s601_s24 }
  0x11   : > { %v568_v3 = vld [vmem:[%s219_s29] sm:$0xff]   ;;  %v228_v4 = vld [vmem:[%s219_s29 + $0x8] sm:$0x3] }
  0x12   : > { %v569_v5 = vunpack.c.l.bf16 %v568_v3  ;;  %v570_v6 = vunpack.c.h.bf16 %v568_v3  ;;  %v231_v7 = vunpack.c.l.bf16 %v228_v4 }
  0x13   : > { %588 = vmatpush3.bf16.msra.mxu0 %v619_v8 }
  0x14   : > { %v236_v9 = vrot.slane %v569_v5, 1  ;;  %v237_v10 = vrot.slane %v570_v6, 1  ;;  %v239_v11 = vrot.slane %v231_v7, 1  ;;  %589 = vmatprep.subr.bf16.mxu0 %v620_v14 }
  0x16   : > { %v238_v12 = vsel %vm235_vm0, %v236_v9, %v237_v10  ;;  %v240_v13 = vsel %vm235_vm0, %v237_v10, %v239_v11 }
  0x17   : > { %v611_v15 = vpack.i.bf16 %v240_v13, %v238_v12  ;;  %590 = vmatpush3.bf16.msra.mxu0 %v620_v14 }
  0x18   : > { %591 = vmatprep.subr.bf16.mxu0 %v621_v16 }
  0x19   : > { %612 = vrot.lane.b32.xlu0 %v611_v15, %s644_s9 }
  0x1b   : > { %592 = vmatpush3.bf16.msra.mxu0 %v621_v16 }
  0x1c   : > { %593 = vmatprep.subr.bf16.mxu0 %v622_v17 }
  0x1d   : > { %245 = vrot.lane.b32.xlu0 %v239_v11, %s644_s9 }
  0x1f   : > { %594 = vmatpush3.bf16.msra.mxu0 %v622_v17 }
  0x20   : > { %595 = vmatprep.subr.bf16.mxu0 %v623_v18 }
  0x23   : > { %596 = vmatpush3.bf16.msra.mxu0 %v623_v18 }
  0x8b   : > { %v613_v19 = vpop.permute.xlu0 %612 }
  0x8c   : > { %v615_v20 = vunpack.i.h.bf16 %v613_v19  ;;  %v614_v21 = vunpack.i.l.bf16 %v613_v19 }
  0x8e   : > { %v251_v22 = vsel %vm250_vm1, %v569_v5, %v614_v21  ;;  %v252_v23 = vsel %vm250_vm1, %v570_v6, %v615_v20 }
  0x8f   : > { %v246_v24 = vpop.permute.xlu0 %245  ;;  %v254_v25 = vpack.c.bf16 %v252_v23, %v251_v22 }
  0x90   : > { %v253_v26 = vsel %vm250_vm1, %v231_v7, %v246_v24 }
  0x91   : > { %v255_v27 = vpack.c.bf16 %v253_v26, %v253_v26  ;;  %597 = vmatprep.mubr.bf16.mxu0 %v254_v25 }
  0x93   : > { %598 = vmatmul.mubr.bf16.vlgmr.msra.gmra.mrb[0].mxu0 %v255_v27 }
 0x166   : > { %v599_v29 = vpop.f32.mrb[0].mxu0 }
 0x167   : > { %v370_v30 = vadd.f32 %v599_v29, %v548_v28  ;;  %v361_v31 = vpop.f32.mrb[1].mxu0 }
 0x168   : > { %v600_v32 = vpop.f32.mrb[2].mxu0  ;;  %v362_v33 = vadd.f32 %v548_v28, %v361_v31 }
 0x169   : > { %v364_v34 = vpop.f32.mrb[3].mxu0  ;;  %v385_v35 = vsel %vm384_vm2, %v370_v30, 0.0 }
 0x16a   : > { %v365_v36 = vadd.f32 %v548_v28, %v364_v34  ;;  %386 = vadd.xlane.f32.xlu1 %v385_v35  ;;  %v378_v38 = vsel %vm377_vm3, %v362_v33, 0.0  ;;  %v483_v34 = vld [vmem:[%s224_s27 + $0x8] sm:$0x3] }
 0x16c   : > { %v381_v37 = vsel %vm377_vm3, %v365_v36, 0.0 }
 0x16d   : > { %382 = vadd.xlane.f32.xlu0 %v381_v37 }
 0x16e   : > { %379 = vadd.xlane.f32.xlu1 %v378_v38 }
 0x1f7   : > { %v387_v39 = vpop.xlane.xlu1 %386 }
 0x1f8   : > { %v391_v40 = vmul.f32 0.03125, %v387_v39 }
 0x1fa   : > { %v394_v41 = vsub.f32 %v370_v30, %v391_v40  ;;  %v383_v42 = vpop.xlane.xlu0 %382 }
 0x1fb   : > { %v390_v43 = vmul.f32 0.03125, %v383_v42  ;;  %v380_v44 = vpop.xlane.xlu1 %379 }
 0x1fc   : > { %v389_v45 = vmul.f32 0.03125, %v380_v44  ;;  %v397_v46 = vmul.f32 %v394_v41, %v394_v41 }
 0x1fd   : > { %v393_v47 = vsub.f32 %v365_v36, %v390_v43 }
 0x1fe   : > { %v392_v48 = vsub.f32 %v362_v33, %v389_v45  ;;  %v404_v49 = vsel %vm384_vm2, %v397_v46, 0.0 }
 0x1ff   : > { %405 = vadd.xlane.f32.xlu1 %v404_v49  ;;  %v396_v52 = vmul.f32 %v393_v47, %v393_v47 }
 0x200   : > { %v395_v50 = vmul.f32 %v392_v48, %v392_v48 }
 0x201   : > { %v401_v53 = vsel %vm377_vm3, %v396_v52, 0.0 }
 0x202   : > { %v398_v51 = vsel %vm377_vm3, %v395_v50, 0.0 }
 0x203   : > { %399 = vadd.xlane.f32.xlu1 %v398_v51 }
 0x207   : > { %402 = vadd.xlane.f32.xlu1 %v401_v53 }
 0x28c   : > { %v406_v54 = vpop.xlane.xlu1 %405 }
 0x28d   : > { %v409_v55 = vmul.f32 0.03125, %v406_v54 }
 0x28f   : > { %v412_v56 = vadd.f32 1e-05, %v409_v55 }
 0x290   : > { %v400_v57 = vpop.xlane.xlu1 %399 }
 0x291   : > { %624 = vrsqrt.f32 %v412_v56  ;;  %v407_v58 = vmul.f32 0.03125, %v400_v57 }
 0x293   : > { %v410_v59 = vadd.f32 1e-05, %v407_v58 }
 0x294   : > { %v403_v60 = vpop.xlane.xlu1 %402 }
 0x295   : > { %626 = vrsqrt.f32 %v410_v59  ;;  %v408_v61 = vmul.f32 0.03125, %v403_v60 }
 0x297   : > { %v411_v62 = vadd.f32 1e-05, %v408_v61 }
 0x299   : > { %628 = vrsqrt.f32 %v411_v62 }
 0x29b   : > { %v625_v63 = vpop.eup %624 }
 0x29c   : > { %v418_v1 = vmul.f32 %v625_v63, %v394_v41 }
 0x29e   : > { %v427_v3 = vmul.f32 %v557_v0, %v418_v1 }
 0x29f   : > { %v627_v4 = vpop.eup %626 }
 0x2a0   : > { %v436_v5 = vadd.f32 %v558_v2, %v427_v3  ;;  %v416_v6 = vmul.f32 %v627_v4, %v392_v48 }
 0x2a2   : > { %v439_v7 = vmul.f32 %v436_v5, %v436_v5  ;;  %v425_v8 = vmul.f32 %v557_v0, %v416_v6 }
 0x2a3   : > { %v629_v9 = vpop.eup %628 }
 0x2a4   : > { %v442_v10 = vmul.f32 %v439_v7, %v436_v5  ;;  %v434_v11 = vadd.f32 %v558_v2, %v425_v8  ;;  %v417_v12 = vmul.f32 %v629_v9, %v393_v47 }
 0x2a6   : > { %v445_v13 = vmul.f32 0.044715, %v442_v10  ;;  %v437_v14 = vmul.f32 %v434_v11, %v434_v11  ;;  %v426_v15 = vmul.f32 %v557_v0, %v417_v12 }
 0x2a8   : > { %v448_v16 = vadd.f32 %v445_v13, %v436_v5  ;;  %v440_v17 = vmul.f32 %v437_v14, %v434_v11  ;;  %v435_v18 = vadd.f32 %v558_v2, %v426_v15 }
 0x2aa   : > { %v451_v19 = vmul.f32 0.7978846, %v448_v16  ;;  %v443_v20 = vmul.f32 0.044715, %v440_v17  ;;  %v438_v21 = vmul.f32 %v435_v18, %v435_v18 }
 0x2ac   : > { %630 = vtanh.f32 %v451_v19  ;;  %v446_v22 = vadd.f32 %v443_v20, %v434_v11  ;;  %v441_v23 = vmul.f32 %v438_v21, %v435_v18 }
 0x2ae   : > { %v449_v24 = vmul.f32 0.7978846, %v446_v22  ;;  %v444_v25 = vmul.f32 0.044715, %v441_v23 }
 0x2b0   : > { %632 = vtanh.f32 %v449_v24  ;;  %v447_v26 = vadd.f32 %v444_v25, %v435_v18 }
 0x2b2   : > { %v450_v27 = vmul.f32 0.7978846, %v447_v26 }
 0x2b4   : > { %634 = vtanh.f32 %v450_v27 }
 0x2b6   : > { %v631_v28 = vpop.eup %630 }
 0x2b7   : > { %v457_v29 = vadd.f32 1.0, %v631_v28 }
 0x2b9   : > { %v460_v30 = vmul.f32 0.5, %v457_v29 }
 0x2ba   : > { %v633_v31 = vpop.eup %632 }
 0x2bb   : > { %v463_v32 = vmul.f32 %v460_v30, %v436_v5  ;;  %v455_v33 = vadd.f32 1.0, %v633_v31 }
 0x2bd   : > { %v566_v35 = vpack.c.bf16 %v463_v32, %v463_v32  ;;  %v458_v36 = vmul.f32 0.5, %v455_v33 }
 0x2be   : > { %v635_v37 = vpop.eup %634 }
 0x2bf   : > { %v484_v38 = vsel %vm482_vm6, %v566_v35, %v483_v34  ;;  %v461_v39 = vmul.f32 %v458_v36, %v434_v11  ;;  %v456_v40 = vadd.f32 1.0, %v635_v37 }
 0x2c0   : > { %485 = vst [vmem:[%s224_s27 + $0x8] sm:$0x3] %v484_v38 }
 0x2c1   : > { %v564_v41 = vpack.c.bf16 %v461_v39, %v461_v39  ;;  %v459_v42 = vmul.f32 0.5, %v456_v40 }
 0x2c3   : > { %478 = vst.msk [vmem:[%s224_s27] sm:$0xf] %vm477_vm7, %v564_v41  ;;  %v462_v43 = vmul.f32 %v459_v42, %v435_v18 }
 0x2c5   : > { %v565_v44 = vpack.c.bf16 %v462_v43, %v462_v43 }
 0x2c7   : > { %479 = vst.msk [vmem:[%s224_s27 + $0x4] sm:$0xf] %vm477_vm7, %v565_v44 }
 0x2c8 PF: > { %s15_s18 = sadd.s32 1, %s642_s18  }
 0x2c9   : > { %p12_p4 = scmp.ge.s32.totalorder %s15_s18, 4  }
 0x2cb   :  { %14 = sbr.rel (!%p12_p4) target bundleno = 1 (0x1), region = 70 }

// kernel: wav2vec2_encoder_forward.5
= control target key start
LH: loop header
LB: loop body
LE: loop exit
PB: predicated region body
PF: predicated region fallthrough
CT: control target
= control target key end

     0   :  { %s1076_s18 = smov 0   ;;  %s1440_s0 = inlined_call_operand.vmem [shape: f32[2,80,5], index: 0, kind: input, shape index: {}]   ;;  %s1441_s1 = inlined_call_operand.vmem [shape: bf16[10,32], index: 1, kind: input, shape index: {}]   ;;  %s1442_s2 = inlined_call_operand.vmem [shape: f32[1,32], index: 2, kind: input, shape index: {}]   ;;  %s1443_s3 = inlined_call_operand.vmem [shape: f32[1,32], index: 3, kind: input, shape index: {}]   ;;  %s1444_s4 = inlined_call_operand.vmem [shape: f32[1,32], index: 4, kind: input, shape index: {}]   ;;  %s1445_s5 = inlined_call_operand.vmem [shape: bf16[2,79,32], index: 5, kind: output, shape index: {}]  }
   0x1 LB: > { %s882_s19 = sadd.s32 4294967295, %s1041_s18   ;;  %p886_p0 = scmp.ge.s32.totalorder %s1041_s18, 1  ;;  %s1041_s18 = sphi %s1076_s18, %s15_s18  }
   0x2   : > { %p187_p1 = scmp.lt.s32.totalorder %s1041_s18, 3 }
   0x4   : > { %p188_p2 = pnand %p886_p0, %p187_p1 }
   0x5   : > { %p215_p3 = scmp.lt.s32.totalorder (!%p188_p2), %s882_s19, 1  ;;  %vm236_vm0 = vcmask (!%p188_p2), 39936   ;;  %vm342_vm1 = vcmask (!%p188_p2), 1046528   ;;  %vm437_vm2 = vcmask (!%p188_p2), 1044480   ;;  %s1044_s28 = smov (!%p188_p2), 5   ;;  %vm1045_vm3 = vmmov (!%p188_p2), 0  }
   0x6   : > { %191 = sbr.rel (%p188_p2) target bundleno = 976 (0x3d0), region = 40  ;;  %vm421_vm4 = vcmask (!%p188_p2), 80896   ;;  %vm516_vm5 = vcmask (!%p188_p2), 261120   ;;  %vm544_vm6 = vcmask (!%p188_p2), 260096   ;;  %vm811_vm7 = vcmask (!%p188_p2), 257024  }
   0x7   : > { %vm822_vm8 = vsmask.f32 (!%p188_p2), 3328 }
   0x8   : > { %vm823_vm9 = vmand (!%p188_p2), %vm811_vm7, %vm822_vm8 }
   0xd   : > { %s1447_s19 = smov (!%p215_p3, %s882_s19), 1 }
   0xe   : > { %s950_s20 = smul.u32 80, %s1447_s19 }
   0xf   : > { %s951_s10 = smul.u32 40, %s1447_s19 }
  0x10   : > { %s1090_s23 = scalar_lea.vmem %s1440_s0, %s950_s20 }
  0x11   : > { %v1093_v0 = vld [vmem:[%s1090_s23] sm:$0xff]  ;;  %v1096_v1 = vld [vmem:[%s1090_s23 + $0x8] sm:$0xff]  ;;  %v1099_v2 = vld [vmem:[%s1090_s23 + $0x10] sm:$0xff]  ;;  %s1399_s13 = scalar_lea.vmem %s1445_s5, %s951_s10 }
  0x12   : > { %v1102_v3 = vld [vmem:[%s1090_s23 + $0x18] sm:$0xff]  ;;  %v237_v4 = vsel %vm236_vm0, %v1093_v0, 0.0  ;;  %v238_v5 = vsel %vm236_vm0, %v1096_v1, 0.0  ;;  %v240_v6 = vsel %vm236_vm0, %v1099_v2, 0.0  ;;  %v1111_v7 = vld [vmem:[%s1090_s23 + $0x20] sm:$0xff]  ;;  %v266_v9 = vmul.f32 %v1093_v0, %v1093_v0  ;;  %v1120_v12 = vld [vmem:[%s1090_s23 + $0x28] sm:$0xff] }
  0x13   : > { %v239_v8 = vadd.f32 %v238_v5, %v237_v4  ;;  %v242_v10 = vsel %vm236_vm0, %v1102_v3, 0.0  ;;  %v267_v11 = vmul.f32 %v1096_v1, %v1096_v1  ;;  %v268_v14 = vmul.f32 %v1099_v2, %v1099_v2  ;;  %v1129_v17 = vld [vmem:[%s1090_s23 + $0x30] sm:$0xff]  ;;  %v1139_v24 = vld [vmem:[%s1090_s23 + $0x38] sm:$0xff]  ;;  %v1147_v30 = vld [vmem:[%s1090_s23 + $0x40] sm:$0xff] }
  0x14   : > { %v244_v15 = vsel %vm236_vm0, %v1111_v7, 0.0  ;;  %v269_v16 = vmul.f32 %v1102_v3, %v1102_v3  ;;  %v276_v19 = vsel %vm236_vm0, %v266_v9, 0.0  ;;  %v246_v20 = vsel %vm236_vm0, %v1120_v12, 0.0  ;;  %v1155_v36 = vld [vmem:[%s1090_s23 + $0x48] sm:$0xff] }
  0x15   : > { %v241_v13 = vadd.f32 %v240_v6, %v239_v8  ;;  %v270_v21 = vmul.f32 %v1111_v7, %v1111_v7  ;;  %v277_v22 = vsel %vm236_vm0, %v267_v11, 0.0  ;;  %v279_v23 = vsel %vm236_vm0, %v268_v14, 0.0 }
  0x16   : > { %v278_v26 = vadd.f32 %v277_v22, %v276_v19  ;;  %v248_v27 = vsel %vm236_vm0, %v1129_v17, 0.0  ;;  %v271_v28 = vmul.f32 %v1120_v12, %v1120_v12  ;;  %v281_v29 = vsel %vm236_vm0, %v269_v16, 0.0 }
  0x17   : > { %v243_v18 = vadd.f32 %v242_v10, %v241_v13  ;;  %v250_v33 = vsel %vm236_vm0, %v1139_v24, 0.0  ;;  %v272_v34 = vmul.f32 %v1129_v17, %v1129_v17  ;;  %v283_v35 = vsel %vm236_vm0, %v270_v21, 0.0 }
  0x18   : > { %v280_v32 = vadd.f32 %v279_v23, %v278_v26  ;;  %v252_v39 = vsel %vm236_vm0, %v1147_v30, 0.0  ;;  %v273_v40 = vmul.f32 %v1139_v24, %v1139_v24  ;;  %v285_v41 = vsel %vm236_vm0, %v271_v28, 0.0 }
  0x19   : > { %v245_v25 = vadd.f32 %v244_v15, %v243_v18  ;;  %v254_v44 = vsel %vm236_vm0, %v1155_v36, 0.0  ;;  %v274_v45 = vmul.f32 %v1147_v30, %v1147_v30  ;;  %v287_v46 = vsel %vm236_vm0, %v272_v34, 0.0 }
  0x1a   : > { %v282_v38 = vadd.f32 %v281_v29, %v280_v32  ;;  %v275_v49 = vmul.f32 %v1155_v36, %v1155_v36  ;;  %v289_v50 = vsel %vm236_vm0, %v273_v40, 0.0 }
  0x1b   : > { %v247_v31 = vadd.f32 %v246_v20, %v245_v25  ;;  %v291_v53 = vsel %vm236_vm0, %v274_v45, 0.0 }
  0x1c   : > { %v284_v43 = vadd.f32 %v283_v35, %v282_v38  ;;  %v293_v55 = vsel %vm236_vm0, %v275_v49, 0.0 }
  0x1d   : > { %v249_v37 = vadd.f32 %v248_v27, %v247_v31  ;;  %v992_v27 = vld [vmem:[%s1441_s1] sm:$0x1f]  }
  0x1e   : > { %v286_v48 = vadd.f32 %v285_v41, %v284_v43 }
  0x1f   : > { %v251_v42 = vadd.f32 %v250_v33, %v249_v37  ;;  %v1043_v33 = vmov 0.0  }
  0x20   : > { %v288_v52 = vadd.f32 %v287_v46, %v286_v48  ;;  %926 = vmatprep.subr.bf16.mxu0 %v1043_v33  ;;  %948 = vmatprep.subr.bf16.mxu1 %v1043_v33 }
  0x21   : > { %v253_v47 = vadd.f32 %v252_v39, %v251_v42  ;;  %928 = vmatprep.mubr.msk.bf16.mxu0 %vm1045_vm3, %v1043_v33  ;;  %940 = vmatprep.mubr.msk.bf16.mxu1 %vm1045_vm3, %v1043_v33 }
  0x22   : > { %v290_v54 = vadd.f32 %v289_v50, %v288_v52 }
  0x23   : > { %v255_v51 = vadd.f32 %v254_v44, %v253_v47 }
  0x24   : > { %v292_v56 = vadd.f32 %v291_v53, %v290_v54 }
  0x25   : > { %256 = vadd.xlane.f32.xlu0 %v255_v51 }
  0x26   : > { %v294_v57 = vadd.f32 %v293_v55, %v292_v56 }
  0x29   : > { %295 = vadd.xlane.f32.xlu0 %v294_v57 }
  0xb2   : > { %v257_v58 = vpop.xlane.xlu0 %256 }
  0xb3   : > { %v258_v59 = vrot.slane %v257_v58, 4 }
  0xb5   : > { %v259_v60 = vadd.f32 %v258_v59, %v257_v58 }
  0xb6   : > { %v296_v62 = vpop.xlane.xlu0 %295 }
  0xb7   : > { %v260_v61 = vrot.slane %v259_v60, 2  ;;  %v297_v63 = vrot.slane %v296_v62, 4 }
  0xb9   : > { %v261_v4 = vadd.f32 %v260_v61, %v259_v60  ;;  %v298_v5 = vadd.f32 %v297_v63, %v296_v62 }
  0xbb   : > { %v262_v6 = vrot.slane %v261_v4, 1  ;;  %v299_v8 = vrot.slane %v298_v5, 2 }
  0xbd   : > { %v263_v9 = vadd.f32 %v262_v6, %v261_v4  ;;  %v300_v10 = vadd.f32 %v299_v8, %v298_v5 }
  0xbf   : > { %952 = vpush %v263_v9  ;;  %v301_v11 = vrot.slane %v300_v10, 1 }
  0xc1   : > { %v302_v13 = vadd.f32 %v301_v11, %v300_v10 }
  0xc3   : > { %954 = vpush %v302_v13 }
  0xf0   : > { %s953_s24 = spop %952 }
  0xf1   : > { %v265_v14 = vstv %s953_s24 }
  0xf2   : > { %v306_v15 = vmul.f32 0.0025, %v265_v14 }
  0xf4   : > { %s955_s25 = spop %954  ;;  %v308_v19 = vmul.f32 %v306_v15, %v306_v15  ;;  %v312_v22 = vsub.f32 %v1099_v2, %v306_v15  ;;  %v313_v23 = vsub.f32 %v1102_v3, %v306_v15  ;;  %v314_v25 = vsub.f32 %v1111_v7, %v306_v15 }
  0xf5   : > { %v304_v16 = vstv %s955_s25  ;;  %v310_v26 = vsub.f32 %v1093_v0, %v306_v15  ;;  %v311_v28 = vsub.f32 %v1096_v1, %v306_v15  ;;  %v316_v29 = vsub.f32 %v1129_v17, %v306_v15 }
  0xf6   : > { %v307_v18 = vmul.f32 0.0025, %v304_v16  ;;  %v317_v32 = vsub.f32 %v1139_v24, %v306_v15  ;;  %v318_v2 = vsub.f32 %v1147_v30, %v306_v15  ;;  %v319_v3 = vsub.f32 %v1155_v36, %v306_v15 }
  0xf7   : > { %v439_v0 = vsel %vm437_vm2, %v992_v27, 0  ;;  %v315_v48 = vsub.f32 %v1120_v12, %v306_v15 }
  0xf8   : > { %v309_v20 = vsub.f32 %v307_v18, %v308_v19  ;;  %927 = vmatpush3.bf16.msra.mxu0 %v439_v0  ;;  %949 = vmatpush3.bf16.msra.mxu1 %v439_v0 }
  0xfa   : > { %v320_v21 = vadd.f32 1e-07, %v309_v20 }
  0xfc   : > { %993 = vrsqrt.f32 %v320_v21 }
 0x106   : > { %v994_v31 = vpop.eup %993 }
 0x107   : > { %v1186_v7 = vmul.f32 %v994_v31, %v312_v22  ;;  %v1188_v34 = vmul.f32 %v994_v31, %v313_v23  ;;  %v1190_v1 = vmul.f32 %v994_v31, %v314_v25  ;;  %v322_v17 = vmul.f32 %v994_v31, %v310_v26 }
 0x108   : > { %v323_v35 = vmul.f32 %v994_v31, %v311_v28  ;;  %v328_v24 = vmul.f32 %v994_v31, %v316_v29  ;;  %v329_v37 = vmul.f32 %v994_v31, %v317_v32  ;;  %v1192_v30 = vmul.f32 %v994_v31, %v318_v2 }
 0x109   : > { %v346_v36 = vrot.slane %v1186_v7, 1  ;;  %v348_v38 = vrot.slane %v1188_v34, 1  ;;  %v350_v39 = vrot.slane %v1190_v1, 1  ;;  %v343_v40 = vrot.slane %v322_v17, 1 }
 0x10a   : > { %v344_v41 = vrot.slane %v323_v35, 1  ;;  %v354_v42 = vrot.slane %v328_v24, 1  ;;  %v356_v43 = vrot.slane %v329_v37, 1  ;;  %v358_v44 = vrot.slane %v1192_v30, 1 }
 0x10b   : > { %v349_v45 = vsel %vm342_vm1, %v346_v36, %v348_v38  ;;  %v351_v46 = vsel %vm342_vm1, %v348_v38, %v350_v39  ;;  %v331_v47 = vmul.f32 %v994_v31, %v319_v3  ;;  %v327_v53 = vmul.f32 %v994_v31, %v315_v48 }
 0x10c   : > { %v977_v49 = vpack.i.bf16 %v351_v46, %v349_v45  ;;  %v345_v50 = vsel %vm342_vm1, %v343_v40, %v344_v41  ;;  %v347_v51 = vsel %vm342_vm1, %v344_v41, %v346_v36  ;;  %v357_v54 = vsel %vm342_vm1, %v354_v42, %v356_v43 }
 0x10d   : > { %v967_v52 = vpack.i.bf16 %v347_v51, %v345_v50  ;;  %v359_v55 = vsel %vm342_vm1, %v356_v43, %v358_v44  ;;  %v360_v56 = vrot.slane %v331_v47, 1  ;;  %v352_v58 = vrot.slane %v327_v53, 1 }
 0x10e   : > { %978 = vrot.lane.b32.xlu0 %v977_v49, %s1044_s28  ;;  %v972_v12 = vpack.i.bf16 %v359_v55, %v357_v54 }
 0x10f   : > { %968 = vrot.lane.b32.xlu1 %v967_v52, %s1044_s28  ;;  %v361_v57 = vsel %vm342_vm1, %v358_v44, %v360_v56  ;;  %v353_v60 = vsel %vm342_vm1, %v350_v39, %v352_v58  ;;  %v355_v61 = vsel %vm342_vm1, %v352_v58, %v354_v42 }
 0x110   : > { %v982_v59 = vpack.i.bf16 %v360_v56, %v361_v57  ;;  %v987_v62 = vpack.i.bf16 %v355_v61, %v353_v60 }
 0x113   : > { %973 = vrot.lane.b32.xlu1 %v972_v12, %s1044_s28 }
 0x117   : > { %983 = vrot.lane.b32.xlu1 %v982_v59, %s1044_s28 }
 0x11b   : > { %988 = vrot.lane.b32.xlu1 %v987_v62, %s1044_s28 }
 0x180   : > { %v979_v6 = vpop.permute.xlu0 %978 }
 0x181   : > { %v969_v63 = vpop.permute.xlu1 %968  ;;  %v981_v13 = vunpack.i.h.bf16 %v979_v6  ;;  %v980_v14 = vunpack.i.l.bf16 %v979_v6 }
 0x182   : > { %v971_v4 = vunpack.i.h.bf16 %v969_v63  ;;  %v970_v5 = vunpack.i.l.bf16 %v969_v63 }
 0x183   : > { %v395_v22 = vsel %vm236_vm0, %v1188_v34, %v981_v13  ;;  %v394_v23 = vsel %vm236_vm0, %v1186_v7, %v980_v14 }
 0x184   : > { %v393_v8 = vsel %vm236_vm0, %v323_v35, %v971_v4  ;;  %v392_v9 = vsel %vm236_vm0, %v322_v17, %v970_v5  ;;  %v403_v27 = vpack.c.bf16 %v395_v22, %v394_v23  ;;  %v889_v17 = vld [vmem:[%s1442_s2] ss:$0 sm:$0xff] }
 0x185   : > { %v402_v10 = vpack.c.bf16 %v393_v8, %v392_v9  ;;  %v974_v11 = vpop.permute.xlu1 %973 }
 0x186   : > { %v976_v15 = vunpack.i.h.bf16 %v974_v11  ;;  %v975_v16 = vunpack.i.l.bf16 %v974_v11 }
 0x187   : > { %929 = vmatmul.mubr.msk.bf16.vlgmr.msra.gmra.mrb[0].mxu0 %vm421_vm4, %v402_v10 }
 0x188   : > { %v399_v18 = vsel %vm236_vm0, %v329_v37, %v976_v15  ;;  %v398_v19 = vsel %vm236_vm0, %v328_v24, %v975_v16  ;;  %932 = vmatprep.mubr.msk.bf16.mxu0 %vm1045_vm3, %v1043_v33 }
 0x189   : > { %v405_v20 = vpack.c.bf16 %v399_v18, %v398_v19  ;;  %v984_v21 = vpop.permute.xlu1 %983 }
 0x18a   : > { %v986_v25 = vunpack.i.h.bf16 %v984_v21  ;;  %v985_v26 = vunpack.i.l.bf16 %v984_v21 }
 0x18b   : > { %941 = vmatmul.mubr.msk.bf16.vlgmr.msra.gmra.mrb[0].mxu1 %vm421_vm4, %v405_v20 }
 0x18c   : > { %944 = vmatprep.mubr.msk.bf16.mxu1 %vm1045_vm3, %v1043_v33  ;;  %v401_v29 = vsel %vm236_vm0, %v331_v47, %v986_v25  ;;  %v400_v31 = vsel %vm236_vm0, %v1192_v30, %v985_v26 }
 0x18d   : > { %v989_v28 = vpop.permute.xlu1 %988  ;;  %v406_v3 = vpack.c.bf16 %v401_v29, %v400_v31 }
 0x18e   : > { %v991_v32 = vunpack.i.h.bf16 %v989_v28  ;;  %v990_v2 = vunpack.i.l.bf16 %v989_v28 }
 0x18f   : > { %933 = vmatmul.mubr.msk.bf16.gmra.mrb[4].mxu0 %vm421_vm4, %v403_v27 }
 0x190   : > { %936 = vmatprep.mubr.msk.bf16.mxu0 %vm1045_vm3, %v1043_v33  ;;  %v397_v0 = vsel %vm236_vm0, %v327_v53, %v991_v32  ;;  %v396_v7 = vsel %vm236_vm0, %v1190_v1, %v990_v2 }
 0x191   : > { %v404_v34 = vpack.c.bf16 %v397_v0, %v396_v7 }
 0x193   : > { %945 = vmatmul.mubr.msk.bf16.gmra.mrb[4].mxu1 %vm421_vm4, %v406_v3 }
 0x197   : > { %937 = vmatmul.mubr.msk.bf16.gmra.mrb[8].mxu0 %vm421_vm4, %v404_v34 }
 0x25a   : > { %v475_v35 = vpop.f32.mrb[0].mxu0 }
 0x25b   : > { %v476_v24 = vadd.f32 %v889_v17, %v475_v35  ;;  %v930_v37 = vpop.f32.mrb[1].mxu0 }
 0x25c   : > { %v478_v33 = vpop.f32.mrb[2].mxu0 }
 0x25d   : > { %v479_v30 = vadd.f32 %v889_v17, %v478_v33  ;;  %v931_v36 = vpop.f32.mrb[3].mxu0  ;;  %v517_v38 = vsel %vm516_vm5, %v476_v24, 0.0 }
 0x25e   : > { %v499_v39 = vpop.f32.mrb[0].mxu1  ;;  %518 = vadd.xlane.f32.xlu0 %v517_v38 }
 0x25f   : > { %v500_v1 = vadd.f32 %v889_v17, %v499_v39  ;;  %v942_v40 = vpop.f32.mrb[1].mxu1  ;;  %v520_v41 = vsel %vm516_vm5, %v479_v30, 0.0 }
 0x260   : > { %v502_v42 = vpop.f32.mrb[2].mxu1  ;;  %521 = vadd.xlane.f32.xlu1 %v520_v41 }
 0x261   : > { %v943_v43 = vpop.f32.mrb[3].mxu1  ;;  %v535_v44 = vsel %vm516_vm5, %v500_v1, 0.0  ;;  %v503_v8 = vadd.f32 %v889_v17, %v502_v42 }
 0x262   : > { %536 = vadd.xlane.f32.xlu0 %v535_v44  ;;  %v483_v45 = vpop.f32.mrb[4].mxu0 }
 0x263   : > { %v484_v46 = vadd.f32 %v889_v17, %v483_v45  ;;  %v934_v47 = vpop.f32.mrb[5].mxu0  ;;  %v538_v10 = vsel %vm516_vm5, %v503_v8, 0.0 }
 0x264   : > { %v486_v48 = vpop.f32.mrb[6].mxu0 }
 0x265   : > { %v935_v49 = vpop.f32.mrb[7].mxu0  ;;  %v523_v50 = vsel %vm516_vm5, %v484_v46, 0.0  ;;  %v487_v12 = vadd.f32 %v889_v17, %v486_v48 }
 0x266   : > { %v507_v51 = vpop.f32.mrb[4].mxu1  ;;  %524 = vadd.xlane.f32.xlu1 %v523_v50 }
 0x267   : > { %v946_v52 = vpop.f32.mrb[5].mxu1  ;;  %v508_v61 = vadd.f32 %v889_v17, %v507_v51  ;;  %v526_v5 = vsel %vm516_vm5, %v487_v12, 0.0 }
 0x268   : > { %v510_v53 = vpop.f32.mrb[6].mxu1 }
 0x269   : > { %v511_v54 = vadd.f32 %v889_v17, %v510_v53  ;;  %v947_v55 = vpop.f32.mrb[7].mxu1  ;;  %v541_v6 = vsel %vm516_vm5, %v508_v61, 0.0 }
 0x26a   : > { %v491_v56 = vpop.f32.mrb[8].mxu0 }
 0x26b   : > { %v492_v57 = vadd.f32 %v889_v17, %v491_v56  ;;  %v938_v58 = vpop.f32.mrb[9].mxu0  ;;  %v545_v59 = vsel %vm544_vm6, %v511_v54, 0.0 }
 0x26c   : > { %546 = vadd.xlane.f32.xlu1 %v545_v59  ;;  %v494_v60 = vpop.f32.mrb[10].mxu0 }
 0x26d   : > { %v939_v62 = vpop.f32.mrb[11].mxu0  ;;  %v529_v63 = vsel %vm516_vm5, %v492_v57, 0.0  ;;  %v495_v4 = vadd.f32 %v889_v17, %v494_v60 }
 0x26e   : > { %530 = vadd.xlane.f32.xlu0 %v529_v63 }
 0x26f   : > { %v532_v9 = vsel %vm516_vm5, %v495_v4, 0.0 }
 0x270   : > { %527 = vadd.xlane.f32.xlu1 %v526_v5 }
 0x272   : > { %542 = vadd.xlane.f32.xlu0 %v541_v6 }
 0x274   : > { %533 = vadd.xlane.f32.xlu1 %v532_v9 }
 0x278   : > { %539 = vadd.xlane.f32.xlu1 %v538_v10 }
 0x2eb   : > { %v519_v11 = vpop.xlane.xlu0 %518 }
 0x2ec   : > { %v549_v13 = vmul.f32 0.03125, %v519_v11  ;;  %v1303_v11 = vld [vmem:[%s1443_s3] ss:$0 sm:$0xff] }
 0x2ed   : > { %v522_v14 = vpop.xlane.xlu1 %521 }
 0x2ee   : > { %v1250_v15 = vsub.f32 %v476_v24, %v549_v13  ;;  %v550_v16 = vmul.f32 0.03125, %v522_v14 }
 0x2ef   : > { %v537_v18 = vpop.xlane.xlu0 %536 }
 0x2f0   : > { %v1252_v19 = vsub.f32 %v479_v30, %v550_v16  ;;  %v555_v20 = vmul.f32 0.03125, %v537_v18  ;;  %v569_v21 = vmul.f32 %v1250_v15, %v1250_v15 }
 0x2f2   : > { %v1256_v22 = vsub.f32 %v500_v1, %v555_v20  ;;  %v579_v23 = vsel %vm516_vm5, %v569_v21, 0.0  ;;  %v570_v25 = vmul.f32 %v1252_v19, %v1252_v19  ;;  %v1309_v20 = vld [vmem:[%s1444_s4] ss:$0 sm:$0xff] }
 0x2f3   : > { %v525_v26 = vpop.xlane.xlu1 %524  ;;  %580 = vadd.xlane.f32.xlu0 %v579_v23 }
 0x2f4   : > { %v551_v27 = vmul.f32 0.03125, %v525_v26  ;;  %v582_v28 = vsel %vm516_vm5, %v570_v25, 0.0  ;;  %v575_v29 = vmul.f32 %v1256_v22, %v1256_v22 }
 0x2f5   : > { %583 = vadd.xlane.f32.xlu1 %v582_v28 }
 0x2f6   : > { %v1264_v31 = vsub.f32 %v484_v46, %v551_v27  ;;  %v597_v32 = vsel %vm516_vm5, %v575_v29, 0.0 }
 0x2f7   : > { %598 = vadd.xlane.f32.xlu0 %v597_v32 }
 0x2f8   : > { %v571_v2 = vmul.f32 %v1264_v31, %v1264_v31 }
 0x2f9   : > { %v547_v3 = vpop.xlane.xlu1 %546 }
 0x2fa   : > { %v558_v0 = vmul.f32 0.03125, %v547_v3  ;;  %v585_v7 = vsel %vm516_vm5, %v571_v2, 0.0 }
 0x2fb   : > { %586 = vadd.xlane.f32.xlu0 %v585_v7  ;;  %v531_v34 = vpop.xlane.xlu0 %530 }
 0x2fc   : > { %v1270_v17 = vsub.f32 %v511_v54, %v558_v0  ;;  %v553_v35 = vmul.f32 0.03125, %v531_v34 }
 0x2fd   : > { %v528_v24 = vpop.xlane.xlu1 %527 }
 0x2fe   : > { %v1272_v37 = vsub.f32 %v492_v57, %v553_v35  ;;  %v552_v33 = vmul.f32 0.03125, %v528_v24  ;;  %v578_v30 = vmul.f32 %v1270_v17, %v1270_v17 }
 0x2ff   : > { %v543_v36 = vpop.xlane.xlu0 %542 }
 0x300   : > { %v1276_v38 = vsub.f32 %v487_v12, %v552_v33  ;;  %v557_v39 = vmul.f32 0.03125, %v543_v36  ;;  %v606_v1 = vsel %vm544_vm6, %v578_v30, 0.0  ;;  %v573_v40 = vmul.f32 %v1272_v37, %v1272_v37 }
 0x301   : > { %607 = vadd.xlane.f32.xlu1 %v606_v1  ;;  %v534_v41 = vpop.xlane.xlu1 %533 }
 0x302   : > { %v1281_v42 = vsub.f32 %v508_v61, %v557_v39  ;;  %v554_v43 = vmul.f32 0.03125, %v534_v41  ;;  %v591_v44 = vsel %vm516_vm5, %v573_v40, 0.0  ;;  %v572_v45 = vmul.f32 %v1276_v38, %v1276_v38 }
 0x303   : > { %592 = vadd.xlane.f32.xlu0 %v591_v44 }
 0x304   : > { %v1286_v46 = vsub.f32 %v495_v4, %v554_v43  ;;  %v588_v47 = vsel %vm516_vm5, %v572_v45, 0.0  ;;  %v577_v48 = vmul.f32 %v1281_v42, %v1281_v42 }
 0x305   : > { %589 = vadd.xlane.f32.xlu1 %v588_v47  ;;  %v540_v49 = vpop.xlane.xlu1 %539 }
 0x306   : > { %v556_v50 = vmul.f32 0.03125, %v540_v49  ;;  %v603_v51 = vsel %vm516_vm5, %v577_v48, 0.0  ;;  %v574_v52 = vmul.f32 %v1286_v46, %v1286_v46 }
 0x307   : > { %604 = vadd.xlane.f32.xlu0 %v603_v51 }
 0x308   : > { %v1294_v53 = vsub.f32 %v503_v8, %v556_v50  ;;  %v594_v54 = vsel %vm516_vm5, %v574_v52, 0.0 }
 0x309   : > { %595 = vadd.xlane.f32.xlu1 %v594_v54 }
 0x30a   : > { %v576_v55 = vmul.f32 %v1294_v53, %v1294_v53 }
 0x30c   : > { %v600_v56 = vsel %vm516_vm5, %v576_v55, 0.0 }
 0x30d   : > { %601 = vadd.xlane.f32.xlu1 %v600_v56 }
 0x380   : > { %v581_v12 = vpop.xlane.xlu0 %580 }
 0x381   : > { %v609_v57 = vmul.f32 0.03125, %v581_v12 }
 0x382   : > { %v584_v58 = vpop.xlane.xlu1 %583 }
 0x383   : > { %v619_v59 = vadd.f32 1e-05, %v609_v57  ;;  %v610_v60 = vmul.f32 0.03125, %v584_v58 }
 0x384   : > { %v599_v61 = vpop.xlane.xlu0 %598 }
 0x385   : > { %995 = vrsqrt.f32 %v619_v59  ;;  %v620_v62 = vadd.f32 1e-05, %v610_v60  ;;  %v615_v63 = vmul.f32 0.03125, %v599_v61 }
 0x387   : > { %997 = vrsqrt.f32 %v620_v62  ;;  %v625_v4 = vadd.f32 1e-05, %v615_v63 }
 0x388   : > { %v587_v5 = vpop.xlane.xlu0 %586 }
 0x389   : > { %999 = vrsqrt.f32 %v625_v4  ;;  %v611_v6 = vmul.f32 0.03125, %v587_v5 }
 0x38b   : > { %v621_v8 = vadd.f32 1e-05, %v611_v6 }
 0x38d   : > { %1001 = vrsqrt.f32 %v621_v8 }
 0x38e   : > { %v608_v9 = vpop.xlane.xlu1 %607 }
 0x38f   : > { %v996_v10 = vpop.eup %995  ;;  %v618_v13 = vmul.f32 0.03125, %v608_v9 }
 0x390   : > { %v639_v14 = vmul.f32 %v996_v10, %v1250_v15  ;;  %v593_v16 = vpop.xlane.xlu0 %592 }
 0x391   : > { %v998_v18 = vpop.eup %997  ;;  %v628_v21 = vadd.f32 1e-05, %v618_v13  ;;  %v613_v23 = vmul.f32 0.03125, %v593_v16 }
 0x392   : > { %v655_v25 = vmul.f32 %v1303_v11, %v639_v14  ;;  %v640_v26 = vmul.f32 %v998_v18, %v1252_v19  ;;  %v590_v27 = vpop.xlane.xlu1 %589 }
 0x393   : > { %v1000_v28 = vpop.eup %999  ;;  %1003 = vrsqrt.f32 %v628_v21  ;;  %v623_v29 = vadd.f32 1e-05, %v613_v23  ;;  %v612_v32 = vmul.f32 0.03125, %v590_v27 }
 0x394   : > { %v1314_v15 = vadd.f32 %v1309_v20, %v655_v25  ;;  %v656_v2 = vmul.f32 %v1303_v11, %v640_v26  ;;  %v645_v3 = vmul.f32 %v1000_v28, %v1256_v22  ;;  %v605_v0 = vpop.xlane.xlu0 %604 }
 0x395   : > { %1005 = vrsqrt.f32 %v623_v29  ;;  %v622_v7 = vadd.f32 1e-05, %v612_v32  ;;  %v617_v34 = vmul.f32 0.03125, %v605_v0 }
 0x396   : > { %v681_v35 = vmul.f32 %v1314_v15, %v1314_v15  ;;  %v1321_v19 = vadd.f32 %v1309_v20, %v656_v2  ;;  %v661_v24 = vmul.f32 %v1303_v11, %v645_v3  ;;  %v596_v33 = vpop.xlane.xlu1 %595 }
 0x397   : > { %v1002_v30 = vpop.eup %1001  ;;  %1007 = vrsqrt.f32 %v622_v7  ;;  %v627_v36 = vadd.f32 1e-05, %v617_v34  ;;  %v614_v39 = vmul.f32 0.03125, %v596_v33 }
 0x398   : > { %v691_v1 = vmul.f32 %v681_v35, %v1314_v15  ;;  %v682_v22 = vmul.f32 %v1321_v19, %v1321_v19  ;;  %v1328_v40 = vadd.f32 %v1309_v20, %v661_v24  ;;  %v641_v41 = vmul.f32 %v1002_v30, %v1264_v31 }
 0x399   : > { %1009 = vrsqrt.f32 %v627_v36  ;;  %v624_v43 = vadd.f32 1e-05, %v614_v39 }
 0x39a   : > { %v701_v44 = vmul.f32 0.044715, %v691_v1  ;;  %v692_v45 = vmul.f32 %v682_v22, %v1321_v19  ;;  %v687_v47 = vmul.f32 %v1328_v40, %v1328_v40  ;;  %v657_v48 = vmul.f32 %v1303_v11, %v641_v41  ;;  %v602_v49 = vpop.xlane.xlu1 %601 }
 0x39b   : > { %1011 = vrsqrt.f32 %v624_v43  ;;  %v616_v50 = vmul.f32 0.03125, %v602_v49 }
 0x39c   : > { %v711_v51 = vadd.f32 %v701_v44, %v1314_v15  ;;  %v702_v52 = vmul.f32 0.044715, %v692_v45  ;;  %v697_v54 = vmul.f32 %v687_v47, %v1328_v40  ;;  %v1338_v31 = vadd.f32 %v1309_v20, %v657_v48 }
 0x39d   : > { %v1004_v55 = vpop.eup %1003  ;;  %v626_v56 = vadd.f32 1e-05, %v616_v50 }
 0x39e   : > { %v721_v12 = vmul.f32 0.7978846, %v711_v51  ;;  %v712_v57 = vadd.f32 %v702_v52, %v1321_v19  ;;  %v707_v58 = vmul.f32 0.044715, %v697_v54  ;;  %v683_v59 = vmul.f32 %v1338_v31, %v1338_v31 }
 0x39f   : > { %v1006_v60 = vpop.eup %1005  ;;  %v648_v61 = vmul.f32 %v1004_v55, %v1270_v17  ;;  %1013 = vrsqrt.f32 %v626_v56 }
 0x3a0   : > { %1015 = vtanh.f32 %v721_v12  ;;  %v722_v62 = vmul.f32 0.7978846, %v712_v57  ;;  %v717_v63 = vadd.f32 %v707_v58, %v1328_v40  ;;  %v693_v4 = vmul.f32 %v683_v59, %v1338_v31 }
 0x3a1   : > { %v1008_v5 = vpop.eup %1007  ;;  %v664_v6 = vmul.f32 %v1303_v11, %v648_v61  ;;  %v643_v8 = vmul.f32 %v1006_v60, %v1272_v37 }
 0x3a2   : > { %1017 = vtanh.f32 %v722_v62  ;;  %v727_v9 = vmul.f32 0.7978846, %v717_v63  ;;  %v703_v10 = vmul.f32 0.044715, %v693_v4  ;;  %v642_v13 = vmul.f32 %v1008_v5, %v1276_v38 }
 0x3a3   : > { %v1010_v14 = vpop.eup %1009  ;;  %v1350_v17 = vadd.f32 %v1309_v20, %v664_v6  ;;  %v659_v16 = vmul.f32 %v1303_v11, %v643_v8 }
 0x3a4   : > { %1019 = vtanh.f32 %v727_v9  ;;  %v713_v18 = vadd.f32 %v703_v10, %v1338_v31  ;;  %v658_v21 = vmul.f32 %v1303_v11, %v642_v13  ;;  %v647_v23 = vmul.f32 %v1010_v14, %v1281_v42 }
 0x3a5   : > { %v1012_v25 = vpop.eup %1011  ;;  %v690_v37 = vmul.f32 %v1350_v17, %v1350_v17  ;;  %v1359_v26 = vadd.f32 %v1309_v20, %v659_v16 }
 0x3a6   : > { %v723_v38 = vmul.f32 0.7978846, %v713_v18  ;;  %v1362_v27 = vadd.f32 %v1309_v20, %v658_v21  ;;  %v663_v28 = vmul.f32 %v1303_v11, %v647_v23  ;;  %v644_v29 = vmul.f32 %v1012_v25, %v1286_v46 }
 0x3a7   : > { %v700_v32 = vmul.f32 %v690_v37, %v1350_v17  ;;  %v685_v42 = vmul.f32 %v1359_v26, %v1359_v26 }
 0x3a8   : > { %1021 = vtanh.f32 %v723_v38  ;;  %v684_v2 = vmul.f32 %v1362_v27, %v1362_v27  ;;  %v1372_v3 = vadd.f32 %v1309_v20, %v663_v28  ;;  %v660_v0 = vmul.f32 %v1303_v11, %v644_v29 }
 0x3a9   : > { %v1014_v7 = vpop.eup %1013  ;;  %v710_v34 = vmul.f32 0.044715, %v700_v32  ;;  %v695_v35 = vmul.f32 %v685_v42, %v1359_v26 }
 0x3aa   : > { %v1016_v46 = vpop.eup %1015  ;;  %v694_v24 = vmul.f32 %v684_v2, %v1362_v27  ;;  %v689_v33 = vmul.f32 %v1372_v3, %v1372_v3  ;;  %v1380_v30 = vadd.f32 %v1309_v20, %v660_v0  ;;  %v646_v36 = vmul.f32 %v1014_v7, %v1294_v53  ;;  %v824_v7 = vld [vmem:[%s1399_s13 + $0x24] sm:$0xf] }
 0x3ab   : > { %v741_v39 = vadd.f32 1.0, %v1016_v46  ;;  %v720_v1 = vadd.f32 %v710_v34, %v1350_v17  ;;  %v705_v22 = vmul.f32 0.044715, %v695_v35 }
 0x3ac   : > { %v1018_v41 = vpop.eup %1017  ;;  %v704_v43 = vmul.f32 0.044715, %v694_v24  ;;  %v699_v44 = vmul.f32 %v689_v33, %v1372_v3  ;;  %v686_v45 = vmul.f32 %v1380_v30, %v1380_v30  ;;  %v662_v47 = vmul.f32 %v1303_v11, %v646_v36 }
 0x3ad   : > { %v751_v48 = vmul.f32 0.5, %v741_v39  ;;  %v742_v49 = vadd.f32 1.0, %v1018_v41  ;;  %v730_v50 = vmul.f32 0.7978846, %v720_v1  ;;  %v715_v53 = vadd.f32 %v705_v22, %v1359_v26 }
 0x3ae   : > { %v1020_v51 = vpop.eup %1019  ;;  %v714_v52 = vadd.f32 %v704_v43, %v1362_v27  ;;  %v709_v54 = vmul.f32 0.044715, %v699_v44  ;;  %v696_v55 = vmul.f32 %v686_v45, %v1380_v30  ;;  %v1393_v56 = vadd.f32 %v1309_v20, %v662_v47 }
 0x3af   : > { %v761_v12 = vmul.f32 %v751_v48, %v1314_v15  ;;  %v752_v57 = vmul.f32 0.5, %v742_v49  ;;  %v747_v58 = vadd.f32 1.0, %v1020_v51  ;;  %1023 = vtanh.f32 %v730_v50 }
 0x3b0   : > { %v725_v11 = vmul.f32 0.7978846, %v715_v53  ;;  %v724_v59 = vmul.f32 0.7978846, %v714_v52  ;;  %v719_v60 = vadd.f32 %v709_v54, %v1372_v3  ;;  %v706_v61 = vmul.f32 0.044715, %v696_v55 }
 0x3b1   : > { %v910_v62 = vpack.c.bf16 %v761_v12, %v761_v12  ;;  %v762_v20 = vmul.f32 %v752_v57, %v1321_v19  ;;  %v757_v63 = vmul.f32 0.5, %v747_v58  ;;  %v688_v15 = vmul.f32 %v1393_v56, %v1393_v56 }
 0x3b2   : > { %v1022_v4 = vpop.eup %1021  ;;  %1025 = vtanh.f32 %v725_v11  ;;  %v729_v5 = vmul.f32 0.7978846, %v719_v60  ;;  %v716_v6 = vadd.f32 %v706_v61, %v1380_v30 }
 0x3b3   : > { %812 = vst.msk [vmem:[%s1399_s13] sm:$0xf] %vm811_vm7, %v910_v62  ;;  %v911_v8 = vpack.c.bf16 %v762_v20, %v762_v20  ;;  %v767_v9 = vmul.f32 %v757_v63, %v1328_v40  ;;  %v743_v10 = vadd.f32 1.0, %v1022_v4  ;;  %1027 = vtanh.f32 %v724_v59 }
 0x3b4   : > { %1029 = vtanh.f32 %v729_v5  ;;  %v726_v19 = vmul.f32 0.7978846, %v716_v6  ;;  %v698_v13 = vmul.f32 %v688_v15, %v1393_v56 }
 0x3b5   : > { %813 = vst.msk [vmem:[%s1399_s13 + $0x4] sm:$0xf] %vm811_vm7, %v911_v8  ;;  %v916_v14 = vpack.c.bf16 %v767_v9, %v767_v9  ;;  %v753_v16 = vmul.f32 0.5, %v743_v10 }
 0x3b6   : > { %1031 = vtanh.f32 %v726_v19  ;;  %v708_v18 = vmul.f32 0.044715, %v698_v13 }
 0x3b7   : > { %818 = vst.msk [vmem:[%s1399_s13 + $0x18] sm:$0xf] %vm811_vm7, %v916_v14  ;;  %v763_v21 = vmul.f32 %v753_v16, %v1338_v31 }
 0x3b8   : > { %v718_v23 = vadd.f32 %v708_v18, %v1393_v56 }
 0x3b9   : > { %v1024_v40 = vpop.eup %1023  ;;  %v912_v25 = vpack.c.bf16 %v763_v21, %v763_v21 }
 0x3ba   : > { %v750_v37 = vadd.f32 1.0, %v1024_v40  ;;  %v728_v38 = vmul.f32 0.7978846, %v718_v23 }
 0x3bb   : > { %814 = vst.msk [vmem:[%s1399_s13 + $0x8] sm:$0xf] %vm811_vm7, %v912_v25 }
 0x3bc   : > { %v1026_v28 = vpop.eup %1025  ;;  %v760_v29 = vmul.f32 0.5, %v750_v37  ;;  %1033 = vtanh.f32 %v728_v38 }
 0x3bd   : > { %v1028_v32 = vpop.eup %1027  ;;  %v745_v42 = vadd.f32 1.0, %v1026_v28 }
 0x3be   : > { %v1030_v2 = vpop.eup %1029  ;;  %v770_v0 = vmul.f32 %v760_v29, %v1350_v17  ;;  %v744_v31 = vadd.f32 1.0, %v1028_v32 }
 0x3bf   : > { %v755_v34 = vmul.f32 0.5, %v745_v42  ;;  %v749_v35 = vadd.f32 1.0, %v1030_v2 }
 0x3c0   : > { %v1032_v46 = vpop.eup %1031  ;;  %v919_v24 = vpack.c.bf16 %v770_v0, %v770_v0  ;;  %v754_v33 = vmul.f32 0.5, %v744_v31 }
 0x3c1   : > { %v765_v36 = vmul.f32 %v755_v34, %v1359_v26  ;;  %v759_v39 = vmul.f32 0.5, %v749_v35  ;;  %v746_v1 = vadd.f32 1.0, %v1032_v46 }
 0x3c2   : > { %v825_v22 = vsel %vm823_vm9, %v919_v24, %v824_v7  ;;  %v764_v17 = vmul.f32 %v754_v33, %v1362_v27 }
 0x3c3   : > { %826 = vst [vmem:[%s1399_s13 + $0x24] sm:$0xf] %v825_v22  ;;  %v914_v41 = vpack.c.bf16 %v765_v36, %v765_v36  ;;  %v769_v43 = vmul.f32 %v759_v39, %v1372_v3  ;;  %v756_v44 = vmul.f32 0.5, %v746_v1 }
 0x3c4   : > { %v913_v45 = vpack.c.bf16 %v764_v17, %v764_v17 }
 0x3c5   : > { %816 = vst.msk [vmem:[%s1399_s13 + $0x10] sm:$0xf] %vm811_vm7, %v914_v41  ;;  %v918_v47 = vpack.c.bf16 %v769_v43, %v769_v43  ;;  %v766_v48 = vmul.f32 %v756_v44, %v1380_v30 }
 0x3c6   : > { %v1034_v49 = vpop.eup %1033  ;;  %815 = vst.msk [vmem:[%s1399_s13 + $0xc] sm:$0xf] %vm811_vm7, %v913_v45 }
 0x3c7   : > { %820 = vst.msk [vmem:[%s1399_s13 + $0x20] sm:$0xf] %vm811_vm7, %v918_v47  ;;  %v915_v26 = vpack.c.bf16 %v766_v48, %v766_v48  ;;  %v748_v50 = vadd.f32 1.0, %v1034_v49 }
 0x3c9   : > { %817 = vst.msk [vmem:[%s1399_s13 + $0x14] sm:$0xf] %vm811_vm7, %v915_v26  ;;  %v758_v27 = vmul.f32 0.5, %v748_v50 }
 0x3cb   : > { %v768_v53 = vmul.f32 %v758_v27, %v1393_v56 }
 0x3cd   : > { %v917_v3 = vpack.c.bf16 %v768_v53, %v768_v53 }
 0x3cf   : > { %819 = vst.msk [vmem:[%s1399_s13 + $0x1c] sm:$0xf] %vm811_vm7, %v917_v3 }
 0x3d0 PF: > { %s15_s18 = sadd.s32 1, %s1041_s18  }
 0x3d1   : > { %p12_p4 = scmp.ge.s32.totalorder %s15_s18, 4  }
 0x3d3   :  { %14 = sbr.rel (!%p12_p4) target bundleno = 1 (0x1), region = 70 }

// kernel: wav2vec2_encoder_forward.6
= control target key start
LH: loop header
LB: loop body
LE: loop exit
PB: predicated region body
PF: predicated region fallthrough
CT: control target
= control target key end

     0   :  { %s811_s18 = smov 0   ;;  %s920_s0 = inlined_call_operand.vmem [shape: bf16[2,40,64], index: 0, kind: input, shape index: {}]   ;;  %s921_s1 = inlined_call_operand.vmem [shape: bf16[128,32], index: 1, kind: input, shape index: {}]   ;;  %s922_s2 = inlined_call_operand.vmem [shape: f32[1,32], index: 2, kind: input, shape index: {}]   ;;  %s923_s3 = inlined_call_operand.vmem [shape: f32[1,32], index: 3, kind: input, shape index: {}]   ;;  %s924_s4 = inlined_call_operand.vmem [shape: f32[1,32], index: 4, kind: input, shape index: {}]   ;;  %s925_s5 = inlined_call_operand.vmem [shape: bf16[2,39,32], index: 5, kind: output, shape index: {}]  }
   0x1 LB: > { %s626_s19 = sadd.s32 4294967295, %s776_s18   ;;  %p630_p0 = scmp.ge.s32.totalorder %s776_s18, 1  ;;  %s776_s18 = sphi %s811_s18, %s15_s18  }
   0x2   : > { %p187_p1 = scmp.lt.s32.totalorder %s776_s18, 3 }
   0x4   : > { %p188_p2 = pnand %p630_p0, %p187_p1 }
   0x5   : > { %p215_p3 = scmp.lt.s32.totalorder (!%p188_p2), %s626_s19, 1  ;;  %v778_v0 = vmov (!%p188_p2), 0.0   ;;  %v742_v1 = vld [vmem:[%s921_s1] sm:$0xff] (!%p188_p2)   ;;  %v743_v2 = vld [vmem:[%s921_s1 + $0x8] sm:$0xff] (!%p188_p2)   ;;  %vm779_vm0 = vmmov (!%p188_p2), 0   ;;  %v744_v5 = vld [vmem:[%s921_s1 + $0x10] sm:$0xff] (!%p188_p2)  }
   0x6   : > { %191 = sbr.rel (%p188_p2) target bundleno = 718 (0x2ce), region = 40  ;;  %704 = vmatprep.subr.bf16.mxu1 (!%p188_p2), %v778_v0  ;;  %676 = vmatprep.subr.bf16.mxu0 (!%p188_p2), %v778_v0  ;;  %vm241_vm1 = vcmask (!%p188_p2), 1046528   ;;  %v745_v17 = vld [vmem:[%s921_s1 + $0x18] sm:$0xff] (!%p188_p2)   ;;  %s780_s7 = smov (!%p188_p2), 64   ;;  %v746_v24 = vld [vmem:[%s921_s1 + $0x20] sm:$0xff] (!%p188_p2)   ;;  %v747_v25 = vld [vmem:[%s921_s1 + $0x28] sm:$0xff] (!%p188_p2)  }
   0x7   : > { %712 = vmatpush3.bf16.msra.mxu1 (!%p188_p2), %v742_v1  ;;  %677 = vmatpush3.bf16.msra.mxu0 (!%p188_p2), %v742_v1  ;;  %v748_v26 = vld [vmem:[%s921_s1 + $0x30] sm:$0xff] (!%p188_p2)   ;;  %v749_v27 = vld [vmem:[%s921_s1 + $0x38] sm:$0xff] (!%p188_p2)   ;;  %vm266_vm2 = vcmask (!%p188_p2), 523264   ;;  %v633_v47 = vld [vmem:[%s922_s2] ss:$0 sm:$0xff] (!%p188_p2)  ;;  %vm404_vm3 = vcmask (!%p188_p2), 261120  }
   0x8   : > { %705 = vmatprep.subr.bf16.mxu1 (!%p188_p2), %v778_v0  ;;  %678 = vmatprep.subr.bf16.mxu0 (!%p188_p2), %v778_v0  ;;  %vm417_vm4 = vcmask (!%p188_p2), 260096   ;;  %vm560_vm5 = vcmask (!%p188_p2), 257024   ;;  %vm566_vm6 = vsmask.f32 (!%p188_p2), 3328 }
   0x9   : > { %696 = vmatprep.mubr.msk.bf16.mxu1 (!%p188_p2), %vm779_vm0, %v778_v0  ;;  %692 = vmatprep.mubr.msk.bf16.mxu0 (!%p188_p2), %vm779_vm0, %v778_v0  ;;  %vm567_vm7 = vmand (!%p188_p2), %vm560_vm5, %vm566_vm6 }
   0xb   : > { %713 = vmatpush3.bf16.msra.mxu1 (!%p188_p2), %v743_v2  ;;  %679 = vmatpush3.bf16.msra.mxu0 (!%p188_p2), %v743_v2 }
   0xc   : > { %706 = vmatprep.subr.bf16.mxu1 (!%p188_p2), %v778_v0  ;;  %680 = vmatprep.subr.bf16.mxu0 (!%p188_p2), %v778_v0 }
   0xd   : > { %s927_s19 = smov (!%p215_p3, %s626_s19), 1 }
   0xe   : > { %s720_s24 = smul.u32 20, %s927_s19 }
   0xf   : > { %714 = vmatpush3.bf16.msra.mxu1 %v744_v5  ;;  %681 = vmatpush3.bf16.msra.mxu0 %v744_v5 }
  0x10   : > { %s219_s27 = scalar_lea.vmem %s920_s0, %s720_s24  ;;  %707 = vmatprep.subr.bf16.mxu1 %v778_v0  ;;  %682 = vmatprep.subr.bf16.mxu0 %v778_v0 }
  0x11   : > { %v841_v3 = vld [vmem:[%s219_s27 + $0x8] sm:$0xff]   ;;  %v843_v4 = vld [vmem:[%s219_s27 + $0x10] sm:$0xf]  ;;  %v851_v9 = vld [vmem:[%s219_s27] sm:$0xff]   ;;  %s224_s27 = scalar_lea.vmem %s925_s5, %s720_s24 }
  0x12   : > { %v662_v6 = vunpack.c.l.bf16 %v841_v3  ;;  %v663_v7 = vunpack.c.h.bf16 %v841_v3  ;;  %v235_v8 = vunpack.c.l.bf16 %v843_v4  ;;  %v658_v10 = vunpack.c.l.bf16 %v851_v9 }
  0x13   : > { %v659_v11 = vunpack.c.h.bf16 %v851_v9  ;;  %715 = vmatpush3.bf16.msra.mxu1 %v745_v17  ;;  %683 = vmatpush3.bf16.msra.mxu0 %v745_v17 }
  0x14   : > { %v245_v12 = vrot.slane %v662_v6, 1  ;;  %v247_v13 = vrot.slane %v663_v7, 1  ;;  %v249_v14 = vrot.slane %v235_v8, 1  ;;  %v242_v15 = vrot.slane %v658_v10, 1  ;;  %708 = vmatprep.subr.bf16.mxu1 %v778_v0  ;;  %684 = vmatprep.subr.bf16.mxu0 %v778_v0 }
  0x15   : > { %v243_v16 = vrot.slane %v659_v11, 1 }
  0x16   : > { %v248_v18 = vsel %vm241_vm1, %v245_v12, %v247_v13  ;;  %v250_v19 = vsel %vm241_vm1, %v247_v13, %v249_v14  ;;  %259 = vrot.lane.b32.xlu1 %v249_v14, %s780_s7 }
  0x17   : > { %v732_v20 = vpack.i.bf16 %v250_v19, %v248_v18  ;;  %v244_v21 = vsel %vm241_vm1, %v242_v15, %v243_v16  ;;  %v246_v22 = vsel %vm241_vm1, %v243_v16, %v245_v12  ;;  %716 = vmatpush3.bf16.msra.mxu1 %v746_v24  ;;  %685 = vmatpush3.bf16.msra.mxu0 %v746_v24 }
  0x18   : > { %v737_v23 = vpack.i.bf16 %v246_v22, %v244_v21  ;;  %709 = vmatprep.subr.bf16.mxu1 %v778_v0  ;;  %686 = vmatprep.subr.bf16.mxu0 %v778_v0 }
  0x19   : > { %733 = vrot.lane.b32.xlu0 %v732_v20, %s780_s7 }
  0x1b   : > { %717 = vmatpush3.bf16.msra.mxu1 %v747_v25  ;;  %687 = vmatpush3.bf16.msra.mxu0 %v747_v25 }
  0x1c   : > { %710 = vmatprep.subr.bf16.mxu1 %v778_v0  ;;  %688 = vmatprep.subr.bf16.mxu0 %v778_v0 }
  0x1d   : > { %738 = vrot.lane.b32.xlu0 %v737_v23, %s780_s7 }
  0x1f   : > { %718 = vmatpush3.bf16.msra.mxu1 %v748_v26  ;;  %689 = vmatpush3.bf16.msra.mxu0 %v748_v26 }
  0x20   : > { %711 = vmatprep.subr.bf16.mxu1 %v778_v0  ;;  %690 = vmatprep.subr.bf16.mxu0 %v778_v0 }
  0x23   : > { %719 = vmatpush3.bf16.msra.mxu1 %v749_v27  ;;  %691 = vmatpush3.bf16.msra.mxu0 %v749_v27 }
  0x88   : > { %v260_v35 = vpop.permute.xlu1 %259 }
  0x89   : > { %v271_v38 = vsel %vm266_vm2, %v235_v8, %v260_v35 }
  0x8a   : > { %v274_v42 = vpack.c.bf16 %v271_v38, %v271_v38 }
  0x8b   : > { %v734_v28 = vpop.permute.xlu0 %733 }
  0x8c   : > { %v736_v29 = vunpack.i.h.bf16 %v734_v28  ;;  %v735_v30 = vunpack.i.l.bf16 %v734_v28 }
  0x8e   : > { %v269_v31 = vsel %vm266_vm2, %v662_v6, %v735_v30  ;;  %v270_v32 = vsel %vm266_vm2, %v663_v7, %v736_v29 }
  0x8f   : > { %v739_v33 = vpop.permute.xlu0 %738  ;;  %v273_v34 = vpack.c.bf16 %v270_v32, %v269_v31 }
  0x90   : > { %v741_v36 = vunpack.i.h.bf16 %v739_v33  ;;  %v740_v37 = vunpack.i.l.bf16 %v739_v33 }
  0x91   : > { %697 = vmatmul.mubr.bf16.vlgmr.msra.gmra.mrb[0].mxu1 %v273_v34 }
  0x92   : > { %v267_v39 = vsel %vm266_vm2, %v658_v10, %v740_v37  ;;  %v268_v40 = vsel %vm266_vm2, %v659_v11, %v741_v36  ;;  %700 = vmatprep.mubr.msk.bf16.mxu1 %vm779_vm0, %v778_v0 }
  0x93   : > { %v272_v41 = vpack.c.bf16 %v268_v40, %v267_v39 }
  0x95   : > { %693 = vmatmul.mubr.bf16.vlgmr.msra.gmra.mrb[0].mxu0 %v272_v41 }
  0x99   : > { %701 = vmatmul.mubr.bf16.gmra.mrb[4].mxu1 %v274_v42  ;;  %v642_v42 = vld [vmem:[%s923_s3] ss:$0 sm:$0xff] }
 0x164   : > { %v388_v43 = vpop.f32.mrb[0].mxu1 }
 0x165   : > { %v698_v44 = vpop.f32.mrb[1].mxu1  ;;  %v389_v59 = vadd.f32 %v633_v47, %v388_v43 }
 0x166   : > { %v391_v45 = vpop.f32.mrb[2].mxu1 }
 0x167   : > { %v699_v46 = vpop.f32.mrb[3].mxu1  ;;  %v392_v60 = vadd.f32 %v633_v47, %v391_v45  ;;  %v411_v0 = vsel %vm404_vm3, %v389_v59, 0.0  ;;  %v643_v45 = vld [vmem:[%s924_s4] ss:$0 sm:$0xff] }
 0x168   : > { %v380_v48 = vpop.f32.mrb[0].mxu0 }
 0x169   : > { %v381_v49 = vadd.f32 %v633_v47, %v380_v48  ;;  %v694_v50 = vpop.f32.mrb[1].mxu0  ;;  %v414_v1 = vsel %vm404_vm3, %v392_v60, 0.0 }
 0x16a   : > { %v383_v51 = vpop.f32.mrb[2].mxu0 }
 0x16b   : > { %v384_v52 = vadd.f32 %v633_v47, %v383_v51  ;;  %v695_v53 = vpop.f32.mrb[3].mxu0  ;;  %v405_v54 = vsel %vm404_vm3, %v381_v49, 0.0 }
 0x16c   : > { %v396_v55 = vpop.f32.mrb[4].mxu1  ;;  %406 = vadd.xlane.f32.xlu0 %v405_v54 }
 0x16d   : > { %v397_v56 = vadd.f32 %v633_v47, %v396_v55  ;;  %v702_v57 = vpop.f32.mrb[5].mxu1  ;;  %v408_v63 = vsel %vm404_vm3, %v384_v52, 0.0 }
 0x16e   : > { %v399_v58 = vpop.f32.mrb[6].mxu1 }
 0x16f   : > { %v418_v61 = vsel %vm417_vm4, %v397_v56, 0.0  ;;  %v703_v62 = vpop.f32.mrb[7].mxu1 }
 0x170   : > { %419 = vadd.xlane.f32.xlu1 %v418_v61  ;;  %409 = vadd.xlane.f32.xlu0 %v408_v63 }
 0x174   : > { %412 = vadd.xlane.f32.xlu1 %v411_v0  ;;  %415 = vadd.xlane.f32.xlu0 %v414_v1 }
 0x1f9   : > { %v407_v2 = vpop.xlane.xlu0 %406 }
 0x1fa   : > { %v422_v3 = vmul.f32 0.03125, %v407_v2 }
 0x1fc   : > { %v427_v4 = vsub.f32 %v381_v49, %v422_v3 }
 0x1fd   : > { %v420_v5 = vpop.xlane.xlu1 %419  ;;  %v410_v6 = vpop.xlane.xlu0 %409 }
 0x1fe   : > { %v426_v7 = vmul.f32 0.03125, %v420_v5  ;;  %v423_v8 = vmul.f32 0.03125, %v410_v6  ;;  %v432_v9 = vmul.f32 %v427_v4, %v427_v4 }
 0x200   : > { %v431_v10 = vsub.f32 %v397_v56, %v426_v7  ;;  %v428_v11 = vsub.f32 %v384_v52, %v423_v8  ;;  %v437_v12 = vsel %vm404_vm3, %v432_v9, 0.0 }
 0x201   : > { %v413_v13 = vpop.xlane.xlu1 %412  ;;  %438 = vadd.xlane.f32.xlu0 %v437_v12  ;;  %v416_v14 = vpop.xlane.xlu0 %415 }
 0x202   : > { %v424_v15 = vmul.f32 0.03125, %v413_v13  ;;  %v425_v16 = vmul.f32 0.03125, %v416_v14  ;;  %v433_v17 = vmul.f32 %v428_v11, %v428_v11  ;;  %v436_v21 = vmul.f32 %v431_v10, %v431_v10 }
 0x204   : > { %v429_v18 = vsub.f32 %v389_v59, %v424_v15  ;;  %v430_v19 = vsub.f32 %v392_v60, %v425_v16  ;;  %v440_v20 = vsel %vm404_vm3, %v433_v17, 0.0  ;;  %v449_v24 = vsel %vm417_vm4, %v436_v21, 0.0 }
 0x205   : > { %441 = vadd.xlane.f32.xlu1 %v440_v20 }
 0x206   : > { %v434_v22 = vmul.f32 %v429_v18, %v429_v18  ;;  %v435_v25 = vmul.f32 %v430_v19, %v430_v19 }
 0x208   : > { %v443_v23 = vsel %vm404_vm3, %v434_v22, 0.0  ;;  %v446_v26 = vsel %vm404_vm3, %v435_v25, 0.0 }
 0x209   : > { %444 = vadd.xlane.f32.xlu0 %v443_v23  ;;  %450 = vadd.xlane.f32.xlu1 %v449_v24 }
 0x20d   : > { %447 = vadd.xlane.f32.xlu1 %v446_v26 }
 0x28e   : > { %v439_v27 = vpop.xlane.xlu0 %438 }
 0x28f   : > { %v452_v28 = vmul.f32 0.03125, %v439_v27 }
 0x291   : > { %v457_v29 = vadd.f32 1e-05, %v452_v28 }
 0x292   : > { %v442_v30 = vpop.xlane.xlu1 %441 }
 0x293   : > { %750 = vrsqrt.f32 %v457_v29  ;;  %v453_v31 = vmul.f32 0.03125, %v442_v30 }
 0x295   : > { %v458_v32 = vadd.f32 1e-05, %v453_v31 }
 0x296   : > { %v451_v33 = vpop.xlane.xlu1 %450  ;;  %v445_v34 = vpop.xlane.xlu0 %444 }
 0x297   : > { %752 = vrsqrt.f32 %v458_v32  ;;  %v456_v35 = vmul.f32 0.03125, %v451_v33  ;;  %v454_v36 = vmul.f32 0.03125, %v445_v34 }
 0x299   : > { %v461_v37 = vadd.f32 1e-05, %v456_v35  ;;  %v459_v38 = vadd.f32 1e-05, %v454_v36 }
 0x29a   : > { %v448_v39 = vpop.xlane.xlu1 %447 }
 0x29b   : > { %754 = vrsqrt.f32 %v461_v37  ;;  %v455_v40 = vmul.f32 0.03125, %v448_v39 }
 0x29c   : > { %756 = vrsqrt.f32 %v459_v38 }
 0x29d   : > { %v751_v41 = vpop.eup %750  ;;  %v460_v43 = vadd.f32 1e-05, %v455_v40 }
 0x29e   : > { %v467_v44 = vmul.f32 %v751_v41, %v427_v4 }
 0x29f   : > { %758 = vrsqrt.f32 %v460_v43 }
 0x2a0   : > { %v478_v46 = vmul.f32 %v642_v42, %v467_v44  ;;  %v568_v44 = vld [vmem:[%s224_s27 + $0x10] sm:$0xf] }
 0x2a1   : > { %v753_v47 = vpop.eup %752 }
 0x2a2   : > { %v489_v48 = vadd.f32 %v643_v45, %v478_v46  ;;  %v468_v49 = vmul.f32 %v753_v47, %v428_v11 }
 0x2a4   : > { %v494_v50 = vmul.f32 %v489_v48, %v489_v48  ;;  %v479_v51 = vmul.f32 %v642_v42, %v468_v49 }
 0x2a5   : > { %v755_v52 = vpop.eup %754 }
 0x2a6   : > { %v757_v53 = vpop.eup %756  ;;  %v499_v54 = vmul.f32 %v494_v50, %v489_v48  ;;  %v490_v55 = vadd.f32 %v643_v45, %v479_v51  ;;  %v471_v56 = vmul.f32 %v755_v52, %v431_v10 }
 0x2a7   : > { %v469_v57 = vmul.f32 %v757_v53, %v429_v18 }
 0x2a8   : > { %v504_v58 = vmul.f32 0.044715, %v499_v54  ;;  %v495_v59 = vmul.f32 %v490_v55, %v490_v55  ;;  %v482_v60 = vmul.f32 %v642_v42, %v471_v56 }
 0x2a9   : > { %v759_v61 = vpop.eup %758  ;;  %v480_v62 = vmul.f32 %v642_v42, %v469_v57 }
 0x2aa   : > { %v509_v63 = vadd.f32 %v504_v58, %v489_v48  ;;  %v500_v0 = vmul.f32 %v495_v59, %v490_v55  ;;  %v493_v1 = vadd.f32 %v643_v45, %v482_v60  ;;  %v470_v2 = vmul.f32 %v759_v61, %v430_v19 }
 0x2ab   : > { %v491_v3 = vadd.f32 %v643_v45, %v480_v62 }
 0x2ac   : > { %v514_v4 = vmul.f32 0.7978846, %v509_v63  ;;  %v505_v5 = vmul.f32 0.044715, %v500_v0  ;;  %v498_v6 = vmul.f32 %v493_v1, %v493_v1  ;;  %v481_v7 = vmul.f32 %v642_v42, %v470_v2 }
 0x2ad   : > { %v496_v8 = vmul.f32 %v491_v3, %v491_v3 }
 0x2ae   : > { %760 = vtanh.f32 %v514_v4  ;;  %v510_v9 = vadd.f32 %v505_v5, %v490_v55  ;;  %v503_v11 = vmul.f32 %v498_v6, %v493_v1  ;;  %v492_v10 = vadd.f32 %v643_v45, %v481_v7 }
 0x2af   : > { %v501_v12 = vmul.f32 %v496_v8, %v491_v3 }
 0x2b0   : > { %v515_v13 = vmul.f32 0.7978846, %v510_v9  ;;  %v508_v14 = vmul.f32 0.044715, %v503_v11  ;;  %v497_v15 = vmul.f32 %v492_v10, %v492_v10 }
 0x2b1   : > { %v506_v16 = vmul.f32 0.044715, %v501_v12 }
 0x2b2   : > { %762 = vtanh.f32 %v515_v13  ;;  %v513_v17 = vadd.f32 %v508_v14, %v493_v1  ;;  %v502_v18 = vmul.f32 %v497_v15, %v492_v10 }
 0x2b3   : > { %v511_v19 = vadd.f32 %v506_v16, %v491_v3 }
 0x2b4   : > { %v518_v20 = vmul.f32 0.7978846, %v513_v17  ;;  %v507_v21 = vmul.f32 0.044715, %v502_v18 }
 0x2b5   : > { %v516_v22 = vmul.f32 0.7978846, %v511_v19 }
 0x2b6   : > { %764 = vtanh.f32 %v518_v20  ;;  %v512_v23 = vadd.f32 %v507_v21, %v492_v10 }
 0x2b7   : > { %766 = vtanh.f32 %v516_v22 }
 0x2b8   : > { %v761_v24 = vpop.eup %760  ;;  %v517_v25 = vmul.f32 0.7978846, %v512_v23 }
 0x2b9   : > { %v524_v26 = vadd.f32 1.0, %v761_v24 }
 0x2ba   : > { %768 = vtanh.f32 %v517_v25 }
 0x2bb   : > { %v529_v27 = vmul.f32 0.5, %v524_v26 }
 0x2bc   : > { %v763_v28 = vpop.eup %762 }
 0x2bd   : > { %v534_v29 = vmul.f32 %v529_v27, %v489_v48  ;;  %v525_v30 = vadd.f32 1.0, %v763_v28 }
 0x2bf   : > { %v651_v31 = vpack.c.bf16 %v534_v29, %v534_v29  ;;  %v530_v32 = vmul.f32 0.5, %v525_v30 }
 0x2c0   : > { %v765_v33 = vpop.eup %764 }
 0x2c1   : > { %v767_v34 = vpop.eup %766  ;;  %561 = vst.msk [vmem:[%s224_s27] sm:$0xf] %vm560_vm5, %v651_v31  ;;  %v535_v35 = vmul.f32 %v530_v32, %v490_v55  ;;  %v528_v36 = vadd.f32 1.0, %v765_v33 }
 0x2c2   : > { %v526_v37 = vadd.f32 1.0, %v767_v34 }
 0x2c3   : > { %v652_v38 = vpack.c.bf16 %v535_v35, %v535_v35  ;;  %v533_v39 = vmul.f32 0.5, %v528_v36 }
 0x2c4   : > { %v769_v40 = vpop.eup %768  ;;  %v531_v41 = vmul.f32 0.5, %v526_v37 }
 0x2c5   : > { %562 = vst.msk [vmem:[%s224_s27 + $0x4] sm:$0xf] %vm560_vm5, %v652_v38  ;;  %v538_v42 = vmul.f32 %v533_v39, %v493_v1  ;;  %v527_v43 = vadd.f32 1.0, %v769_v40 }
 0x2c6   : > { %v536_v45 = vmul.f32 %v531_v41, %v491_v3 }
 0x2c7   : > { %v655_v46 = vpack.c.bf16 %v538_v42, %v538_v42  ;;  %v532_v47 = vmul.f32 0.5, %v527_v43 }
 0x2c8   : > { %v653_v48 = vpack.c.bf16 %v536_v45, %v536_v45 }
 0x2c9   : > { %v569_v49 = vsel %vm567_vm7, %v655_v46, %v568_v44  ;;  %v537_v50 = vmul.f32 %v532_v47, %v492_v10 }
 0x2ca   : > { %570 = vst [vmem:[%s224_s27 + $0x10] sm:$0xf] %v569_v49  ;;  %563 = vst.msk [vmem:[%s224_s27 + $0x8] sm:$0xf] %vm560_vm5, %v653_v48 }
 0x2cb   : > { %v654_v51 = vpack.c.bf16 %v537_v50, %v537_v50 }
 0x2cd   : > { %564 = vst.msk [vmem:[%s224_s27 + $0xc] sm:$0xf] %vm560_vm5, %v654_v51 }
 0x2ce PF: > { %s15_s18 = sadd.s32 1, %s776_s18  }
 0x2cf   : > { %p12_p4 = scmp.ge.s32.totalorder %s15_s18, 4  }
 0x2d1   :  { %14 = sbr.rel (!%p12_p4) target bundleno = 1 (0x1), region = 70 }

// kernel: wav2vec2_encoder_forward.8
= control target key start
LH: loop header
LB: loop body
LE: loop exit
PB: predicated region body
PF: predicated region fallthrough
CT: control target
= control target key end

     0   :  { %s2691_s24 = smov 0   ;;  %s3603_s0 = inlined_call_operand.vmem [shape: bf16[2,19,32], index: 0, kind: input, shape index: {}]   ;;  %s3604_s1 = inlined_call_operand.vmem [shape: f32[1,32], index: 1, kind: input, shape index: {}]   ;;  %s3605_s2 = inlined_call_operand.vmem [shape: f32[1,32], index: 2, kind: input, shape index: {}]   ;;  %s3606_s3 = inlined_call_operand.vmem [shape: bf16[32,64], index: 3, kind: input, shape index: {}]   ;;  %s3607_s4 = inlined_call_operand.vmem [shape: f32[1,64], index: 4, kind: input, shape index: {}]   ;;  %s3608_s5 = inlined_call_operand.vmem [shape: bf16[4,256,16], index: 5, kind: input, shape index: {}]   ;;  %s3609_s6 = inlined_call_operand.vmem [shape: f32[1,64], index: 6, kind: input, shape index: {}]   ;;  %s3610_s7 = inlined_call_operand.vmem [shape: bf16[2,24,64], index: 7, kind: output, shape index: {}]  }
   0x1 LB: > { %s1919_s25 = sadd.s32 4294967295, %s2641_s24   ;;  %p1923_p0 = scmp.ge.s32.totalorder %s2641_s24, 1  ;;  %s2641_s24 = sphi %s2691_s24, %s17_s24  }
   0x2   : > { %p237_p1 = scmp.lt.s32.totalorder %s2641_s24, 3 }
   0x4   : > { %p238_p2 = pnand %p1923_p0, %p237_p1 }
   0x5   : > { %p269_p3 = scmp.lt.s32.totalorder (!%p238_p2), %s1919_s25, 1  ;;  %vm288_vm0 = vcmask (!%p238_p2), 261120   ;;  %vm295_vm1 = vcmask (!%p238_p2), 256000   ;;  %v2557_v23 = vld [vmem:[%s3606_s3] sm:$0xff] (!%p238_p2)   ;;  %v2558_v24 = vld [vmem:[%s3606_s3 + $0x8] sm:$0xff] (!%p238_p2)   ;;  %vm427_vm2 = vcmask (!%p238_p2), 1042432  }
   0x6   : > { %241 = sbr.rel (%p238_p2) target bundleno = 1182 (0x49e), region = 48  ;;  %2222 = vmatprep.subr.bf16.mxu0 (!%p238_p2), %v2557_v23  ;;  %v1926_v36 = vld [vmem:[%s3604_s1] ss:$0 sm:$0xff] (!%p238_p2)  ;;  %v2643_v55 = vmov (!%p238_p2), 0.0   ;;  %vm507_vm3 = vcmask (!%p238_p2), 1041408   ;;  %vm524_vm4 = vcmask (!%p238_p2), 1040384  }
   0x7   : > { %2223 = vmatpush3.bf16.msra.mxu0 (!%p238_p2), %v2557_v23  ;;  %v1927_v42 = vld [vmem:[%s3605_s2] ss:$0 sm:$0xff] (!%p238_p2)  ;;  %v508_v56 = vrot.slane (!%p238_p2), %v2643_v55, 6  ;;  %v525_v57 = vrot.slane (!%p238_p2), %v2643_v55, 7  ;;  %s2644_s17 = smov (!%p238_p2), 96   ;;  %s2645_s18 = smov (!%p238_p2), 112  }
   0x8   : > { %2224 = vmatprep.subr.bf16.mxu0 (!%p238_p2), %v2558_v24  ;;  %v1928_v50 = vld [vmem:[%s3607_s4] ss:$0 sm:$0xff] (!%p238_p2)  ;;  %s2646_s19 = smov (!%p238_p2), 80   ;;  %s2647_s20 = smov (!%p238_p2), 16   ;;  %vm432_vm5 = vcmask (!%p238_p2), 1046528   ;;  %vm447_vm6 = vcmask (!%p238_p2), 1045504  }
   0x9   : > { %s2648_s21 = smov (!%p238_p2), 32   ;;  %s2649_s22 = smov (!%p238_p2), 48   ;;  %vm462_vm7 = vcmask (!%p238_p2), 1044480   ;;  %vm477_vm8 = vcmask (!%p238_p2), 1043456   ;;  %vm589_vm9 = vcmask (!%p238_p2), 130048   ;;  %vm596_vm10 = vcmask (!%p238_p2), 392192  }
   0xa   : > { %s2650_s23 = smov (!%p238_p2), 64   ;;  %vm600_vm11 = vcmask (!%p238_p2), 523264   ;;  %vm604_vm12 = vcmask (!%p238_p2), 654336   ;;  %vm608_vm13 = vcmask (!%p238_p2), 785408   ;;  %vm612_vm14 = vcmask (!%p238_p2), 916480  }
   0xb   : > { %2225 = vmatpush3.bf16.msra.mxu0 (!%p238_p2), %v2558_v24  ;;  %vm1860_vm15 = vcmask (!%p238_p2), 519168  }
   0xd   : > { %s3612_s25 = smov (!%p269_p3, %s1919_s25), 1 }
   0xe   : > { %s2230_s26 = smul.u32 12, %s3612_s25 }
  0x10   : > { %s273_s29 = scalar_lea.vmem %s3603_s0, %s2230_s26  ;;  %s278_s13 = scalar_lea.vmem %s3610_s7, %s2230_s26 }
  0x11   : > { %v2103_v0 = vld [vmem:[%s273_s29] sm:$0xff]   ;;  %v282_v1 = vld [vmem:[%s273_s29 + $0x8] sm:$0x3] }
  0x12   : > { %v2104_v2 = vunpack.c.l.bf16 %v2103_v0  ;;  %v285_v3 = vunpack.c.l.bf16 %v282_v1  ;;  %v2105_v4 = vunpack.c.h.bf16 %v2103_v0 }
  0x14   : > { %v289_v5 = vsel %vm288_vm0, %v2104_v2, 0.0  ;;  %v296_v6 = vsel %vm295_vm1, %v285_v3, 0.0  ;;  %v292_v7 = vsel %vm288_vm0, %v2105_v4, 0.0 }
  0x15   : > { %290 = vadd.xlane.f32.xlu0 %v289_v5  ;;  %297 = vadd.xlane.f32.xlu1 %v296_v6 }
  0x19   : > { %293 = vadd.xlane.f32.xlu0 %v292_v7 }
  0xa2   : > { %v291_v8 = vpop.xlane.xlu0 %290  ;;  %v298_v9 = vpop.xlane.xlu1 %297 }
  0xa3   : > { %v300_v10 = vmul.f32 0.03125, %v291_v8  ;;  %v302_v11 = vmul.f32 0.03125, %v298_v9 }
  0xa5   : > { %v303_v12 = vsub.f32 %v2104_v2, %v300_v10  ;;  %v305_v13 = vsub.f32 %v285_v3, %v302_v11 }
  0xa6   : > { %v294_v14 = vpop.xlane.xlu0 %293 }
  0xa7   : > { %v301_v15 = vmul.f32 0.03125, %v294_v14  ;;  %v306_v16 = vmul.f32 %v303_v12, %v303_v12  ;;  %v308_v17 = vmul.f32 %v305_v13, %v305_v13 }
  0xa9   : > { %v304_v18 = vsub.f32 %v2105_v4, %v301_v15  ;;  %v309_v19 = vsel %vm288_vm0, %v306_v16, 0.0  ;;  %v315_v20 = vsel %vm295_vm1, %v308_v17, 0.0 }
  0xaa   : > { %310 = vadd.xlane.f32.xlu1 %v309_v19 }
  0xab   : > { %v307_v21 = vmul.f32 %v304_v18, %v304_v18 }
  0xad   : > { %v312_v22 = vsel %vm288_vm0, %v307_v21, 0.0 }
  0xae   : > { %316 = vadd.xlane.f32.xlu1 %v315_v20  ;;  %313 = vadd.xlane.f32.xlu0 %v312_v22 }
 0x137   : > { %v311_v25 = vpop.xlane.xlu1 %310 }
 0x138   : > { %v318_v26 = vmul.f32 0.03125, %v311_v25 }
 0x13a   : > { %v321_v27 = vadd.f32 1e-05, %v318_v26 }
 0x13b   : > { %v317_v28 = vpop.xlane.xlu1 %316  ;;  %v314_v29 = vpop.xlane.xlu0 %313 }
 0x13c   : > { %2623 = vrsqrt.f32 %v321_v27  ;;  %v320_v30 = vmul.f32 0.03125, %v317_v28  ;;  %v319_v31 = vmul.f32 0.03125, %v314_v29 }
 0x13e   : > { %v323_v32 = vadd.f32 1e-05, %v320_v30  ;;  %v322_v33 = vadd.f32 1e-05, %v319_v31 }
 0x140   : > { %2625 = vrsqrt.f32 %v323_v32 }
 0x141   : > { %2627 = vrsqrt.f32 %v322_v33 }
 0x146   : > { %v2624_v34 = vpop.eup %2623 }
 0x147   : > { %v327_v35 = vmul.f32 %v2624_v34, %v303_v12 }
 0x149   : > { %v336_v41 = vmul.f32 %v1926_v36, %v327_v35 }
 0x14a   : > { %v2626_v37 = vpop.eup %2625 }
 0x14b   : > { %v2628_v38 = vpop.eup %2627  ;;  %v329_v39 = vmul.f32 %v2626_v37, %v305_v13  ;;  %v345_v46 = vadd.f32 %v1927_v42, %v336_v41 }
 0x14c   : > { %v328_v40 = vmul.f32 %v2628_v38, %v304_v18 }
 0x14d   : > { %v338_v43 = vmul.f32 %v1926_v36, %v329_v39 }
 0x14e   : > { %v337_v44 = vmul.f32 %v1926_v36, %v328_v40 }
 0x14f   : > { %v347_v45 = vadd.f32 %v1927_v42, %v338_v43 }
 0x150   : > { %v346_v47 = vadd.f32 %v1927_v42, %v337_v44  ;;  %v448_v42 = vrot.slane %v2643_v55, 2 }
 0x151   : > { %v349_v48 = vpack.c.bf16 %v347_v45, %v347_v45 }
 0x152   : > { %v348_v49 = vpack.c.bf16 %v346_v47, %v345_v46 }
 0x154   : > { %2226 = vmatprep.mubr.msk.bf16.mxu0 %vm288_vm0, %v348_v49  ;;  %v2559_v49 = vld [vmem:[%s3608_s5 + $0x40] sm:$0xff]  }
 0x155   : > { %2227 = vmatmul.mubr.msk.bf16.vlgmr.msra.gmra.mrb[0].mxu0 %vm288_vm0, %v349_v48  ;;  %v433_v48 = vrot.slane %v2643_v55, 1  ;;  %2110 = vmatprep.subr.bf16.mxu1 %v2559_v49  ;;  %v2573_v49 = vld [vmem:[%s3608_s5 + $0x60] sm:$0xff]  }
 0x228   : > { %v2228_v51 = vpop.f32.mrb[0].mxu0 }
 0x229   : > { %v2730_v52 = vadd.f32 %v2228_v51, %v1928_v50  ;;  %v413_v53 = vpop.f32.mrb[1].mxu0 }
 0x22a   : > { %v2229_v54 = vpop.f32.mrb[2].mxu0  ;;  %v2738_v59 = vadd.f32 %v1928_v50, %v413_v53 }
 0x22b   : > { %v2736_v58 = vsel %vm427_vm2, %v2730_v52, 0.0  ;;  %v416_v60 = vpop.f32.mrb[3].mxu0 }
 0x22c   : > { %v2740_v61 = vadd.f32 %v1928_v50, %v416_v60  ;;  %v2743_v62 = vrot.slane %v2736_v58, 1  ;;  %v513_v63 = vrot.slane %v2736_v58, 6  ;;  %v530_v0 = vrot.slane %v2736_v58, 7  ;;  %v2560_v50 = vld [vmem:[%s3608_s5] sm:$0xff]   ;;  %v2561_v60 = vld [vmem:[%s3608_s5 + $0x48] sm:$0xff]  }
 0x22d   : > { %v526_v6 = vrot.slane %v2738_v59, 7  ;;  %v2784_v15 = vrot.slane %v2736_v58, 2  ;;  %v509_v16 = vrot.slane %v2738_v59, 6  ;;  %v2804_v23 = vrot.slane %v2736_v58, 3  ;;  %2111 = vmatpush3.bf16.msra.mxu1 %v2560_v50 }
 0x22e   : > { %v2262_v1 = vpack.i.bf16 %v2743_v62, %v2736_v58  ;;  %v2247_v2 = vpack.i.bf16 %v2740_v61, %v2738_v59  ;;  %v2752_v3 = vsel %vm507_vm3, %v513_v63, %v508_v56  ;;  %v2755_v4 = vsel %vm524_vm4, %v530_v0, %v525_v57  ;;  %2112 = vmatprep.subr.bf16.mxu1 %v2561_v60 }
 0x22f   : > { %v2272_v5 = vpack.i.bf16 %v2755_v4, %v2752_v3  ;;  %v2277_v7 = vpack.i.bf16 %v2738_v59, %v2752_v3  ;;  %v2257_v8 = vpack.i.bf16 %v2643_v55, %v2740_v61  ;;  %v527_v9 = vsel %vm524_vm4, %v525_v57, %v526_v6 }
 0x230   : > { %2263 = vrot.lane.b32.xlu0 %v2262_v1, %s2644_s17  ;;  %2248 = vrot.lane.b32.xlu1 %v2247_v2, %s2645_s18  ;;  %v2267_v10 = vpack.i.bf16 %v2755_v4, %v2736_v58  ;;  %v2282_v11 = vpack.i.bf16 %v2736_v58, %v527_v9  ;;  %v2775_v12 = vrot.slane %v2740_v61, 1  ;;  %v2778_v13 = vrot.slane %v2740_v61, 2 }
 0x231   : > { %v528_v14 = vrot.slane %v2740_v61, 7  ;;  %v511_v17 = vrot.slane %v2740_v61, 6  ;;  %v2793_v20 = vrot.slane %v2740_v61, 3  ;;  %v2810_v25 = vrot.slane %v2740_v61, 4 }
 0x232   : > { %v2287_v18 = vpack.i.bf16 %v2775_v12, %v2743_v62  ;;  %v2292_v19 = vpack.i.bf16 %v2778_v13, %v2784_v15  ;;  %v510_v27 = vsel %vm507_vm3, %v508_v56, %v509_v16  ;;  %v565_v31 = vrot.slane %v2736_v58, 4 }
 0x233   : > { %v2796_v21 = vsel %vm507_vm3, %v509_v16, %v511_v17  ;;  %v2799_v22 = vsel %vm524_vm4, %v528_v14, %v530_v0  ;;  %v514_v26 = vsel %vm507_vm3, %v511_v17, %v513_v63  ;;  %v2297_v28 = vpack.i.bf16 %v2793_v20, %v2804_v23  ;;  %v2562_v63 = vld [vmem:[%s3608_s5 + $0x8] sm:$0xff]   ;;  %v2563_v0 = vld [vmem:[%s3608_s5 + $0xc0] sm:$0xff]  }
 0x234   : > { %2273 = vrot.lane.b32.xlu0 %v2272_v5, %s2644_s17  ;;  %2253 = vrot.lane.b32.xlu1 %v2247_v2, %s2644_s17  ;;  %v2807_v24 = vpack.i.bf16 %v527_v9, %v2799_v22  ;;  %v2817_v29 = vpack.i.bf16 %v514_v26, %v2796_v21  ;;  %v2819_v30 = vpack.i.bf16 %v510_v27, %v514_v26  ;;  %v2823_v32 = vrot.slane %v2740_v61, 5  ;;  %v2565_v9 = vld [vmem:[%s3608_s5 + $0x50] sm:$0xff]   ;;  %v2567_v16 = vld [vmem:[%s3608_s5 + $0xc8] sm:$0xff]  }
 0x235   : > { %v2826_v33 = vsel %vm524_vm4, %v526_v6, %v528_v14  ;;  %v2307_v34 = vpack.i.bf16 %v2810_v25, %v565_v31  ;;  %v573_v35 = vrot.slane %v2736_v58, 5  ;;  %v434_v39 = vrot.slane %v2738_v59, 1  ;;  %2138 = vmatprep.subr.bf16.mxu0 %v2563_v0  ;;  %2113 = vmatpush3.bf16.msra.mxu1 %v2562_v63  ;;  %v2569_v26 = vld [vmem:[%s3608_s5 + $0x58] sm:$0xff]  }
 0x236   : > { %v2537_v36 = vpack.i.bf16 %v2799_v22, %v2826_v33  ;;  %v2837_v37 = vpack.i.bf16 %v2826_v33, %v510_v27  ;;  %v2862_v41 = vsel %vm432_vm5, %v2775_v12, %v2743_v62  ;;  %v449_v43 = vrot.slane %v2738_v59, 2  ;;  %2114 = vmatprep.subr.bf16.mxu1 %v2565_v9  ;;  %v2570_v27 = vld [vmem:[%s3608_s5 + $0x18] sm:$0xff]   ;;  %v2579_v9 = vld [vmem:[%s3608_s5 + $0xe0] sm:$0xff]  }
 0x237   : > { %v2842_v38 = vpack.i.bf16 %v2823_v32, %v573_v35  ;;  %v2857_v40 = vsel %vm432_vm5, %v434_v39, %v2775_v12  ;;  %v464_v44 = vrot.slane %v2738_v59, 3  ;;  %v2901_v54 = vsel %vm432_vm5, %v433_v48, %v434_v39  ;;  %v2571_v39 = vld [vmem:[%s3608_s5 + $0xd0] sm:$0xff]   ;;  %v2576_v0 = vld [vmem:[%s3608_s5 + $0x98] sm:$0xff]  }
 0x238   : > { %2278 = vrot.lane.b32.xlu0 %v2277_v7, %s2646_s19  ;;  %2258 = vrot.lane.b32.xlu1 %v2257_v8, %s2646_s19  ;;  %v2873_v45 = vpack.i.bf16 %v2862_v41, %v2857_v40  ;;  %v2883_v47 = vsel %vm447_vm6, %v448_v42, %v449_v43  ;;  %v2896_v53 = vsel %vm447_vm6, %v449_v43, %v2778_v13  ;;  %v463_v56 = vrot.slane %v2643_v55, 3  ;;  %v2564_v8 = vld [vmem:[%s3608_s5 + $0x80] sm:$0xff]   ;;  %v2572_v48 = vld [vmem:[%s3608_s5 + $0x90] sm:$0xff]  }
 0x239   : > { %v2877_v46 = vsel %vm462_vm7, %v464_v44, %v2793_v20  ;;  %v479_v57 = vrot.slane %v2738_v59, 4  ;;  %v2387_v1 = vpack.i.bf16 %v2826_v33, %v2643_v55  ;;  %v2918_v2 = vpack.i.bf16 %v2896_v53, %v2901_v54  ;;  %2139 = vmatpush3.bf16.msra.mxu0 %v2564_v8 }
 0x23a   : > { %v2377_v51 = vpack.i.bf16 %v2877_v46, %v2883_v47  ;;  %v2927_v6 = vsel %vm447_vm6, %v2778_v13, %v2784_v15  ;;  %v2933_v7 = vsel %vm462_vm7, %v463_v56, %v464_v44  ;;  %v2955_v17 = vsel %vm462_vm7, %v2793_v20, %v2804_v23  ;;  %2140 = vmatprep.subr.bf16.mxu0 %v2567_v16 }
 0x23b   : > { %v482_v5 = vsel %vm477_vm8, %v479_v57, %v2810_v25  ;;  %v2372_v14 = vpack.i.bf16 %v2927_v6, %v2896_v53  ;;  %v574_v43 = vsel %vm427_vm2, %v2823_v32, %v573_v35  ;;  %v492_v44 = vrot.slane %v2643_v55, 5 }
 0x23c   : > { %2268 = vrot.lane.b32.xlu1 %v2267_v10, %s2645_s18  ;;  %2283 = vrot.lane.b32.xlu0 %v2282_v11, %s2646_s19  ;;  %v2566_v10 = vld [vmem:[%s3608_s5 + $0x10] sm:$0xff]   ;;  %v2945_v11 = vpack.i.bf16 %v482_v5, %v2933_v7  ;;  %v3002_v50 = vpack.i.bf16 %v2883_v47, %v2927_v6  ;;  %v566_v56 = vsel %vm477_vm8, %v2810_v25, %v565_v31  ;;  %v478_v63 = vrot.slane %v2643_v55, 4  ;;  %v2577_v25 = vld [vmem:[%s3608_s5 + $0x68] sm:$0xff]  }
 0x23d   : > { %2115 = vmatpush3.bf16.msra.mxu1 %v2566_v10  ;;  %v2578_v31 = vld [vmem:[%s3608_s5 + $0x28] sm:$0xff]   ;;  %v2402_v8 = vpack.i.bf16 %v566_v56, %v482_v5  ;;  %v2581_v5 = vld [vmem:[%s3608_s5 + $0x70] sm:$0xff]  }
 0x23e   : > { %2116 = vmatprep.subr.bf16.mxu1 %v2569_v26  ;;  %v480_v10 = vsel %vm477_vm8, %v478_v63, %v479_v57  ;;  %v2583_v57 = vld [vmem:[%s3608_s5 + $0xe8] sm:$0xff]   ;;  %v2585_v26 = vld [vmem:[%s3608_s5 + $0x78] sm:$0xff]  }
 0x240   : > { %2288 = vrot.lane.b32.xlu1 %v2287_v18, %s2647_s20  ;;  %2293 = vrot.lane.b32.xlu0 %v2292_v19, %s2648_s21 }
 0x241   : > { %2117 = vmatpush3.bf16.msra.mxu1 %v2570_v27  ;;  %v2422_v27 = vpack.i.bf16 %v480_v10, %v566_v56 }
 0x242   : > { %2118 = vmatprep.subr.bf16.mxu1 %v2573_v49  ;;  %v2596_v49 = vld [vmem:[%s3608_s5 + $0x1c0] sm:$0xff]  }
 0x244   : > { %2303 = vrot.lane.b32.xlu1 %v2292_v19, %s2647_s20  ;;  %2298 = vrot.lane.b32.xlu0 %v2297_v28, %s2649_s22 }
 0x248   : > { %2313 = vrot.lane.b32.xlu1 %v2297_v28, %s2648_s21  ;;  %2308 = vrot.lane.b32.xlu0 %v2307_v34, %s2650_s23 }
 0x24c   : > { %2323 = vrot.lane.b32.xlu1 %v2307_v34, %s2649_s22  ;;  %2318 = vrot.lane.b32.xlu0 %v2842_v38, %s2646_s19 }
 0x250   : > { %2328 = vrot.lane.b32.xlu1 %v2842_v38, %s2650_s23  ;;  %2338 = vrot.lane.b32.xlu0 %v2297_v28, %s2647_s20  ;;  %v2407_v28 = vpack.i.bf16 %v2933_v7, %v2955_v17 }
 0x254   : > { %2333 = vrot.lane.b32.xlu1 %v2287_v18, %s2645_s18  ;;  %2343 = vrot.lane.b32.xlu0 %v2292_v19, %s2645_s18  ;;  %v493_v18 = vrot.slane %v2738_v59, 5  ;;  %v2568_v19 = vld [vmem:[%s3608_s5 + $0x88] sm:$0xff]  }
 0x255   : > { %2141 = vmatpush3.bf16.msra.mxu0 %v2568_v19  ;;  %v2584_v19 = vld [vmem:[%s3608_s5 + $0xa8] sm:$0xff]  }
 0x256   : > { %v496_v42 = vsel %vm427_vm2, %v493_v18, %v2823_v32  ;;  %2142 = vmatprep.subr.bf16.mxu0 %v2571_v39  ;;  %v2574_v32 = vld [vmem:[%s3608_s5 + $0x20] sm:$0xff]   ;;  %v494_v60 = vsel %vm427_vm2, %v492_v44, %v493_v18  ;;  %v2587_v39 = vld [vmem:[%s3608_s5 + $0xf0] sm:$0xff]   ;;  %v2590_v44 = vld [vmem:[%s3608_s5 + $0xf8] sm:$0xff]  }
 0x257   : > { %v2998_v35 = vpack.i.bf16 %v574_v43, %v496_v42  ;;  %2119 = vmatpush3.bf16.msra.mxu1 %v2574_v32  ;;  %v2437_v16 = vpack.i.bf16 %v494_v60, %v574_v43  ;;  %v2412_v18 = vpack.i.bf16 %v496_v42, %v480_v10  ;;  %v2588_v42 = vld [vmem:[%s3608_s5 + $0xb0] sm:$0xff]   ;;  %v2589_v43 = vld [vmem:[%s3608_s5 + $0x140] sm:$0xff]   ;;  %v2477_v32 = vpack.i.bf16 %v2901_v54, %v2862_v41 }
 0x258   : > { %1457 = vrot.lane.b32.xlu1 %v2775_v12, %s2644_s17  ;;  %2353 = vrot.lane.b32.xlu0 %v2842_v38, %s2649_s22 }
 0x259   : > { %2143 = vmatpush3.bf16.msra.mxu0 %v2572_v48  ;;  %2120 = vmatprep.subr.bf16.mxu1 %v2577_v25  ;;  %v2592_v48 = vld [vmem:[%s3608_s5 + $0xb8] sm:$0xff]  }
 0x25b   : > { %2121 = vmatpush3.bf16.msra.mxu1 %v2578_v31 }
 0x25c   : > { %2348 = vrot.lane.b32.xlu1 %v2307_v34, %s2648_s21  ;;  %2363 = vrot.lane.b32.xlu0 %v2873_v45, %s2647_s20 }
 0x25d   : > { %2122 = vmatprep.subr.bf16.mxu1 %v2581_v5 }
 0x260   : > { %2358 = vrot.lane.b32.xlu1 %v2307_v34, %s2647_s20  ;;  %2378 = vrot.lane.b32.xlu0 %v2377_v51, %s2648_s21  ;;  %v2974_v34 = vpack.i.bf16 %v2955_v17, %v2877_v46  ;;  %v2575_v51 = vld [vmem:[%s3608_s5 + $0xd8] sm:$0xff]  }
 0x261   : > { %2144 = vmatprep.subr.bf16.mxu0 %v2575_v51 }
 0x262   : > { %2145 = vmatpush3.bf16.msra.mxu0 %v2576_v0 }
 0x263   : > { %2146 = vmatprep.subr.bf16.mxu0 %v2579_v9 }
 0x264   : > { %2388 = vrot.lane.b32.xlu0 %v2387_v1, %s2645_s18  ;;  %2368 = vrot.lane.b32.xlu1 %v2918_v2, %s2647_s20  ;;  %v2427_v1 = vpack.i.bf16 %v2796_v21, %v494_v60  ;;  %v2580_v21 = vld [vmem:[%s3608_s5 + $0xa0] sm:$0xff]  }
 0x266   : > { %2147 = vmatpush3.bf16.msra.mxu0 %v2580_v21 }
 0x267   : > { %2148 = vmatprep.subr.bf16.mxu0 %v2583_v57 }
 0x268   : > { %2398 = vrot.lane.b32.xlu0 %v2945_v11, %s2649_s22  ;;  %2373 = vrot.lane.b32.xlu1 %v2372_v14, %s2648_s21  ;;  %v2582_v14 = vld [vmem:[%s3608_s5 + $0x30] sm:$0xff]  }
 0x269   : > { %2123 = vmatpush3.bf16.msra.mxu1 %v2582_v14 }
 0x26a   : > { %2149 = vmatpush3.bf16.msra.mxu0 %v2584_v19  ;;  %2124 = vmatprep.subr.bf16.mxu1 %v2585_v26 }
 0x26b   : > { %2150 = vmatprep.subr.bf16.mxu0 %v2587_v39 }
 0x26c   : > { %2408 = vrot.lane.b32.xlu0 %v2407_v28, %s2648_s21  ;;  %2383 = vrot.lane.b32.xlu1 %v2974_v34, %s2649_s22  ;;  %v2586_v28 = vld [vmem:[%s3608_s5 + $0x38] sm:$0xff]  }
 0x26d   : > { %2125 = vmatpush3.bf16.msra.mxu1 %v2586_v28 }
 0x26e   : > { %2151 = vmatpush3.bf16.msra.mxu0 %v2588_v42  ;;  %2166 = vmatprep.subr.bf16.mxu1 %v2589_v43 }
 0x26f   : > { %2152 = vmatprep.subr.bf16.mxu0 %v2590_v44 }
 0x270   : > { %2418 = vrot.lane.b32.xlu0 %v2998_v35, %s2646_s19  ;;  %2393 = vrot.lane.b32.xlu1 %v3002_v50, %s2647_s20 }
 0x272   : > { %2153 = vmatpush3.bf16.msra.mxu0 %v2592_v48 }
 0x273   : > { %2194 = vmatprep.subr.bf16.mxu0 %v2596_v49 }
 0x274   : > { %2428 = vrot.lane.b32.xlu0 %v2427_v1, %s2646_s19  ;;  %2403 = vrot.lane.b32.xlu1 %v2402_v8, %s2650_s23 }
 0x278   : > { %2438 = vrot.lane.b32.xlu0 %v2437_v16, %s2650_s23  ;;  %2413 = vrot.lane.b32.xlu1 %v2412_v18, %s2650_s23 }
 0x27c   : > { %2448 = vrot.lane.b32.xlu0 %v2807_v24, %s2645_s18  ;;  %2423 = vrot.lane.b32.xlu1 %v2422_v27, %s2649_s22 }
 0x280   : > { %2458 = vrot.lane.b32.xlu0 %v2807_v24, %s2644_s17  ;;  %2433 = vrot.lane.b32.xlu1 %v2817_v29, %s2644_s17 }
 0x284   : > { %2463 = vrot.lane.b32.xlu0 %v2873_v45, %s2645_s18  ;;  %2443 = vrot.lane.b32.xlu1 %v2837_v37, %s2644_s17  ;;  %v2467_v45 = vpack.i.bf16 %v2857_v40, %v2643_v55 }
 0x288   : > { %2473 = vrot.lane.b32.xlu0 %v2918_v2, %s2645_s18  ;;  %2453 = vrot.lane.b32.xlu1 %v2819_v30, %s2646_s19 }
 0x28c   : > { %2478 = vrot.lane.b32.xlu0 %v2477_v32, %s2644_s17  ;;  %2468 = vrot.lane.b32.xlu1 %v2467_v45, %s2644_s17 }
 0x290   : > { %2488 = vrot.lane.b32.xlu0 %v3002_v50, %s2645_s18  ;;  %2483 = vrot.lane.b32.xlu1 %v2974_v34, %s2647_s20 }
 0x294   : > { %2498 = vrot.lane.b32.xlu0 %v2402_v8, %s2648_s21  ;;  %2493 = vrot.lane.b32.xlu1 %v2945_v11, %s2647_s20 }
 0x298   : > { %2508 = vrot.lane.b32.xlu0 %v2998_v35, %s2649_s22  ;;  %2503 = vrot.lane.b32.xlu1 %v2412_v18, %s2648_s21 }
 0x29c   : > { %2518 = vrot.lane.b32.xlu0 %v2427_v1, %s2649_s22  ;;  %2513 = vrot.lane.b32.xlu1 %v2422_v27, %s2647_s20 }
 0x2a0   : > { %2528 = vrot.lane.b32.xlu0 %v2437_v16, %s2648_s21  ;;  %2523 = vrot.lane.b32.xlu1 %v2817_v29, %s2650_s23 }
 0x2a2   : > { %v3112_v55 = vpop.permute.xlu0 %2263  ;;  %v3114_v2 = vpop.permute.xlu1 %2248 }
 0x2a3   : > { %v2251_v0 = vunpack.i.h.bf16 %v3114_v2 }
 0x2a4   : > { %2538 = vrot.lane.b32.xlu0 %v2537_v36, %s2646_s19  ;;  %2533 = vrot.lane.b32.xlu1 %v2837_v37, %s2650_s23  ;;  %v2266_v36 = vunpack.i.h.bf16 %v3112_v55 }
 0x2a6   : > { %v3122_v11 = vpop.permute.xlu0 %2273  ;;  %v3124_v34 = vpop.permute.xlu1 %2253 }
 0x2a8   : > { %1222 = vrot.lane.b32.xlu0 %v2752_v3, %s2650_s23  ;;  %2543 = vrot.lane.b32.xlu1 %v2819_v30, %s2649_s22 }
 0x2aa   : > { %v3130_v29 = vpop.permute.xlu0 %2278  ;;  %v3132_v35 = vpop.permute.xlu1 %2258 }
 0x2ac   : > { %1225 = vrot.lane.b32.xlu0 %v2755_v4, %s2646_s19  ;;  %2548 = vrot.lane.b32.xlu1 %v2807_v24, %s2650_s23 }
 0x2ae   : > { %v3138_v22 = vpop.permute.xlu1 %2268  ;;  %v3140_v33 = vpop.permute.xlu0 %2283 }
 0x2af   : > { %v2286_v37 = vunpack.i.h.bf16 %v3140_v33  ;;  %v2270_v25 = vunpack.i.l.bf16 %v3138_v22 }
 0x2b0   : > { %1542 = vrot.lane.b32.xlu0 %v2755_v4, %s2650_s23  ;;  %2553 = vrot.lane.b32.xlu1 %v2842_v38, %s2648_s21 }
 0x2b1   : > { %v3149_v30 = vsel %vm589_vm9, %v2286_v37, %v2266_v36  ;;  %v933_v14 = vsel %vm589_vm9, %v2270_v25, %v2743_v62  ;;  %v2275_v37 = vunpack.i.l.bf16 %v3122_v11 }
 0x2b2   : > { %v2289_v50 = vpop.permute.xlu1 %2288  ;;  %v2294_v24 = vpop.permute.xlu0 %2293 }
 0x2b3   : > { %v2291_v51 = vunpack.i.h.bf16 %v2289_v50  ;;  %v2290_v56 = vunpack.i.l.bf16 %v2289_v50  ;;  %v2296_v60 = vunpack.i.h.bf16 %v2294_v24  ;;  %v2295_v63 = vunpack.i.l.bf16 %v2294_v24 }
 0x2b4   : > { %1539 = vrot.lane.b32.xlu1 %v2752_v3, %s2649_s22  ;;  %v913_v3 = vsel %vm589_vm9, %v2251_v0, %v2775_v12 }
 0x2b5   : > { %v592_v4 = vsel %vm589_vm9, %v2740_v61, %v2291_v51  ;;  %v617_v38 = vsel %vm589_vm9, %v2736_v58, %v2290_v56 }
 0x2b6   : > { %v595_v31 = vsel %vm288_vm0, %v592_v4, %v2296_v60  ;;  %v619_v1 = vsel %vm288_vm0, %v617_v38, %v2295_v63  ;;  %v2304_v8 = vpop.permute.xlu1 %2303  ;;  %v2299_v9 = vpop.permute.xlu0 %2298  ;;  %v2271_v63 = vunpack.i.h.bf16 %v3138_v22  ;;  %v2265_v22 = vunpack.i.l.bf16 %v3112_v55 }
 0x2b7   : > { %v2306_v10 = vunpack.i.h.bf16 %v2304_v8  ;;  %v2305_v21 = vunpack.i.l.bf16 %v2304_v8  ;;  %v2301_v5 = vunpack.i.h.bf16 %v2299_v9  ;;  %v2300_v26 = vunpack.i.l.bf16 %v2299_v9 }
 0x2b8   : > { %v2280_v8 = vunpack.i.l.bf16 %v3130_v29 }
 0x2b9   : > { %v916_v58 = vsel %vm288_vm0, %v913_v3, %v2306_v10  ;;  %v935_v16 = vsel %vm288_vm0, %v933_v14, %v2305_v21  ;;  %v599_v18 = vsel %vm596_vm10, %v595_v31, %v2301_v5  ;;  %v621_v49 = vsel %vm596_vm10, %v619_v1, %v2300_v26 }
 0x2ba   : > { %v2314_v57 = vpop.permute.xlu1 %2313  ;;  %v2309_v19 = vpop.permute.xlu0 %2308  ;;  %v2276_v3 = vunpack.i.h.bf16 %v3122_v11 }
 0x2bb   : > { %v2316_v27 = vunpack.i.h.bf16 %v2314_v57  ;;  %v2315_v28 = vunpack.i.l.bf16 %v2314_v57  ;;  %v2311_v39 = vunpack.i.h.bf16 %v2309_v19  ;;  %v2310_v42 = vunpack.i.l.bf16 %v2309_v19 }
 0x2bd   : > { %v919_v43 = vsel %vm596_vm10, %v916_v58, %v2316_v27  ;;  %v937_v12 = vsel %vm596_vm10, %v935_v16, %v2315_v28  ;;  %v603_v62 = vsel %vm600_vm11, %v599_v18, %v2311_v39  ;;  %v623_v50 = vsel %vm600_vm11, %v621_v49, %v2310_v42 }
 0x2be   : > { %v2324_v44 = vpop.permute.xlu1 %2323  ;;  %v2319_v48 = vpop.permute.xlu0 %2318  ;;  %v2256_v18 = vunpack.i.h.bf16 %v3124_v34  ;;  %v2260_v27 = vunpack.i.l.bf16 %v3132_v35 }
 0x2bf   : > { %v2326_v32 = vunpack.i.h.bf16 %v2324_v44  ;;  %v2321_v45 = vunpack.i.h.bf16 %v2319_v48  ;;  %v2320_v36 = vunpack.i.l.bf16 %v2319_v48  ;;  %v2325_v24 = vunpack.i.l.bf16 %v2324_v44 }
 0x2c1   : > { %v922_v51 = vsel %vm600_vm11, %v919_v43, %v2326_v32  ;;  %v3178_v56 = vsel %vm604_vm12, %v603_v62, %v2321_v45  ;;  %v625_v60 = vsel %vm604_vm12, %v623_v50, %v2320_v36  ;;  %v939_v9 = vsel %vm600_vm11, %v937_v12, %v2325_v24 }
 0x2c2   : > { %v2329_v25 = vpop.permute.xlu1 %2328  ;;  %v2339_v4 = vpop.permute.xlu0 %2338  ;;  %v627_v38 = vsel %vm608_vm13, %v625_v60, %v2275_v37 }
 0x2c3   : > { %v2331_v31 = vunpack.i.h.bf16 %v2329_v25  ;;  %v2330_v1 = vunpack.i.l.bf16 %v2329_v25  ;;  %v3186_v10 = vsel %vm612_vm14, %v627_v38, %v2271_v63  ;;  %v2341_v39 = vunpack.i.h.bf16 %v2339_v4 }
 0x2c4   : > { %v2340_v43 = vunpack.i.l.bf16 %v2339_v4 }
 0x2c5   : > { %v3189_v21 = vsel %vm604_vm12, %v922_v51, %v2331_v31  ;;  %v941_v5 = vsel %vm604_vm12, %v939_v9, %v2330_v1 }
 0x2c6   : > { %v2334_v14 = vpop.permute.xlu1 %2333  ;;  %v2344_v58 = vpop.permute.xlu0 %2343  ;;  %v943_v16 = vsel %vm608_vm13, %v941_v5, %v2280_v8 }
 0x2c7   : > { %v2336_v57 = vunpack.i.h.bf16 %v2334_v14  ;;  %v2335_v19 = vunpack.i.l.bf16 %v2334_v14  ;;  %v2345_v26 = vunpack.i.l.bf16 %v2344_v58  ;;  %v3198_v28 = vsel %vm612_vm14, %v943_v16, %v2276_v3 }
 0x2c8   : > { %v2346_v44 = vunpack.i.h.bf16 %v2344_v58 }
 0x2c9   : > { %v1230_v55 = vsel %vm589_vm9, %v2256_v18, %v2336_v57  ;;  %v1250_v11 = vsel %vm589_vm9, %v2265_v22, %v2335_v19  ;;  %v1569_v42 = vsel %vm288_vm0, %v3149_v30, %v2345_v26 }
 0x2ca   : > { %v1233_v12 = vsel %vm288_vm0, %v1230_v55, %v2778_v13  ;;  %v1252_v62 = vsel %vm288_vm0, %v1250_v11, %v2784_v15  ;;  %v1458_v48 = vpop.permute.xlu1 %1457  ;;  %v2354_v49 = vpop.permute.xlu0 %2353  ;;  %v1571_v5 = vsel %vm596_vm10, %v1569_v42, %v2804_v23  ;;  %v2250_v11 = vunpack.i.l.bf16 %v3114_v2 }
 0x2cb   : > { %v1547_v32 = vsel %vm589_vm9, %v2260_v27, %v1458_v48  ;;  %v1236_v45 = vsel %vm596_vm10, %v1233_v12, %v2341_v39  ;;  %v1254_v30 = vsel %vm596_vm10, %v1252_v62, %v2340_v43  ;;  %v2356_v51 = vunpack.i.h.bf16 %v2354_v49 }
 0x2cc   : > { %v1550_v36 = vsel %vm288_vm0, %v1547_v32, %v2346_v44  ;;  %v2355_v60 = vunpack.i.l.bf16 %v2354_v49  ;;  %v932_v12 = vsel %vm589_vm9, %v2251_v0, %v2862_v41  ;;  %v912_v49 = vsel %vm589_vm9, %v2250_v11, %v2857_v40 }
 0x2cd   : > { %v1553_v9 = vsel %vm596_vm10, %v1550_v36, %v2793_v20  ;;  %v633_v2 = vpack.c.bf16 %v3186_v10, %v3186_v10 }
 0x2ce   : > { %v2349_v37 = vpop.permute.xlu1 %2348  ;;  %v2364_v50 = vpop.permute.xlu0 %2363 }
 0x2cf   : > { %v2351_v24 = vunpack.i.h.bf16 %v2349_v37  ;;  %v2350_v13 = vunpack.i.l.bf16 %v2349_v37  ;;  %v2366_v42 = vunpack.i.h.bf16 %v2364_v50  ;;  %v2365_v43 = vunpack.i.l.bf16 %v2364_v50 }
 0x2d1   : > { %v1239_v15 = vsel %vm600_vm11, %v1236_v45, %v2351_v24  ;;  %v1256_v63 = vsel %vm600_vm11, %v1254_v30, %v2350_v13  ;;  %v616_v41 = vsel %vm589_vm9, %v2740_v61, %v2366_v42  ;;  %v591_v0 = vsel %vm589_vm9, %v2738_v59, %v2365_v43 }
 0x2d2   : > { %v2359_v25 = vpop.permute.xlu1 %2358  ;;  %v3218_v4 = vpop.permute.xlu0 %2378  ;;  %v3221_v38 = vsel %vm604_vm12, %v1239_v15, %v2356_v51  ;;  %v3224_v31 = vsel %vm604_vm12, %v1256_v63, %v2355_v60 }
 0x2d3   : > { %v2361_v1 = vunpack.i.h.bf16 %v2359_v25  ;;  %v2360_v8 = vunpack.i.l.bf16 %v2359_v25  ;;  %v2380_v40 = vunpack.i.l.bf16 %v3218_v4 }
 0x2d5   : > { %v3231_v22 = vsel %vm600_vm11, %v1553_v9, %v2361_v1  ;;  %v3234_v3 = vsel %vm600_vm11, %v1571_v5, %v2360_v8 }
 0x2d6   : > { %v3236_v14 = vpop.permute.xlu0 %2388  ;;  %v2369_v58 = vpop.permute.xlu1 %2368 }
 0x2d7   : > { %v2370_v62 = vunpack.i.l.bf16 %v2369_v58  ;;  %v2390_v32 = vunpack.i.l.bf16 %v3236_v14  ;;  %v2371_v30 = vunpack.i.h.bf16 %v2369_v58  ;;  %v2391_v51 = vunpack.i.h.bf16 %v3236_v14 }
 0x2d9   : > { %v590_v60 = vsel %vm589_vm9, 0.0, %v2370_v62  ;;  %v911_v1 = vsel %vm589_vm9, %v2390_v32, %v2901_v54  ;;  %v915_v58 = vsel %vm288_vm0, %v912_v49, %v2371_v30 }
 0x2da   : > { %v3238_v16 = vpop.permute.xlu0 %2398  ;;  %v2374_v57 = vpop.permute.xlu1 %2373 }
 0x2db   : > { %v2376_v45 = vunpack.i.h.bf16 %v2374_v57  ;;  %v2375_v36 = vunpack.i.l.bf16 %v2374_v57  ;;  %v2400_v15 = vunpack.i.l.bf16 %v3238_v16  ;;  %v2401_v43 = vunpack.i.h.bf16 %v3238_v16 }
 0x2dd   : > { %v618_v8 = vsel %vm288_vm0, %v616_v41, %v2376_v45  ;;  %v594_v9 = vsel %vm288_vm0, %v591_v0, %v2375_v36 }
 0x2de   : > { %v3240_v19 = vpop.permute.xlu0 %2408  ;;  %v2384_v26 = vpop.permute.xlu1 %2383 }
 0x2df   : > { %v2386_v37 = vunpack.i.h.bf16 %v2384_v26  ;;  %v2385_v50 = vunpack.i.l.bf16 %v2384_v26  ;;  %v2411_v30 = vunpack.i.h.bf16 %v3240_v19 }
 0x2e1   : > { %v598_v57 = vsel %vm596_vm10, %v594_v9, %v2385_v50  ;;  %v620_v14 = vsel %vm596_vm10, %v618_v8, %v2386_v37 }
 0x2e2   : > { %v2419_v39 = vpop.permute.xlu0 %2418  ;;  %v2394_v20 = vpop.permute.xlu1 %2393 }
 0x2e3   : > { %v2396_v5 = vunpack.i.h.bf16 %v2394_v20  ;;  %v2395_v26 = vunpack.i.l.bf16 %v2394_v20  ;;  %v2421_v32 = vunpack.i.h.bf16 %v2419_v39  ;;  %v2420_v45 = vunpack.i.l.bf16 %v2419_v39 }
 0x2e5   : > { %v914_v20 = vsel %vm288_vm0, %v911_v1, %v2396_v5  ;;  %v934_v41 = vsel %vm288_vm0, %v932_v12, %v2395_v26 }
 0x2e6   : > { %v3242_v55 = vpop.permute.xlu0 %2428  ;;  %v2404_v23 = vpop.permute.xlu1 %2403 }
 0x2e7   : > { %v2406_v24 = vunpack.i.h.bf16 %v2404_v23  ;;  %v2405_v13 = vunpack.i.l.bf16 %v2404_v23  ;;  %v593_v23 = vsel %vm288_vm0, %v590_v60, %v2380_v40 }
 0x2e8   : > { %v597_v62 = vsel %vm596_vm10, %v593_v23, %v2400_v15  ;;  %v2430_v15 = vunpack.i.l.bf16 %v3242_v55 }
 0x2e9   : > { %v602_v11 = vsel %vm600_vm11, %v598_v57, %v2405_v13  ;;  %v622_v42 = vsel %vm600_vm11, %v620_v14, %v2406_v24  ;;  %v2381_v57 = vunpack.i.h.bf16 %v3218_v4  ;;  %v2410_v14 = vunpack.i.l.bf16 %v3240_v19 }
 0x2ea   : > { %v3249_v44 = vpop.permute.xlu0 %2438  ;;  %v3251_v48 = vpop.permute.xlu1 %2413  ;;  %v606_v24 = vsel %vm604_vm12, %v602_v11, %v2420_v45  ;;  %v624_v16 = vsel %vm604_vm12, %v622_v42, %v2421_v32  ;;  %v917_v42 = vsel %vm596_vm10, %v914_v20, %v2411_v30 }
 0x2eb   : > { %v2415_v54 = vunpack.i.l.bf16 %v3251_v48  ;;  %v2416_v26 = vunpack.i.h.bf16 %v3251_v48  ;;  %v936_v32 = vsel %vm596_vm10, %v934_v41, %v2410_v14  ;;  %v2441_v48 = vunpack.i.h.bf16 %v3249_v44 }
 0x2ec   : > { %v2440_v20 = vunpack.i.l.bf16 %v3249_v44 }
 0x2ed   : > { %v601_v13 = vsel %vm600_vm11, %v597_v62, %v2415_v54  ;;  %v918_v62 = vsel %vm596_vm10, %v915_v58, %v2381_v57  ;;  %v2591_v58 = vld [vmem:[%s3608_s5 + $0x100] sm:$0xff]  }
 0x2ee   : > { %v3266_v63 = vpop.permute.xlu0 %2448  ;;  %v2424_v25 = vpop.permute.xlu1 %2423  ;;  %v921_v19 = vsel %vm600_vm11, %v918_v62, %v2401_v43  ;;  %v949_v62 = vpack.c.bf16 %v3198_v28, %v3198_v28 }
 0x2ef   : > { %v2450_v0 = vunpack.i.l.bf16 %v3266_v63  ;;  %v2426_v39 = vunpack.i.h.bf16 %v2424_v25  ;;  %v2425_v1 = vunpack.i.l.bf16 %v2424_v25  ;;  %v2451_v11 = vunpack.i.h.bf16 %v3266_v63 }
 0x2f0   : > { %v605_v25 = vsel %vm604_vm12, %v601_v13, %v2430_v15 }
 0x2f1   : > { %v938_v45 = vsel %vm600_vm11, %v936_v32, %v2425_v1  ;;  %v2600_v32 = vld [vmem:[%s3608_s5 + $0x1c8] sm:$0xff]  }
 0x2f2   : > { %v3281_v49 = vpop.permute.xlu0 %2458  ;;  %v2434_v36 = vpop.permute.xlu1 %2433  ;;  %v940_v44 = vsel %vm604_vm12, %v938_v45, %v2440_v20  ;;  %v2601_v45 = vld [vmem:[%s3608_s5 + $0x118] sm:$0xff]   ;;  %v2604_v20 = vld [vmem:[%s3608_s5 + $0x1d0] sm:$0xff]  }
 0x2f3   : > { %v2436_v37 = vunpack.i.h.bf16 %v2434_v36  ;;  %v2435_v50 = vunpack.i.l.bf16 %v2434_v36  ;;  %v2460_v1 = vunpack.i.l.bf16 %v3281_v49 }
 0x2f5   : > { %v610_v40 = vsel %vm608_vm13, %v606_v24, %v2435_v50  ;;  %v626_v60 = vsel %vm608_vm13, %v624_v16, %v2436_v37  ;;  %v924_v50 = vsel %vm604_vm12, %v921_v19, %v2416_v26  ;;  %v2593_v24 = vld [vmem:[%s3608_s5 + $0x148] sm:$0xff]   ;;  %v2461_v16 = vunpack.i.h.bf16 %v3281_v49 }
 0x2f6   : > { %v3293_v8 = vpop.permute.xlu0 %2463  ;;  %v2444_v9 = vpop.permute.xlu1 %2443  ;;  %v614_v12 = vsel %vm612_vm14, %v610_v40, %v2391_v51  ;;  %v628_v5 = vsel %vm612_vm14, %v626_v60, %v2450_v0  ;;  %v920_v51 = vsel %vm600_vm11, %v917_v42, %v2426_v39  ;;  %v2431_v60 = vunpack.i.h.bf16 %v3242_v55  ;;  %v2594_v49 = vld [vmem:[%s3608_s5 + $0x108] sm:$0xff]  }
 0x2f7   : > { %v2445_v23 = vunpack.i.l.bf16 %v2444_v9  ;;  %v631_v54 = vpack.c.bf16 %v628_v5, %v614_v12  ;;  %v2446_v13 = vunpack.i.h.bf16 %v2444_v9  ;;  %v923_v40 = vsel %vm604_vm12, %v920_v51, %v2441_v48  ;;  %v2599_v51 = vld [vmem:[%s3608_s5 + $0x158] sm:$0xff]  }
 0x2f8   : > { %v927_v14 = vsel %vm608_vm13, %v924_v50, %v2431_v60  ;;  %v2465_v28 = vunpack.i.l.bf16 %v3293_v8  ;;  %v2255_v50 = vunpack.i.l.bf16 %v3124_v34 }
 0x2f9   : > { %v609_v4 = vsel %vm608_vm13, %v605_v25, %v2445_v23  ;;  %794 = vmatprep.mubr.bf16.mxu1 %v631_v54  ;;  %v2597_v25 = vld [vmem:[%s3608_s5 + $0x110] sm:$0xff]   ;;  %v2598_v54 = vld [vmem:[%s3608_s5 + $0x180] sm:$0xff]  }
 0x2fa   : > { %v613_v63 = vsel %vm612_vm14, %v609_v4, %v2451_v11  ;;  %v3311_v36 = vpop.permute.xlu0 %2473  ;;  %v2454_v30 = vpop.permute.xlu1 %2453 }
 0x2fb   : > { %v630_v41 = vpack.c.bf16 %v614_v12, %v613_v63  ;;  %v2456_v43 = vunpack.i.h.bf16 %v2454_v30  ;;  %v2455_v39 = vunpack.i.l.bf16 %v2454_v30  ;;  %v611_v12 = vsel %vm608_vm13, %v3178_v56, %v2436_v37  ;;  %v2595_v56 = vld [vmem:[%s3608_s5 + $0x150] sm:$0xff]   ;;  %v2602_v63 = vld [vmem:[%s3608_s5 + $0x188] sm:$0xff]  }
 0x2fc   : > { %v930_v37 = vsel %vm612_vm14, %v927_v14, %v2446_v13  ;;  %v2605_v13 = vld [vmem:[%s3608_s5 + $0x120] sm:$0xff]  }
 0x2fd   : > { %v926_v15 = vsel %vm608_vm13, %v923_v40, %v2456_v43  ;;  %795 = vmatmul.mubr.bf16.vlgmr.msra.gmra.mrb[0].mxu1 %v630_v41  ;;  %v942_v5 = vsel %vm608_vm13, %v940_v44, %v2455_v39  ;;  %v928_v4 = vsel %vm608_vm13, %v3189_v21, %v2455_v39  ;;  %v2466_v21 = vunpack.i.h.bf16 %v3293_v8  ;;  %v2606_v39 = vld [vmem:[%s3608_s5 + $0x190] sm:$0xff]   ;;  %v2607_v44 = vld [vmem:[%s3608_s5 + $0x168] sm:$0xff]  }
 0x2fe   : > { %v3330_v57 = vpop.permute.xlu0 %2478  ;;  %v3332_v9 = vpop.permute.xlu1 %2468  ;;  %802 = vmatprep.mubr.bf16.mxu1 %v633_v2  ;;  %2167 = vmatpush3.bf16.msra.mxu1 %v2591_v58  ;;  %v929_v55 = vsel %vm612_vm14, %v926_v15, %v2461_v16  ;;  %v944_v26 = vsel %vm612_vm14, %v942_v5, %v2460_v1  ;;  %v615_v2 = vsel %vm612_vm14, %v611_v12, %v2450_v0  ;;  %v2603_v58 = vld [vmem:[%s3608_s5 + $0x160] sm:$0xff]   ;;  %v2281_v12 = vunpack.i.h.bf16 %v3130_v29 }
 0x2ff   : > { %2168 = vmatprep.subr.bf16.mxu1 %v2593_v24  ;;  %v946_v10 = vpack.c.bf16 %v930_v37, %v929_v55  ;;  %v947_v23 = vpack.c.bf16 %v944_v26, %v930_v37  ;;  %v632_v0 = vpack.c.bf16 %v615_v2, %v615_v2  ;;  %v931_v30 = vsel %vm612_vm14, %v928_v4, %v2460_v1  ;;  %v2608_v1 = vld [vmem:[%s3608_s5 + $0x1d8] sm:$0xff]   ;;  %v2609_v26 = vld [vmem:[%s3608_s5 + $0x128] sm:$0xff]  }
 0x300   : > { %v1229_v8 = vsel %vm589_vm9, %v2255_v50, %v2465_v28  ;;  %v2471_v24 = vunpack.i.h.bf16 %v3332_v9  ;;  %v948_v16 = vpack.c.bf16 %v931_v30, %v931_v30  ;;  %v1249_v40 = vsel %vm589_vm9, %v2256_v18, %v2466_v21  ;;  %v2613_v21 = vld [vmem:[%s3608_s5 + $0x130] sm:$0xff]   ;;  %v2614_v30 = vld [vmem:[%s3608_s5 + $0x1a0] sm:$0xff]  }
 0x301   : > { %1111 = vmatprep.mubr.bf16.mxu0 %v947_v23  ;;  %v2481_v60 = vunpack.i.h.bf16 %v3330_v57  ;;  %v2470_v15 = vunpack.i.l.bf16 %v3332_v9  ;;  %v2480_v34 = vunpack.i.l.bf16 %v3330_v57  ;;  %v2261_v18 = vunpack.i.h.bf16 %v3132_v35 }
 0x302   : > { %v3348_v11 = vpop.permute.xlu0 %2488  ;;  %v3350_v42 = vpop.permute.xlu1 %2483  ;;  %2169 = vmatpush3.bf16.msra.mxu1 %v2594_v49  ;;  %1112 = vmatmul.mubr.bf16.vlgmr.msra.gmra.mrb[4].mxu0 %v946_v10  ;;  %v2285_v5 = vunpack.i.l.bf16 %v3140_v33  ;;  %v2475_v9 = vunpack.i.l.bf16 %v3311_v36  ;;  %v1232_v55 = vsel %vm288_vm0, %v1229_v8, %v2896_v53  ;;  %v1251_v57 = vsel %vm288_vm0, %v1249_v40, %v2927_v6  ;;  %v2610_v53 = vld [vmem:[%s3608_s5 + $0x198] sm:$0xff]   ;;  %v2616_v8 = vld [vmem:[%s3608_s5 + $0x1e8] sm:$0xff]  }
 0x303   : > { %2170 = vmatprep.subr.bf16.mxu1 %v2595_v56  ;;  %1119 = vmatprep.mubr.bf16.mxu0 %v949_v62  ;;  %v1546_v56 = vsel %vm589_vm9, %v2281_v12, %v2471_v24  ;;  %v2491_v29 = vunpack.i.h.bf16 %v3348_v11  ;;  %v2486_v37 = vunpack.i.h.bf16 %v3350_v42  ;;  %v2476_v10 = vunpack.i.h.bf16 %v3311_v36 }
 0x304   : > { %2195 = vmatpush3.bf16.msra.mxu0 %v2598_v54  ;;  %v1545_v2 = vsel %vm589_vm9, %v2261_v18, %v2481_v60  ;;  %v1228_v23 = vsel %vm589_vm9, %v2470_v15, %v2475_v9  ;;  %v2485_v6 = vunpack.i.l.bf16 %v3350_v42  ;;  %v2612_v54 = vld [vmem:[%s3608_s5 + $0x1e0] sm:$0xff]   ;;  %v1566_v36 = vsel %vm589_vm9, %v2260_v27, %v2480_v34 }
 0x305   : > { %803 = vmatmul.mubr.bf16.gmra.mrb[4].mxu1 %v632_v0  ;;  %2196 = vmatprep.subr.bf16.mxu0 %v2600_v32  ;;  %v2490_v62 = vunpack.i.l.bf16 %v3348_v11  ;;  %v1548_v35 = vsel %vm288_vm0, %v1545_v2, %v2491_v29  ;;  %v1253_v27 = vsel %vm596_vm10, %v1251_v57, %v2486_v37  ;;  %v1231_v11 = vsel %vm288_vm0, %v1228_v23, %v2883_v47 }
 0x306   : > { %v3368_v19 = vpop.permute.xlu0 %2498  ;;  %v3370_v48 = vpop.permute.xlu1 %2493  ;;  %2171 = vmatpush3.bf16.msra.mxu1 %v2597_v25  ;;  %v2611_v25 = vld [vmem:[%s3608_s5 + $0x170] sm:$0xff]   ;;  %v1551_v33 = vsel %vm596_vm10, %v1548_v35, %v2933_v7 }
 0x307   : > { %2172 = vmatprep.subr.bf16.mxu1 %v2599_v51  ;;  %v2501_v0 = vunpack.i.h.bf16 %v3368_v19  ;;  %v2500_v42 = vunpack.i.l.bf16 %v3368_v19  ;;  %v1549_v51 = vsel %vm288_vm0, %v1546_v56, %v2476_v10  ;;  %v2495_v32 = vunpack.i.l.bf16 %v3370_v48 }
 0x308   : > { %2197 = vmatpush3.bf16.msra.mxu0 %v2602_v63  ;;  %v1568_v24 = vsel %vm288_vm0, %v1566_v36, %v2490_v62 }
 0x309   : > { %2198 = vmatprep.subr.bf16.mxu0 %v2604_v20  ;;  %v1234_v40 = vsel %vm596_vm10, %v1231_v11, %v2495_v32 }
 0x30a   : > { %v3388_v41 = vpop.permute.xlu0 %2508  ;;  %v3390_v43 = vpop.permute.xlu1 %2503  ;;  %2173 = vmatpush3.bf16.msra.mxu1 %v2601_v45  ;;  %1120 = vmatmul.mubr.bf16.gmra.mrb[8].mxu0 %v948_v16 }
 0x30b   : > { %2174 = vmatprep.subr.bf16.mxu1 %v2603_v58  ;;  %v2511_v4 = vunpack.i.h.bf16 %v3388_v41  ;;  %v2510_v28 = vunpack.i.l.bf16 %v3388_v41  ;;  %v2505_v19 = vunpack.i.l.bf16 %v3390_v43  ;;  %v1235_v58 = vsel %vm596_vm10, %v1232_v55, %v2485_v6  ;;  %v2615_v41 = vld [vmem:[%s3608_s5 + $0x178] sm:$0xff]  }
 0x30c   : > { %2199 = vmatpush3.bf16.msra.mxu0 %v2606_v39  ;;  %v1238_v16 = vsel %vm600_vm11, %v1235_v58, %v2500_v42  ;;  %v2496_v39 = vunpack.i.h.bf16 %v3370_v48  ;;  %v2617_v55 = vld [vmem:[%s3608_s5 + $0x138] sm:$0xff]  }
 0x30d   : > { %2200 = vmatprep.subr.bf16.mxu0 %v2608_v1  ;;  %v1241_v60 = vsel %vm604_vm12, %v1238_v16, %v2510_v28  ;;  %v1237_v34 = vsel %vm600_vm11, %v1234_v40, %v2505_v19 }
 0x30e   : > { %v3418_v49 = vpop.permute.xlu0 %2518  ;;  %v3420_v14 = vpop.permute.xlu1 %2513  ;;  %2175 = vmatpush3.bf16.msra.mxu1 %v2605_v13  ;;  %v1255_v13 = vsel %vm600_vm11, %v1253_v27, %v2501_v0  ;;  %v1552_v0 = vsel %vm596_vm10, %v1549_v51, %v2877_v46  ;;  %v2621_v46 = vld [vmem:[%s3608_s5 + $0x1f8] sm:$0xff]  }
 0x30f   : > { %2176 = vmatprep.subr.bf16.mxu1 %v2607_v44  ;;  %v2520_v20 = vunpack.i.l.bf16 %v3418_v49  ;;  %v1257_v15 = vsel %vm604_vm12, %v1255_v13, %v2511_v4  ;;  %v2506_v44 = vunpack.i.h.bf16 %v3390_v43  ;;  %v2618_v43 = vld [vmem:[%s3608_s5 + $0x1a8] sm:$0xff]   ;;  %v2521_v56 = vunpack.i.h.bf16 %v3418_v49 }
 0x310   : > { %2201 = vmatpush3.bf16.msra.mxu0 %v2610_v53  ;;  %v2516_v53 = vunpack.i.h.bf16 %v3420_v14  ;;  %v2515_v23 = vunpack.i.l.bf16 %v3420_v14  ;;  %v2620_v14 = vld [vmem:[%s3608_s5 + $0x1b0] sm:$0xff]   ;;  %v1555_v4 = vsel %vm600_vm11, %v1552_v0, %v2496_v39 }
 0x311   : > { %2202 = vmatprep.subr.bf16.mxu0 %v2612_v54  ;;  %v1240_v29 = vsel %vm604_vm12, %v1237_v34, %v2520_v20  ;;  %v1558_v51 = vsel %vm604_vm12, %v1555_v4, %v2506_v44 }
 0x312   : > { %v3453_v45 = vpop.permute.xlu0 %2528  ;;  %v3455_v63 = vpop.permute.xlu1 %2523  ;;  %2177 = vmatpush3.bf16.msra.mxu1 %v2609_v26  ;;  %v2619_v26 = vld [vmem:[%s3608_s5 + $0x1f0] sm:$0xff]   ;;  %v1554_v27 = vsel %vm600_vm11, %v1551_v33, %v2516_v53  ;;  %v1561_v19 = vsel %vm608_vm13, %v1558_v51, %v2521_v56 }
 0x313   : > { %v2526_v50 = vunpack.i.h.bf16 %v3455_v63  ;;  %v2525_v47 = vunpack.i.l.bf16 %v3455_v63  ;;  %2178 = vmatprep.subr.bf16.mxu1 %v2611_v25  ;;  %v2531_v6 = vunpack.i.h.bf16 %v3453_v45  ;;  %v2530_v42 = vunpack.i.l.bf16 %v3453_v45 }
 0x314   : > { %2203 = vmatpush3.bf16.msra.mxu0 %v2614_v30  ;;  %v1570_v45 = vsel %vm596_vm10, %v1568_v24, %v2955_v17 }
 0x315   : > { %v1244_v57 = vsel %vm608_vm13, %v1241_v60, %v2525_v47  ;;  %v1259_v37 = vsel %vm608_vm13, %v1257_v15, %v2526_v50  ;;  %2204 = vmatprep.subr.bf16.mxu0 %v2616_v8  ;;  %v1572_v7 = vsel %vm600_vm11, %v1570_v45, %v2515_v23  ;;  %v1557_v35 = vsel %vm604_vm12, %v1554_v27, %v2531_v6  ;;  %v2622_v8 = vld [vmem:[%s3608_s5 + $0x1b8] sm:$0xff]  }
 0x316   : > { %v3486_v1 = vpop.permute.xlu0 %2538  ;;  %v3488_v12 = vpop.permute.xlu1 %2533  ;;  %2179 = vmatpush3.bf16.msra.mxu1 %v2613_v21  ;;  %v1574_v20 = vsel %vm604_vm12, %v1572_v7, %v2530_v42  ;;  %v1245_v24 = vsel %vm608_vm13, %v3221_v38, %v2526_v50 }
 0x317   : > { %v2541_v18 = vunpack.i.h.bf16 %v3486_v1  ;;  %v2540_v9 = vunpack.i.l.bf16 %v3486_v1  ;;  %v2535_v48 = vunpack.i.l.bf16 %v3488_v12  ;;  %2180 = vmatprep.subr.bf16.mxu1 %v2615_v41  ;;  %v2536_v11 = vunpack.i.h.bf16 %v3488_v12 }
 0x318   : > { %2205 = vmatpush3.bf16.msra.mxu0 %v2618_v43 }
 0x319   : > { %v1243_v10 = vsel %vm608_vm13, %v1240_v29, %v2535_v48  ;;  %v1247_v49 = vsel %vm612_vm14, %v1244_v57, %v2540_v9  ;;  %v1261_v2 = vsel %vm612_vm14, %v1259_v37, %v2541_v18  ;;  %2206 = vmatprep.subr.bf16.mxu0 %v2619_v26  ;;  %v1564_v40 = vsel %vm612_vm14, %v1561_v19, %v2536_v11 }
 0x31a   : > { %v1223_v25 = vpop.permute.xlu0 %1222  ;;  %v2544_v54 = vpop.permute.xlu1 %2543  ;;  %v1246_v36 = vsel %vm612_vm14, %v1243_v10, %v2285_v5  ;;  %v1264_v62 = vpack.c.bf16 %v1261_v2, %v1247_v49  ;;  %2181 = vmatpush3.bf16.msra.mxu1 %v2617_v55  ;;  %v1248_v15 = vsel %vm612_vm14, %v1245_v24, %v2541_v18 }
 0x31b   : > { %v1263_v32 = vpack.c.bf16 %v1247_v49, %v1246_v36  ;;  %v2546_v28 = vunpack.i.h.bf16 %v2544_v54  ;;  %v2545_v5 = vunpack.i.l.bf16 %v2544_v54  ;;  %v1260_v21 = vsel %vm608_vm13, %v3224_v31, %v1223_v25 }
 0x31c   : > { %1428 = vmatprep.mubr.bf16.mxu1 %v1264_v62  ;;  %2207 = vmatpush3.bf16.msra.mxu0 %v2620_v14  ;;  %v1265_v34 = vpack.c.bf16 %v1248_v15, %v1248_v15 }
 0x31d   : > { %1429 = vmatmul.mubr.bf16.vlgmr.msra.gmra.mrb[8].mxu1 %v1263_v32  ;;  %v1560_v31 = vsel %vm608_vm13, %v1557_v35, %v2546_v28  ;;  %v1576_v16 = vsel %vm608_vm13, %v1574_v20, %v2545_v5  ;;  %2208 = vmatprep.subr.bf16.mxu0 %v2621_v46 }
 0x31e   : > { %v1226_v30 = vpop.permute.xlu0 %1225  ;;  %v2549_v58 = vpop.permute.xlu1 %2548 }
 0x31f   : > { %v1262_v17 = vsel %vm612_vm14, %v1260_v21, %v1226_v30  ;;  %v2551_v47 = vunpack.i.h.bf16 %v2549_v58  ;;  %v2550_v41 = vunpack.i.l.bf16 %v2549_v58 }
 0x320   : > { %v1266_v13 = vpack.c.bf16 %v1262_v17, %v1262_v17  ;;  %2209 = vmatpush3.bf16.msra.mxu0 %v2622_v8 }
 0x321   : > { %v1563_v39 = vsel %vm612_vm14, %v1560_v31, %v2551_v47  ;;  %v1578_v60 = vsel %vm612_vm14, %v1576_v16, %v2550_v41 }
 0x322   : > { %v2554_v63 = vpop.permute.xlu1 %2553  ;;  %1436 = vmatprep.mubr.bf16.mxu1 %v1266_v13  ;;  %v1580_v44 = vpack.c.bf16 %v1564_v40, %v1563_v39  ;;  %v1581_v38 = vpack.c.bf16 %v1578_v60, %v1564_v40  ;;  %v1543_v55 = vpop.permute.xlu0 %1542 }
 0x323   : > { %v2556_v50 = vunpack.i.h.bf16 %v2554_v63  ;;  %v2555_v12 = vunpack.i.l.bf16 %v2554_v63 }
 0x324   : > { %1745 = vmatprep.mubr.bf16.mxu0 %v1581_v38 }
 0x325   : > { %v1559_v9 = vsel %vm604_vm12, %v3231_v22, %v2556_v50  ;;  %v1575_v48 = vsel %vm604_vm12, %v3234_v3, %v2555_v12  ;;  %1437 = vmatmul.mubr.bf16.gmra.mrb[12].mxu1 %v1265_v34  ;;  %1746 = vmatmul.mubr.bf16.vlgmr.msra.gmra.mrb[12].mxu0 %v1580_v44 }
 0x326   : > { %v1540_v1 = vpop.permute.xlu1 %1539  ;;  %v1562_v18 = vsel %vm608_vm13, %v1559_v9, %v2545_v5  ;;  %v2093_v9 = vld [vmem:[%s3609_s6] ss:$0 sm:$0xff] }
 0x327   : > { %v1577_v43 = vsel %vm608_vm13, %v1575_v48, %v1540_v1  ;;  %v1565_v57 = vsel %vm612_vm14, %v1562_v18, %v2550_v41 }
 0x328   : > { %v1579_v56 = vsel %vm612_vm14, %v1577_v43, %v1543_v55  ;;  %v1582_v37 = vpack.c.bf16 %v1565_v57, %v1565_v57 }
 0x329   : > { %v1583_v29 = vpack.c.bf16 %v1579_v56, %v1579_v56 }
 0x32b   : > { %1753 = vmatprep.mubr.bf16.mxu0 %v1583_v29 }
 0x32d   : > { %1754 = vmatmul.mubr.bf16.gmra.mrb[16].mxu0 %v1582_v37 }
 0x3d0   : > { %v2126_v22 = vpop.f32.mrb[0].mxu1 }
 0x3d1   : > { %v2127_v26 = vpop.f32.mrb[1].mxu1 }
 0x3d2   : > { %v2128_v53 = vadd.f32 %v2127_v26, %v2126_v22  ;;  %v2129_v3 = vpop.f32.mrb[2].mxu1 }
 0x3d3   : > { %v2130_v10 = vpop.f32.mrb[3].mxu1 }
 0x3d4   : > { %v3567_v49 = vadd.f32 %v2130_v10, %v2129_v3 }
 0x3d5   : > { %v2154_v2 = vpop.f32.mrb[4].mxu0 }
 0x3d6   : > { %v2155_v23 = vpop.f32.mrb[5].mxu0 }
 0x3d7   : > { %v2156_v25 = vadd.f32 %v2155_v23, %v2154_v2  ;;  %v2157_v54 = vpop.f32.mrb[6].mxu0 }
 0x3d8   : > { %v2132_v6 = vpop.f32.mrb[4].mxu1  ;;  %v2158_v62 = vpop.f32.mrb[7].mxu0 }
 0x3d9   : > { %v2133_v36 = vpop.f32.mrb[5].mxu1  ;;  %v2159_v32 = vadd.f32 %v2158_v62, %v2157_v54  ;;  %1764 = vrot.lane.b32.xlu0 %v2156_v25, %s2647_s20 }
 0x3da   : > { %v2134_v0 = vadd.f32 %v2133_v36, %v2132_v6  ;;  %v2135_v42 = vpop.f32.mrb[6].mxu1 }
 0x3db   : > { %v2136_v14 = vpop.f32.mrb[7].mxu1  ;;  %1766 = vrot.lane.b32.xlu1 %v2159_v32, %s2647_s20 }
 0x3dd   : > { %v2160_v4 = vpop.f32.mrb[8].mxu0 }
 0x3de   : > { %v2161_v33 = vpop.f32.mrb[9].mxu0 }
 0x3df   : > { %v2162_v28 = vadd.f32 %v2161_v33, %v2160_v4  ;;  %v2163_v5 = vpop.f32.mrb[10].mxu0 }
 0x3e0   : > { %v2164_v46 = vpop.f32.mrb[11].mxu0 }
 0x3e1   : > { %1768 = vrot.lane.b32.xlu1 %v2162_v28, %s2647_s20 }
 0x3f0   : > { %v2182_v51 = vpop.f32.mrb[8].mxu1 }
 0x3f1   : > { %v2183_v45 = vpop.f32.mrb[9].mxu1 }
 0x3f2   : > { %v2184_v27 = vadd.f32 %v2183_v45, %v2182_v51  ;;  %v2185_v11 = vpop.f32.mrb[10].mxu1 }
 0x3f3   : > { %v2186_v19 = vpop.f32.mrb[11].mxu1 }
 0x3f4   : > { %v2187_v7 = vadd.f32 %v2186_v19, %v2185_v11  ;;  %1776 = vrot.lane.b32.xlu1 %v2184_v27, %s2648_s21 }
 0x3f6   : > { %1778 = vrot.lane.b32.xlu0 %v2187_v7, %s2648_s21 }
 0x3f8   : > { %v2188_v35 = vpop.f32.mrb[12].mxu1  ;;  %v2210_v21 = vpop.f32.mrb[12].mxu0 }
 0x3f9   : > { %v2189_v30 = vpop.f32.mrb[13].mxu1  ;;  %v2211_v58 = vpop.f32.mrb[13].mxu0 }
 0x3fa   : > { %v2190_v20 = vadd.f32 %v2189_v30, %v2188_v35  ;;  %v2212_v17 = vadd.f32 %v2211_v58, %v2210_v21  ;;  %v2191_v47 = vpop.f32.mrb[14].mxu1  ;;  %v2213_v41 = vpop.f32.mrb[14].mxu0 }
 0x3fb   : > { %v2192_v8 = vpop.f32.mrb[15].mxu1  ;;  %v2214_v24 = vpop.f32.mrb[15].mxu0 }
 0x3fc   : > { %v2215_v31 = vadd.f32 %v2214_v24, %v2213_v41  ;;  %1780 = vrot.lane.b32.xlu0 %v2190_v20, %s2648_s21 }
 0x400   : > { %v2216_v16 = vpop.f32.mrb[16].mxu0  ;;  %1788 = vrot.lane.b32.xlu0 %v2212_v17, %s2649_s22 }
 0x401   : > { %v2217_v13 = vpop.f32.mrb[17].mxu0 }
 0x402   : > { %v2218_v39 = vadd.f32 %v2217_v13, %v2216_v16  ;;  %v2219_v40 = vpop.f32.mrb[18].mxu0 }
 0x403   : > { %v2220_v60 = vpop.f32.mrb[19].mxu0 }
 0x404   : > { %1792 = vrot.lane.b32.xlu1 %v2218_v39, %s2649_s22 }
 0x408   : > { %1790 = vrot.lane.b32.xlu1 %v2215_v31, %s2649_s22 }
 0x44b   : > { %v1765_v15 = vpop.permute.xlu0 %1764 }
 0x44c   : > { %v1797_v34 = vsel %vm589_vm9, %v2128_v53, %v1765_v15 }
 0x44d   : > { %v1767_v63 = vpop.permute.xlu1 %1766 }
 0x44e   : > { %v1798_v53 = vsel %vm589_vm9, %v3567_v49, %v1767_v63 }
 0x453   : > { %v1769_v38 = vpop.permute.xlu1 %1768 }
 0x454   : > { %v1799_v43 = vsel %vm589_vm9, %v2134_v0, %v1769_v38 }
 0x466   : > { %v1777_v12 = vpop.permute.xlu1 %1776 }
 0x467   : > { %v1800_v48 = vsel %vm288_vm0, %v1797_v34, %v1777_v12 }
 0x468   : > { %v1779_v44 = vpop.permute.xlu0 %1778 }
 0x469   : > { %v1801_v3 = vsel %vm288_vm0, %v1798_v53, %v1779_v44 }
 0x46e   : > { %v1781_v50 = vpop.permute.xlu0 %1780 }
 0x46f   : > { %v1802_v56 = vsel %vm288_vm0, %v1799_v43, %v1781_v50 }
 0x472   : > { %v1789_v1 = vpop.permute.xlu0 %1788 }
 0x473   : > { %v1803_v18 = vsel %vm596_vm10, %v1800_v48, %v1789_v1 }
 0x474   : > { %v1813_v55 = vadd.f32 %v2093_v9, %v1803_v18 }
 0x476   : > { %v1816_v29 = vmul.f32 %v1813_v55, %v1813_v55  ;;  %v1793_v57 = vpop.permute.xlu1 %1792 }
 0x477   : > { %v1805_v37 = vsel %vm596_vm10, %v1802_v56, %v1793_v57 }
 0x478   : > { %v1819_v22 = vmul.f32 %v1816_v29, %v1813_v55  ;;  %v1815_v26 = vadd.f32 %v2093_v9, %v1805_v37 }
 0x47a   : > { %v1822_v10 = vmul.f32 0.044715, %v1819_v22  ;;  %v1818_v2 = vmul.f32 %v1815_v26, %v1815_v26  ;;  %v1791_v23 = vpop.permute.xlu1 %1790 }
 0x47b   : > { %v1804_v6 = vsel %vm596_vm10, %v1801_v3, %v1791_v23 }
 0x47c   : > { %v1825_v25 = vadd.f32 %v1822_v10, %v1813_v55  ;;  %v1821_v54 = vmul.f32 %v1818_v2, %v1815_v26  ;;  %v1814_v36 = vadd.f32 %v2093_v9, %v1804_v6 }
 0x47e   : > { %v1828_v62 = vmul.f32 0.7978846, %v1825_v25  ;;  %v1824_v0 = vmul.f32 0.044715, %v1821_v54  ;;  %v1817_v42 = vmul.f32 %v1814_v36, %v1814_v36 }
 0x480   : > { %2629 = vtanh.f32 %v1828_v62  ;;  %v1827_v32 = vadd.f32 %v1824_v0, %v1815_v26  ;;  %v1820_v14 = vmul.f32 %v1817_v42, %v1814_v36 }
 0x482   : > { %v1830_v4 = vmul.f32 0.7978846, %v1827_v32  ;;  %v1823_v33 = vmul.f32 0.044715, %v1820_v14 }
 0x484   : > { %2631 = vtanh.f32 %v1830_v4  ;;  %v1826_v49 = vadd.f32 %v1823_v33, %v1814_v36 }
 0x486   : > { %v1829_v28 = vmul.f32 0.7978846, %v1826_v49 }
 0x488   : > { %2633 = vtanh.f32 %v1829_v28 }
 0x48a   : > { %v2630_v5 = vpop.eup %2629 }
 0x48b   : > { %v1834_v46 = vadd.f32 1.0, %v2630_v5 }
 0x48d   : > { %v1837_v51 = vmul.f32 0.5, %v1834_v46 }
 0x48e   : > { %v2632_v45 = vpop.eup %2631 }
 0x48f   : > { %v1840_v27 = vmul.f32 %v1837_v51, %v1813_v55  ;;  %v1836_v11 = vadd.f32 1.0, %v2632_v45 }
 0x491   : > { %v1843_v19 = vadd.f32 %v1840_v27, %v2738_v59  ;;  %v1839_v7 = vmul.f32 0.5, %v1836_v11 }
 0x492   : > { %v2634_v35 = vpop.eup %2633 }
 0x493   : > { %v2099_v21 = vpack.c.bf16 %v1843_v19, %v1843_v19  ;;  %v1842_v30 = vmul.f32 %v1839_v7, %v1815_v26  ;;  %v1835_v58 = vadd.f32 1.0, %v2634_v35 }
 0x495   : > { %1861 = vst.msk [vmem:[%s278_s13] sm:$0xf] %vm1860_vm15, %v2099_v21  ;;  %v1845_v20 = vadd.f32 %v1842_v30, %v2730_v52  ;;  %v1838_v17 = vmul.f32 0.5, %v1835_v58 }
 0x497   : > { %v1846_v47 = vsel %vm427_vm2, %v1845_v20, 0.0  ;;  %v1841_v41 = vmul.f32 %v1838_v17, %v1814_v36 }
 0x498   : > { %v2101_v8 = vpack.c.bf16 %v1846_v47, %v1846_v47 }
 0x499   : > { %v1844_v59 = vadd.f32 %v1841_v41, %v2740_v61 }
 0x49a   : > { %1863 = vst.msk [vmem:[%s278_s13 + $0x8] sm:$0xf] %vm1860_vm15, %v2101_v8 }
 0x49b   : > { %v2100_v24 = vpack.c.bf16 %v1844_v59, %v1844_v59 }
 0x49d   : > { %1862 = vst.msk [vmem:[%s278_s13 + $0x4] sm:$0xf] %vm1860_vm15, %v2100_v24 }
 0x49e PF: > { %s17_s24 = sadd.s32 1, %s2641_s24  }
 0x49f   : > { %p14_p4 = scmp.ge.s32.totalorder %s17_s24, 4  }
 0x4a1   :  { %16 = sbr.rel (!%p14_p4) target bundleno = 1 (0x1), region = 81 }

// kernel: wav2vec2_encoder_forward.9
= control target key start
LH: loop header
LB: loop body
LE: loop exit
PB: predicated region body
PF: predicated region fallthrough
CT: control target
= control target key end

     0   :  { %s2852_s18 = smov 0   ;;  %s2854_s19 = smov 0   ;;  %s3279_s0 = inlined_call_operand.vmem [shape: bf16[2,24,64], index: 0, kind: input, shape index: {}]   ;;  %s3280_s1 = inlined_call_operand.vmem [shape: f32[2,1,64], index: 1, kind: input, shape index: {}]   ;;  %s3281_s2 = inlined_call_operand.vmem [shape: f32[2,1,64], index: 2, kind: input, shape index: {}]   ;;  %s3282_s3 = inlined_call_operand.vmem [shape: bf16[2,64,192], index: 3, kind: input, shape index: {}]   ;;  %s3283_s4 = inlined_call_operand.vmem [shape: f32[2,1,192], index: 4, kind: input, shape index: {}]   ;;  %s3284_s5 = inlined_call_operand.vmem [shape: bf16[2,64,64], index: 5, kind: input, shape index: {}]   ;;  %s3285_s6 = inlined_call_operand.vmem [shape: f32[2,1,64], index: 6, kind: input, shape index: {}]   ;;  %s3286_s7 = inlined_call_operand.vmem [shape: f32[2,1,64], index: 7, kind: input, shape index: {}]   ;;  %s3287_s8 = inlined_call_operand.vmem [shape: f32[2,1,64], index: 8, kind: input, shape index: {}]   ;;  %s3288_s9 = inlined_call_operand.vmem [shape: bf16[2,64,128], index: 9, kind: input, shape index: {}]   ;;  %s3289_s10 = inlined_call_operand.vmem [shape: f32[2,1,128], index: 10, kind: input, shape index: {}]   ;;  %s3290_s11 = inlined_call_operand.vmem [shape: bf16[2,128,64], index: 11, kind: input, shape index: {}]   ;;  %s3291_s12 = inlined_call_operand.vmem [shape: f32[2,1,64], index: 12, kind: input, shape index: {}]   ;;  %s3292_s13 = inlined_call_operand.vmem [shape: f32[1,64], index: 13, kind: input, shape index: {}]   ;;  %s3293_s14 = inlined_call_operand.vmem [shape: f32[1,64], index: 14, kind: input, shape index: {}]   ;;  %s3294_s15 = inlined_call_operand.vmem [shape: f32[2,24,64], index: 15, kind: output, shape index: {}]  }
   0x1   :  { %3300 = sst [smem:[#allocation10_spill]] %s3279_s0  ;;  %s2856_s20 = smov 0  }
   0x2   :  { %3301 = sst [smem:[#allocation11_spill]] %s3282_s3  ;;  %s2858_s21 = smov 0  }
   0x3   :  { %3302 = sst [smem:[#allocation12_spill]] %s3283_s4  ;;  %s2860_s22 = smov 0  }
   0x4   :  { %3303 = sst [smem:[#allocation13_spill]] %s3284_s5 }
   0x5   :  { %3304 = sst [smem:[#allocation14_spill]] %s3287_s8 }
   0x6   :  { %3305 = sst [smem:[#allocation15_spill]] %s3291_s12 }
   0x7   :  { %3306 = sst [smem:[#allocation16_spill]] %s3292_s13 }
   0x8   :  { %3307 = sst [smem:[#allocation17_spill]] %s3293_s14 }
   0x9   :  { %3308 = sst [smem:[#allocation18_spill]] %s3294_s15 }
   0xa LB: > { %3309 = sst [smem:[#allocation3_spill]] %s2746_s18  ;;  %s34_s23 = sadd.s32 1, %s2754_s20  ;;  %s2762_s22 = sphi %s2860_s22, %s25_s22   ;;  %s2758_s21 = sphi %s2858_s21, %s3340_s21   ;;  %s2754_s20 = sphi %s2856_s20, %s3339_s20   ;;  %s2750_s19 = sphi %s2854_s19, %s3338_s19   ;;  %s2746_s18 = sphi %s2852_s18, %s3337_s18  }
   0xb   : > { %3310 = sst [smem:[#allocation4_spill]] %s2754_s20  ;;  %s37_s24 = sadd.s32 1, %s2758_s21 }
   0xc   : > { %3311 = sst [smem:[#allocation5_spill]] %s2758_s21  ;;  %p35_p0 = scmp.ge.s32.totalorder %s34_s23, 2 }
   0xd   : > { %3312 = sst [smem:[#allocation6_spill]] %s2762_s22  ;;  %p2302_p1 = scmp.ge.s32.totalorder %s2762_s22, 1 }
   0xe   : > { %p554_p2 = scmp.lt.s32.totalorder %s2762_s22, 5  ;;  %s3342_s23 = smov (%p35_p0, %s34_s23), 0 }
   0xf   : > { %3313 = sst [smem:[#allocation7_spill]] %s3342_s23  ;;  %s3344_s24 = smov (!%p35_p0, %s37_s24), %s2758_s21 }
  0x10   : > { %p555_p3 = pnand %p2302_p1, %p554_p2  ;;  %p39_p4 = scmp.ge.s32.totalorder %s3344_s24, 2 }
  0x12   : > { %s3346_s24 = smov (%p39_p4, %s3344_s24), 0  ;;  %558 = sbr.rel (%p555_p3) target bundleno = 3553 (0xde1), region = 80 }
  0x13   : > { %3314 = sst [smem:[#allocation8_spill]] %s3346_s24 }
  0x19   : > { %p647_p5 = scmp.lt.s32.totalorder %s2750_s19, 1  ;;  %p652_p6 = scmp.lt.s32.totalorder %s2746_s18, 1 }
  0x1a   : > { %s3315_s0 = sld [smem:[#allocation10_spill]]  ;;  %s3316_s3 = sld [smem:[#allocation11_spill]] }
  0x1b   : > { %s3348_s19 = smov (!%p647_p5, %s2750_s19), 1  ;;  %s3317_s4 = sld [smem:[#allocation12_spill]] }
  0x1c   : > { %s2886_s25 = scalar_select %p652_p6, %s2746_s18, 1 }
  0x1d   : > { %s2556_s26 = smul.u32 12, %s3348_s19  ;;  %s3318_s5 = sld [smem:[#allocation13_spill]] }
  0x1e   : > { %s2374_s20 = sshll.u32 %s2886_s25, 6  ;;  %s2306_s18 = sshll.u32 %s2886_s25, 1 }
  0x1f   : > { %s2375_s28 = sshll.u32 %s2886_s25, 5  ;;  %s2941_s24 = scalar_lea.vmem %s3290_s11, %s2374_s20 }
  0x20   : > { %s651_s21 = scalar_lea.vmem %s3315_s0, %s2556_s26  ;;  %s2903_s13 = scalar_lea.vmem %s3316_s3, %s2374_s20 }
  0x21   : > { %s2909_s27 = scalar_lea.vmem %s3317_s4, %s2306_s18  ;;  %s2932_s4 = scalar_lea.vmem %s3288_s9, %s2375_s28 }
  0x22   : > { %s3321_s22 = sld [smem:[#allocation15_spill]]  ;;  %s2557_s0 = smul.u32 24, %s3348_s19 }
  0x23   : > { %s2915_s16 = scalar_lea.vmem %s3318_s5, %s2375_s28  ;;  %s688_s5 = scalar_lea.vmem %s3289_s10, %s2886_s25 }
  0x24   : > { %3319 = sst [smem:[#allocation9_spill]] %s2915_s16  ;;  %s3322_s8 = sld [smem:[#allocation18_spill]] }
  0x25   : > { %s3323_s28 = sld [smem:[#allocation3_spill]] }
  0x28   : > { %s696_s26 = scalar_lea.vmem %s3321_s22, %s2886_s25 }
  0x2a   : > { %s2950_s15 = scalar_lea.vmem %s3322_s8, %s2557_s0 }
  0x2b   : > { %p2314_p7 = scmp.ne.s32.totalorder %s3323_s28, 0 }
  0x2c   : > { %v2379_v0 = vld [vmem:[%s651_s21] sm:$0xff] (!%p2314_p7)   ;;  %vm713_vm0 = vcmask (!%p2314_p7), 523264   ;;  %v709_v1 = vld [vmem:[%s651_s21 + $0x8] sm:$0xf] (!%p2314_p7) }
  0x2d   : > { %706 = sbr.rel (%p2314_p7) target bundleno = 52 (0x34), region = 84  ;;  %v2380_v2 = vunpack.c.l.bf16 (!%p2314_p7), %v2379_v0  ;;  %v2381_v3 = vunpack.c.h.bf16 (!%p2314_p7), %v2379_v0  ;;  %v712_v4 = vunpack.c.l.bf16 (!%p2314_p7), %v709_v1 }
  0x2f   : > { %714 = vst.msk [vmem:[#allocation2] sm:$0xff] (!%p2314_p7), %vm713_vm0, %v2380_v2  ;;  %715 = vst.msk [vmem:[#allocation2 + $0x8] sm:$0xff] (!%p2314_p7), %vm713_vm0, %v2381_v3 }
  0x30   : > { %716 = vst.msk [vmem:[#allocation2 + $0x10] sm:$0xff] (!%p2314_p7), %vm713_vm0, %v712_v4 }
  0x34 PF: > { %vm722_vm1 = vcmask 523264   ;;  %v2621_v26 = vld [vmem:[%s2903_s13 + $0x4] ss:$8 sps:$4 sm:$0xff]   ;;  %v2623_v27 = vld [vmem:[%s2903_s13] ss:$8 sps:$4 sm:$0xff]   ;;  %v2764_v34 = vmov 0   ;;  %s3324_s19 = scalar_lea.vmem %s3280_s1, %s2886_s25  ;;  %s3325_s16 = scalar_lea.vmem %s3281_s2, %s2886_s25  ;;  %v793_v60 = vlaneseq }
  0x35   : > { %849 = vmatprep.subr.bf16.mxu1 %v2621_v26  ;;  %v2624_v28 = vld [vmem:[%s2903_s13 + $0x14] ss:$8 sps:$4 sm:$0xff]   ;;  %v2626_v29 = vld [vmem:[%s2903_s13 + $0x10] ss:$8 sps:$4 sm:$0xff]   ;;  %v2627_v30 = vld [vmem:[%s2903_s13 + $0x24] ss:$8 sps:$4 sm:$0xff]   ;;  %881 = vmatprep.mubr.bf16.mxu1 %v2764_v34  ;;  %s3327_s3 = scalar_lea.vmem %s3285_s6, %s2886_s25  ;;  %s3328_s8 = scalar_lea.vmem %s3286_s7, %s2886_s25 }
  0x36   : > { %v717_v5 = vld [vmem:[#allocation2] sm:$0xff]  ;;  %v718_v7 = vld [vmem:[#allocation2 + $0x8] sm:$0xff]  ;;  %850 = vmatpush1.bf16.msra.mxu1 %v2623_v27  ;;  %v2630_v32 = vld [vmem:[%s2903_s13 + $0x34] ss:$8 sps:$4 sm:$0xff]   ;;  %v794_v61 = vshrl.u32 %v793_v60, 7  ;;  %vm916_vm2 = vcmask 130048  }
  0x37   : > { %v719_v6 = vld [vmem:[#allocation2 + $0x10] sm:$0xff]  ;;  %v723_v8 = vsel %vm722_vm1, %v717_v5, 0.0  ;;  %v726_v10 = vsel %vm722_vm1, %v718_v7, 0.0  ;;  %851 = vmatprep.subr.bf16.mxu1 %v2624_v28  ;;  %v2629_v31 = vld [vmem:[%s2903_s13 + $0x20] ss:$8 sps:$4 sm:$0xff]   ;;  %s2766_s22 = smov 64  }
  0x38   : > { %v729_v9 = vsel %vm722_vm1, %v719_v6, 0.0  ;;  %724 = vadd.xlane.f32.xlu0 %v723_v8  ;;  %v2632_v33 = vld [vmem:[%s2903_s13 + $0x30] ss:$8 sps:$4 sm:$0xff]   ;;  %v2315_v46 = vld [vmem:[%s3324_s19] ss:$0 sm:$0xff]  ;;  %v795_v62 = vsub.s32 0, %v794_v61 }
  0x39   : > { %730 = vadd.xlane.f32.xlu1 %v729_v9  ;;  %v2316_v51 = vld [vmem:[%s3325_s16] ss:$0 sm:$0xff]  ;;  %v799_v0 = vsub.s32 1, %v794_v61  ;;  %s2767_s12 = smov 112   ;;  %s2768_s18 = smov 96   ;;  %vm1026_vm3 = vcmask 1043456  }
  0x3a   : > { %852 = vmatpush1.bf16.msra.mxu1 %v2626_v29  ;;  %v791_v63 = vld [vmem:[%s2909_s27] sm:$0x3]  ;;  %s2765_s27 = smov 48   ;;  %s2769_s29 = smov 32   ;;  %vm982_vm5 = vcmask 195584   ;;  %vm1625_vm6 = vcmask 261120  }
  0x3b   : > { %853 = vmatprep.subr.bf16.mxu1 %v2627_v30  ;;  %v796_v1 = vrot.slane %v791_v63, %v795_v62  ;;  %v800_v3 = vrot.slane %v791_v63, %v799_v0  ;;  %s2770_s30 = smov 16   ;;  %s2771_s23 = smov 80   ;;  %vm1629_vm7 = vcmask 392192  }
  0x3c   : > { %727 = vadd.xlane.f32.xlu0 %v726_v10  ;;  %s3326_s17 = sld [smem:[#allocation9_spill]]  ;;  %s3329_s20 = sld [smem:[#allocation14_spill]] }
  0x3e   : > { %854 = vmatpush1.bf16.msra.mxu1 %v2629_v31 }
  0x3f   : > { %855 = vmatprep.subr.bf16.mxu1 %v2630_v32 }
  0x42   : > { %856 = vmatpush1.bf16.msra.mxu1 %v2632_v33  ;;  %s3330_s21 = scalar_lea.vmem %s3329_s20, %s2886_s25 }
  0xc5   : > { %v725_v11 = vpop.xlane.xlu0 %724 }
  0xc6   : > { %v731_v12 = vpop.xlane.xlu1 %730  ;;  %v733_v13 = vmul.f32 0.015625, %v725_v11 }
  0xc7   : > { %v735_v14 = vmul.f32 0.015625, %v731_v12 }
  0xc8   : > { %v736_v15 = vsub.f32 %v717_v5, %v733_v13 }
  0xc9   : > { %v738_v16 = vsub.f32 %v719_v6, %v735_v14  ;;  %v728_v17 = vpop.xlane.xlu0 %727 }
  0xca   : > { %v734_v18 = vmul.f32 0.015625, %v728_v17  ;;  %v739_v19 = vmul.f32 %v736_v15, %v736_v15 }
  0xcb   : > { %v741_v20 = vmul.f32 %v738_v16, %v738_v16 }
  0xcc   : > { %v737_v21 = vsub.f32 %v718_v7, %v734_v18  ;;  %v742_v22 = vsel %vm722_vm1, %v739_v19, 0.0 }
  0xcd   : > { %743 = vadd.xlane.f32.xlu1 %v742_v22  ;;  %v748_v23 = vsel %vm722_vm1, %v741_v20, 0.0 }
  0xce   : > { %v740_v24 = vmul.f32 %v737_v21, %v737_v21 }
  0xd0   : > { %v745_v25 = vsel %vm722_vm1, %v740_v24, 0.0 }
  0xd1   : > { %749 = vadd.xlane.f32.xlu1 %v748_v23  ;;  %746 = vadd.xlane.f32.xlu0 %v745_v25 }
 0x15a   : > { %v744_v35 = vpop.xlane.xlu1 %743 }
 0x15b   : > { %v751_v36 = vmul.f32 0.015625, %v744_v35 }
 0x15d   : > { %v754_v37 = vadd.f32 1e-05, %v751_v36 }
 0x15e   : > { %v750_v38 = vpop.xlane.xlu1 %749  ;;  %v747_v39 = vpop.xlane.xlu0 %746 }
 0x15f   : > { %2649 = vrsqrt.f32 %v754_v37  ;;  %v753_v40 = vmul.f32 0.015625, %v750_v38  ;;  %v752_v41 = vmul.f32 0.015625, %v747_v39 }
 0x161   : > { %v756_v42 = vadd.f32 1e-05, %v753_v40  ;;  %v755_v43 = vadd.f32 1e-05, %v752_v41 }
 0x163   : > { %2651 = vrsqrt.f32 %v756_v42 }
 0x164   : > { %2653 = vrsqrt.f32 %v755_v43  ;;  %v3038_v43 = vand.u32 127, %v793_v60 }
 0x166   : > { %vm902_vm4 = vcmp.lt.s32.totalorder %v3038_v43, 19 }
 0x169   : > { %v2650_v44 = vpop.eup %2649 }
 0x16a   : > { %v760_v45 = vmul.f32 %v2650_v44, %v736_v15 }
 0x16c   : > { %v769_v50 = vmul.f32 %v2315_v46, %v760_v45 }
 0x16d   : > { %v2652_v47 = vpop.eup %2651 }
 0x16e   : > { %v2654_v48 = vpop.eup %2653  ;;  %v762_v53 = vmul.f32 %v2652_v47, %v738_v16  ;;  %v778_v54 = vadd.f32 %v2316_v51, %v769_v50 }
 0x16f   : > { %v761_v49 = vmul.f32 %v2654_v48, %v737_v21 }
 0x170   : > { %v771_v57 = vmul.f32 %v2315_v46, %v762_v53 }
 0x171   : > { %v770_v52 = vmul.f32 %v2315_v46, %v761_v49 }
 0x172   : > { %v780_v58 = vadd.f32 %v2316_v51, %v771_v57 }
 0x173   : > { %v779_v55 = vadd.f32 %v2316_v51, %v770_v52 }
 0x174   : > { %v782_v59 = vpack.c.bf16 %v780_v58, %v780_v58 }
 0x175   : > { %v781_v56 = vpack.c.bf16 %v779_v55, %v778_v54 }
 0x177   : > { %2325 = vmatmul.mubr.msk.bf16.vlgmr.msra.gmra.mrb[0].mxu1 %vm722_vm1, %v781_v56 }
 0x178   : > { %891 = vmatprep.mubr.bf16.mxu1 %v2764_v34 }
 0x17f   : > { %2326 = vmatmul.mubr.msk.bf16.gmra.mrb[4].mxu1 %vm722_vm1, %v782_v59 }
 0x24a   : > { %v883_v2 = vpop.f32.mrb[0].mxu1 }
 0x24b   : > { %v884_v4 = vadd.f32 %v883_v2, %v796_v1  ;;  %v885_v5 = vpop.f32.mrb[1].mxu1 }
 0x24c   : > { %v887_v6 = vpop.f32.mrb[2].mxu1  ;;  %v886_v9 = vadd.f32 %v885_v5, %v800_v3 }
 0x24d   : > { %v888_v7 = vadd.f32 %v887_v6, %v796_v1  ;;  %v889_v8 = vpop.f32.mrb[3].mxu1  ;;  %v903_v11 = vmul.f32 0.25, %v884_v4 }
 0x24e   : > { %v890_v10 = vadd.f32 %v889_v8, %v800_v3 }
 0x24f   : > { %v904_v12 = vmul.f32 0.25, %v888_v7  ;;  %v2981_v13 = vpack.c.bf16 %v888_v7, %v884_v4 }
 0x250   : > { %v2983_v14 = vpack.c.bf16 %v890_v10, %v886_v9 }
 0x251   : > { %v2985_v15 = vpack.c.bf16 %v904_v12, %v903_v11  ;;  %1084 = vrot.lane.b32.xlu1 %v2981_v13, %s2765_s27  ;;  %912 = vrot.lane.b32.xlu0 %v2981_v13, %s2766_s22 }
 0x252   : > { %v893_v16 = vpop.f32.mrb[4].mxu1 }
 0x253   : > { %v894_v17 = vadd.f32 %v893_v16, %v796_v1  ;;  %v895_v18 = vpop.f32.mrb[5].mxu1  ;;  %2440 = vmatprep.mubr.msk.bf16.mxu1 %vm916_vm2, %v2985_v15 }
 0x254   : > { %v897_v19 = vpop.f32.mrb[6].mxu1  ;;  %v896_v33 = vadd.f32 %v895_v18, %v800_v3 }
 0x255   : > { %v905_v20 = vmul.f32 0.25, %v894_v17  ;;  %v2992_v21 = vpack.c.bf16 %v894_v17, %v894_v17  ;;  %v898_v22 = vpop.f32.mrb[7].mxu1  ;;  %1080 = vrot.lane.b32.xlu0 %v2985_v15, %s2767_s12 }
 0x256   : > { %v3022_v36 = vpack.c.bf16 %v896_v33, %v896_v33 }
 0x257   : > { %v2996_v23 = vpack.c.bf16 %v905_v20, %v905_v20  ;;  %914 = vrot.lane.b32.xlu1 %v2992_v21, %s2766_s22 }
 0x258   : > { %v1028_v40 = vsel %vm1026_vm3, %v3022_v36, 0 }
 0x259   : > { %1082 = vrot.lane.b32.xlu0 %v2996_v23, %s2767_s12 }
 0x25b   : > { %1086 = vrot.lane.b32.xlu1 %v2992_v21, %s2765_s27 }
 0x25d   : > { %1250 = vrot.lane.b32.xlu0 %v2985_v15, %s2768_s18 }
 0x25f   : > { %1254 = vrot.lane.b32.xlu1 %v2981_v13, %s2769_s29 }
 0x263   : > { %1256 = vrot.lane.b32.xlu1 %v2992_v21, %s2769_s29 }
 0x267   : > { %1252 = vrot.lane.b32.xlu1 %v2996_v23, %s2768_s18 }
 0x2c3   : > { %v1085_v24 = vpop.permute.xlu1 %1084  ;;  %v913_v25 = vpop.permute.xlu0 %912 }
 0x2c4   : > { %v924_v26 = vsel %vm916_vm2, %v913_v25, 0  ;;  %2544 = vmatprep.subr.msk.bf16.mxu1 %vm916_vm2, %v913_v25  ;;  %2547 = vmatprep.subr.msk.bf16.mxu0 %vm916_vm2, %v1085_v24  ;;  %v1095_v27 = vsel %vm916_vm2, %v1085_v24, 0 }
 0x2c5   : > { %2437 = vmatpush3.bf16.xpose.msra.mxu1 %v924_v26  ;;  %2453 = vmatpush3.bf16.xpose.msra.mxu0 %v1095_v27 }
 0x2c7   : > { %v1081_v28 = vpop.permute.xlu0 %1080 }
 0x2c8   : > { %2456 = vmatprep.mubr.msk.bf16.mxu0 %vm916_vm2, %v1081_v28 }
 0x2c9   : > { %v915_v29 = vpop.permute.xlu1 %914 }
 0x2ca   : > { %2545 = vmatprep.subr.msk.bf16.mxu1 %vm916_vm2, %v915_v29  ;;  %v927_v30 = vsel %vm916_vm2, %v915_v29, 0 }
 0x2cb   : > { %v1083_v34 = vpop.permute.xlu0 %1082 }
 0x2cd   : > { %v1087_v31 = vpop.permute.xlu1 %1086  ;;  %2439 = vmatpush3.bf16.xpose.msra.mxu1 %v927_v30 }
 0x2ce   : > { %2444 = vmatprep.subr.bf16.mxu1 %v2983_v14  ;;  %2548 = vmatprep.subr.msk.bf16.mxu0 %vm916_vm2, %v1087_v31  ;;  %v1098_v32 = vsel %vm916_vm2, %v1087_v31, 0 }
 0x2cf   : > { %2455 = vmatpush3.bf16.xpose.msra.mxu0 %v1098_v32  ;;  %v1251_v37 = vpop.permute.xlu0 %1250 }
 0x2d1   : > { %v1255_v35 = vpop.permute.xlu1 %1254 }
 0x2d2   : > { %2550 = vmatprep.subr.msk.bf16.mxu0 %vm916_vm2, %v1255_v35  ;;  %v1265_v38 = vsel %vm916_vm2, %v1255_v35, 0 }
 0x2d4   : > { %2441 = vmatmul.mubr.msk.bf16.vlgmr.msra.gmra.mrb[8].mxu1 %vm916_vm2, %v2996_v23 }
 0x2d5   : > { %2445 = vmatpush3.bf16.msra.mxu1 %v2983_v14  ;;  %v1257_v39 = vpop.permute.xlu1 %1256 }
 0x2d6   : > { %2546 = vmatprep.subr.msk.bf16.mxu1 %vm1026_vm3, %v3022_v36  ;;  %2457 = vmatmul.mubr.msk.bf16.vlgmr.msra.gmra.mrb[0].mxu0 %vm916_vm2, %v1083_v34  ;;  %v1268_v41 = vsel %vm916_vm2, %v1257_v39, 0 }
 0x2d7   : > { %2469 = vmatpush3.bf16.xpose.msra.mxu0 %v1265_v38  ;;  %2472 = vmatprep.mubr.msk.bf16.mxu0 %vm916_vm2, %v1251_v37 }
 0x2d8   : > { %2551 = vmatprep.subr.msk.bf16.mxu0 %vm916_vm2, %v1257_v39 }
 0x2d9   : > { %2447 = vmatpush3.bf16.msra.mxu1 %v1028_v40  ;;  %v1253_v42 = vpop.permute.xlu1 %1252 }
 0x2df   : > { %2471 = vmatpush3.bf16.xpose.msra.mxu0 %v1268_v41 }
 0x2e6   : > { %2473 = vmatmul.mubr.msk.bf16.vlgmr.msra.gmra.mrb[4].mxu0 %vm916_vm2, %v1253_v42 }
 0x3a7   : > { %v2442_v44 = vpop.f32.mrb[8].mxu1 }
 0x3a8   : > { %v963_v45 = vpop.f32.mrb[9].mxu1  ;;  %v981_v52 = vsel %vm902_vm4, %v2442_v44, -1e+30 }
 0x3a9   : > { %v979_v46 = vsel %vm902_vm4, %v963_v45, -1e+30  ;;  %v2443_v47 = vpop.f32.mrb[10].mxu1  ;;  %v2458_v48 = vpop.f32.mrb[0].mxu0  ;;  %v989_v58 = vsel %vm982_vm5, %v981_v52, -inf }
 0x3aa   : > { %v966_v49 = vpop.f32.mrb[11].mxu1  ;;  %v1134_v50 = vpop.f32.mrb[1].mxu0  ;;  %v983_v51 = vsel %vm982_vm5, %v979_v46, -inf  ;;  %v1150_v57 = vsel %vm902_vm4, %v2458_v48, -1e+30 }
 0x3ab   : > { %v980_v53 = vsel %vm902_vm4, %v966_v49, -1e+30  ;;  %v2459_v54 = vpop.f32.mrb[2].mxu0  ;;  %984 = vmax.xlane.f32.xlu0 %v983_v51  ;;  %v1148_v59 = vsel %vm902_vm4, %v1134_v50, -1e+30  ;;  %v1157_v60 = vsel %vm982_vm5, %v1150_v57, -inf }
 0x3ac   : > { %v1137_v55 = vpop.f32.mrb[3].mxu0  ;;  %v986_v56 = vsel %vm982_vm5, %v980_v53, -inf  ;;  %v1151_v61 = vsel %vm982_vm5, %v1148_v59, -inf }
 0x3ad   : > { %987 = vmax.xlane.f32.xlu1 %v986_v56  ;;  %v1149_v62 = vsel %vm902_vm4, %v1137_v55, -1e+30 }
 0x3ae   : > { %v1154_v63 = vsel %vm982_vm5, %v1149_v62, -inf }
 0x3af   : > { %990 = vmax.xlane.f32.xlu0 %v989_v58 }
 0x3b1   : > { %1158 = vmax.xlane.f32.xlu1 %v1157_v60 }
 0x3b3   : > { %1152 = vmax.xlane.f32.xlu0 %v1151_v61 }
 0x3b7   : > { %1155 = vmax.xlane.f32.xlu0 %v1154_v63 }
 0x3b9   : > { %v2474_v0 = vpop.f32.mrb[4].mxu0 }
 0x3ba   : > { %v1304_v1 = vpop.f32.mrb[5].mxu0  ;;  %v1320_v6 = vsel %vm902_vm4, %v2474_v0, -1e+30 }
 0x3bb   : > { %v1318_v2 = vsel %vm902_vm4, %v1304_v1, -1e+30  ;;  %v2475_v3 = vpop.f32.mrb[6].mxu0  ;;  %v1327_v9 = vsel %vm982_vm5, %v1320_v6, -inf }
 0x3bc   : > { %v1307_v4 = vpop.f32.mrb[7].mxu0  ;;  %v1321_v5 = vsel %vm982_vm5, %v1318_v2, -inf }
 0x3bd   : > { %v1319_v7 = vsel %vm902_vm4, %v1307_v4, -1e+30  ;;  %1322 = vmax.xlane.f32.xlu0 %v1321_v5 }
 0x3be   : > { %v1324_v8 = vsel %vm982_vm5, %v1319_v7, -inf }
 0x3bf   : > { %1325 = vmax.xlane.f32.xlu1 %v1324_v8 }
 0x3c1   : > { %1328 = vmax.xlane.f32.xlu0 %v1327_v9 }
 0x438   : > { %v985_v10 = vpop.xlane.xlu0 %984 }
 0x439   : > { %v992_v11 = vsub.f32 %v979_v46, %v985_v10 }
 0x43a   : > { %v988_v12 = vpop.xlane.xlu1 %987 }
 0x43b   : > { %v995_v18 = vmul.f32 1.442695, %v992_v11  ;;  %v993_v25 = vsub.f32 %v980_v53, %v988_v12 }
 0x43c   : > { %v991_v16 = vpop.xlane.xlu0 %990 }
 0x43d   : > { %v994_v17 = vsub.f32 %v981_v52, %v991_v16  ;;  %v997_v29 = vmul.f32 1.442695, %v993_v25 }
 0x43e   : > { %v1159_v19 = vpop.xlane.xlu1 %1158 }
 0x43f   : > { %v999_v20 = vmul.f32 1.442695, %v994_v17  ;;  %v1162_v22 = vsub.f32 %v1150_v57, %v1159_v19 }
 0x440   : > { %v1153_v24 = vpop.xlane.xlu0 %1152 }
 0x441   : > { %2655 = vpow2.f32 %v999_v20  ;;  %v1167_v26 = vmul.f32 1.442695, %v1162_v22  ;;  %v1160_v27 = vsub.f32 %v1148_v59, %v1153_v24 }
 0x442   : > { %2657 = vpow2.f32 %v995_v18 }
 0x443   : > { %2659 = vpow2.f32 %v1167_v26  ;;  %v1163_v28 = vmul.f32 1.442695, %v1160_v27 }
 0x444   : > { %v1156_v41 = vpop.xlane.xlu0 %1155 }
 0x445   : > { %2661 = vpow2.f32 %v1163_v28  ;;  %v1161_v45 = vsub.f32 %v1149_v62, %v1156_v41 }
 0x446   : > { %2663 = vpow2.f32 %v997_v29 }
 0x447   : > { %v1165_v48 = vmul.f32 1.442695, %v1161_v45 }
 0x449   : > { %2665 = vpow2.f32 %v1165_v48 }
 0x44a   : > { %v1323_v42 = vpop.xlane.xlu0 %1322 }
 0x44b   : > { %v3068_v30 = vpop.eup %2655  ;;  %v1330_v51 = vsub.f32 %v1318_v2, %v1323_v42 }
 0x44c   : > { %v3070_v31 = vpop.eup %2657  ;;  %v1007_v32 = vsel %vm982_vm5, %v3068_v30, 0.0  ;;  %v1326_v44 = vpop.xlane.xlu1 %1325 }
 0x44d   : > { %v3074_v33 = vpop.eup %2659  ;;  %1008 = vadd.xlane.f32.xlu1 %v1007_v32  ;;  %v1001_v37 = vsel %vm982_vm5, %v3070_v31, 0.0  ;;  %v1331_v47 = vsub.f32 %v1319_v7, %v1326_v44  ;;  %v1333_v53 = vmul.f32 1.442695, %v1330_v51 }
 0x44e   : > { %v1175_v34 = vsel %vm982_vm5, %v3074_v33, 0.0  ;;  %v1329_v46 = vpop.xlane.xlu0 %1328 }
 0x44f   : > { %v3078_v35 = vpop.eup %2661  ;;  %1176 = vadd.xlane.f32.xlu0 %v1175_v34  ;;  %v1332_v49 = vsub.f32 %v1320_v6, %v1329_v46  ;;  %v1335_v50 = vmul.f32 1.442695, %v1331_v47 }
 0x450   : > { %v1169_v38 = vsel %vm982_vm5, %v3078_v35, 0.0  ;;  %v2664_v39 = vpop.eup %2663 }
 0x451   : > { %1002 = vadd.xlane.f32.xlu1 %v1001_v37  ;;  %v1004_v40 = vsel %vm982_vm5, %v2664_v39, 0.0  ;;  %v1337_v52 = vmul.f32 1.442695, %v1332_v49  ;;  %2667 = vpow2.f32 %v1335_v50 }
 0x453   : > { %1170 = vadd.xlane.f32.xlu0 %v1169_v38  ;;  %2669 = vpow2.f32 %v1337_v52  ;;  %v2666_v54 = vpop.eup %2665 }
 0x454   : > { %2671 = vpow2.f32 %v1333_v53  ;;  %v1172_v56 = vsel %vm982_vm5, %v2666_v54, 0.0 }
 0x457   : > { %1005 = vadd.xlane.f32.xlu0 %v1004_v40 }
 0x45b   : > { %v3091_v55 = vpop.eup %2667 }
 0x45c   : > { %v1342_v58 = vsel %vm982_vm5, %v3091_v55, 0.0 }
 0x45d   : > { %v3094_v57 = vpop.eup %2669 }
 0x45e   : > { %v1345_v59 = vsel %vm982_vm5, %v3094_v57, 0.0  ;;  %v3100_v60 = vpop.eup %2671 }
 0x45f   : > { %v1339_v61 = vsel %vm982_vm5, %v3100_v60, 0.0 }
 0x462   : > { %1190 = vrot.lane.b32.xlu1 %v3022_v36, %s2767_s12 }
 0x466   : > { %1356 = vrot.lane.b32.xlu1 %v2983_v14, %s2768_s18 }
 0x46d   : > { %1188 = vrot.lane.b32.xlu0 %v2983_v14, %s2767_s12  ;;  %s3332_s12 = sld [smem:[#allocation3_spill]] }
 0x473   : > { %p2368_p8 = scmp.ge.s32.totalorder %s3332_s12, 1 }
 0x48a   : > { %1173 = vadd.xlane.f32.xlu1 %v1172_v56 }
 0x48c   : > { %1343 = vadd.xlane.f32.xlu0 %v1342_v58 }
 0x48e   : > { %1346 = vadd.xlane.f32.xlu1 %v1345_v59 }
 0x492   : > { %1340 = vadd.xlane.f32.xlu1 %v1339_v61 }
 0x4a2   : > { %1422 = vrot.lane.b32.xlu0 %v2981_v13, %s2770_s30 }
 0x4a3   : > { %1358 = vrot.lane.b32.xlu1 %v3022_v36, %s2768_s18 }
 0x4a6   : > { %1418 = vrot.lane.b32.xlu0 %v2985_v15, %s2771_s23 }
 0x4a7   : > { %1424 = vrot.lane.b32.xlu1 %v2992_v21, %s2770_s30 }
 0x4ab   : > { %1420 = vrot.lane.b32.xlu1 %v2996_v23, %s2771_s23 }
 0x4da   : > { %v1009_v62 = vpop.xlane.xlu1 %1008 }
 0x4db   : > { %2673 = vrcp.f32 %v1009_v62 }
 0x4dc   : > { %v1177_v63 = vpop.xlane.xlu0 %1176 }
 0x4de   : > { %v1003_v0 = vpop.xlane.xlu1 %1002 }
 0x4df   : > { %2675 = vrcp.f32 %v1003_v0 }
 0x4e0   : > { %v1171_v1 = vpop.xlane.xlu0 %1170 }
 0x4e2   : > { %v1191_v8 = vpop.permute.xlu1 %1190 }
 0x4e3   : > { %v1200_v9 = vsel %vm1026_vm3, %v1191_v8, 0 }
 0x4e4   : > { %v1006_v13 = vpop.xlane.xlu0 %1005 }
 0x4e5   : > { %2677 = vrcp.f32 %v1006_v13  ;;  %v2674_v3 = vpop.eup %2673 }
 0x4e6   : > { %v1015_v15 = vmul.f32 %v2674_v3, %v3068_v30  ;;  %v1357_v10 = vpop.permute.xlu1 %1356  ;;  %2679 = vrcp.f32 %v1177_v63 }
 0x4e7   : > { %2681 = vrcp.f32 %v1171_v1 }
 0x4e8   : > { %v1189_v2 = vpop.permute.xlu0 %1188  ;;  %v1017_v23 = vpack.c.bf16 %v1015_v15, %v1015_v15 }
 0x4e9   : > { %2460 = vmatprep.subr.bf16.mxu1 %v1189_v2  ;;  %v2676_v4 = vpop.eup %2675 }
 0x4ea   : > { %v1013_v21 = vmul.f32 %v2676_v4, %v3070_v31 }
 0x4ef   : > { %v2678_v5 = vpop.eup %2677 }
 0x4f0   : > { %v1014_v6 = vmul.f32 %v2678_v5, %v2664_v39  ;;  %v2680_v17 = vpop.eup %2679 }
 0x4f1   : > { %v2682_v19 = vpop.eup %2681  ;;  %v1183_v22 = vmul.f32 %v2680_v17, %v3074_v33 }
 0x4f2   : > { %v1016_v7 = vpack.c.bf16 %v1014_v6, %v1013_v21  ;;  %v1181_v24 = vmul.f32 %v2682_v19, %v3078_v35 }
 0x4f3   : > { %v1185_v27 = vpack.c.bf16 %v1183_v22, %v1183_v22 }
 0x4f4   : > { %2448 = vmatprep.mubr.msk.bf16.mxu1 %vm982_vm5, %v1016_v7 }
 0x4f5   : > { %2449 = vmatmul.mubr.msk.bf16.vlgmr.msra.gmra.mrb[12].mxu1 %vm982_vm5, %v1017_v23 }
 0x4f6   : > { %2461 = vmatpush3.bf16.msra.mxu1 %v1189_v2 }
 0x4f7   : > { %2549 = vmatprep.subr.msk.bf16.mxu1 %vm1026_vm3, %v1191_v8 }
 0x4fa   : > { %2463 = vmatpush3.bf16.msra.mxu1 %v1200_v9 }
 0x4fb   : > { %2476 = vmatprep.subr.bf16.mxu1 %v1357_v10 }
 0x517   : > { %v1174_v11 = vpop.xlane.xlu1 %1173 }
 0x518   : > { %2683 = vrcp.f32 %v1174_v11 }
 0x519   : > { %v1344_v12 = vpop.xlane.xlu0 %1343 }
 0x51b   : > { %v1347_v16 = vpop.xlane.xlu1 %1346 }
 0x51c   : > { %2685 = vrcp.f32 %v1347_v16 }
 0x51d   : > { %2687 = vrcp.f32 %v1344_v12  ;;  %v1423_v34 = vpop.permute.xlu0 %1422 }
 0x51e   : > { %v1433_v41 = vsel %vm916_vm2, %v1423_v34, 0 }
 0x51f   : > { %v1341_v18 = vpop.xlane.xlu1 %1340 }
 0x520   : > { %2689 = vrcp.f32 %v1341_v18 }
 0x521   : > { %v1419_v40 = vpop.permute.xlu0 %1418 }
 0x522   : > { %v2684_v20 = vpop.eup %2683 }
 0x523   : > { %v1182_v25 = vmul.f32 %v2684_v20, %v2666_v54  ;;  %v1359_v30 = vpop.permute.xlu1 %1358 }
 0x524   : > { %v1368_v37 = vsel %vm1026_vm3, %v1359_v30, 0 }
 0x525   : > { %v1184_v26 = vpack.c.bf16 %v1182_v25, %v1181_v24 }
 0x526   : > { %v2686_v28 = vpop.eup %2685 }
 0x527   : > { %2464 = vmatprep.mubr.msk.bf16.mxu1 %vm982_vm5, %v1184_v26  ;;  %v2688_v29 = vpop.eup %2687  ;;  %v1353_v32 = vmul.f32 %v2686_v28, %v3094_v57  ;;  %v1425_v42 = vpop.permute.xlu1 %1424 }
 0x528   : > { %2465 = vmatmul.mubr.msk.bf16.vlgmr.msra.gmra.mrb[16].mxu1 %vm982_vm5, %v1185_v27  ;;  %v1352_v35 = vmul.f32 %v2688_v29, %v3091_v55  ;;  %v1436_v44 = vsel %vm916_vm2, %v1425_v42, 0 }
 0x529   : > { %2477 = vmatpush3.bf16.msra.mxu1 %v1357_v10  ;;  %v1355_v39 = vpack.c.bf16 %v1353_v32, %v1353_v32 }
 0x52a   : > { %v2690_v31 = vpop.eup %2689  ;;  %2552 = vmatprep.subr.msk.bf16.mxu1 %vm1026_vm3, %v1359_v30 }
 0x52b   : > { %v1351_v33 = vmul.f32 %v2690_v31, %v3100_v60  ;;  %v1421_v45 = vpop.permute.xlu1 %1420 }
 0x52d   : > { %2479 = vmatpush3.bf16.msra.mxu1 %v1368_v37  ;;  %v1354_v38 = vpack.c.bf16 %v1352_v35, %v1351_v33  ;;  %v2634_v33 = vld [vmem:[%s3326_s17 + $0x8] sm:$0xff]   ;;  %v2635_v35 = vld [vmem:[%s3326_s17 + $0x10] sm:$0xff]   ;;  %v2636_v37 = vld [vmem:[%s3326_s17 + $0x18] sm:$0xff]  }
 0x52e   : > { %2553 = vmatprep.subr.msk.bf16.mxu1 %vm916_vm2, %v1423_v34  ;;  %v2633_v34 = vld [vmem:[%s3326_s17] sm:$0xff]  }
 0x52f   : > { %2480 = vmatprep.mubr.msk.bf16.mxu1 %vm982_vm5, %v1354_v38 }
 0x530   : > { %2481 = vmatmul.mubr.msk.bf16.vlgmr.msra.gmra.mrb[20].mxu1 %vm982_vm5, %v1355_v39 }
 0x531   : > { %2488 = vmatprep.mubr.msk.bf16.mxu1 %vm916_vm2, %v1419_v40 }
 0x536   : > { %2485 = vmatpush3.bf16.xpose.msra.mxu1 %v1433_v41 }
 0x537   : > { %2554 = vmatprep.subr.msk.bf16.mxu1 %vm916_vm2, %v1425_v42 }
 0x53e   : > { %2487 = vmatpush3.bf16.xpose.msra.mxu1 %v1436_v44 }
 0x545   : > { %2489 = vmatmul.mubr.msk.bf16.vlgmr.msra.gmra.mrb[24].mxu1 %vm916_vm2, %v1421_v45 }
 0x5c8   : > { %v3137_v46 = vpop.f32.mrb[12].mxu1 }
 0x5c9   : > { %v3139_v47 = vpop.f32.mrb[13].mxu1 }
 0x5ca   : > { %v2451_v48 = vpop.f32.mrb[14].mxu1 }
 0x5cb   : > { %v3141_v49 = vpop.f32.mrb[15].mxu1 }
 0x5fb   : > { %v2466_v50 = vpop.f32.mrb[16].mxu1 }
 0x5fc   : > { %v1236_v51 = vpop.f32.mrb[17].mxu1 }
 0x5fd   : > { %v2467_v52 = vpop.f32.mrb[18].mxu1 }
 0x5fe   : > { %v1239_v53 = vpop.f32.mrb[19].mxu1 }
 0x5ff   : > { %v2606_v54 = vpack.i.bf16 %v1239_v53, %v1236_v51 }
 0x603   : > { %v2482_v55 = vpop.f32.mrb[20].mxu1 }
 0x604   : > { %v1404_v56 = vpop.f32.mrb[21].mxu1 }
 0x605   : > { %v2483_v57 = vpop.f32.mrb[22].mxu1 }
 0x606   : > { %v1407_v58 = vpop.f32.mrb[23].mxu1 }
 0x607   : > { %v2611_v59 = vpack.i.bf16 %v1407_v58, %v1404_v56 }
 0x618   : > { %v2490_v60 = vpop.f32.mrb[24].mxu1 }
 0x619   : > { %v1472_v61 = vpop.f32.mrb[25].mxu1  ;;  %v1488_v13 = vsel %vm902_vm4, %v2490_v60, -1e+30 }
 0x61a   : > { %v1486_v62 = vsel %vm902_vm4, %v1472_v61, -1e+30  ;;  %v2491_v63 = vpop.f32.mrb[26].mxu1  ;;  %v1495_v4 = vsel %vm982_vm5, %v1488_v13, -inf }
 0x61b   : > { %v1475_v0 = vpop.f32.mrb[27].mxu1  ;;  %v1489_v1 = vsel %vm982_vm5, %v1486_v62, -inf }
 0x61c   : > { %v1487_v2 = vsel %vm902_vm4, %v1475_v0, -1e+30  ;;  %1490 = vmax.xlane.f32.xlu0 %v1489_v1 }
 0x61d   : > { %v1492_v3 = vsel %vm982_vm5, %v1487_v2, -inf }
 0x61e   : > { %1493 = vmax.xlane.f32.xlu1 %v1492_v3 }
 0x620   : > { %1496 = vmax.xlane.f32.xlu0 %v1495_v4 }
 0x6a9   : > { %v1491_v5 = vpop.xlane.xlu0 %1490 }
 0x6aa   : > { %v1498_v15 = vsub.f32 %v1486_v62, %v1491_v5 }
 0x6ab   : > { %v1494_v21 = vpop.xlane.xlu1 %1493 }
 0x6ac   : > { %v1501_v6 = vmul.f32 1.442695, %v1498_v15  ;;  %v1499_v7 = vsub.f32 %v1487_v2, %v1494_v21 }
 0x6ad   : > { %v1497_v23 = vpop.xlane.xlu0 %1496 }
 0x6ae   : > { %2691 = vpow2.f32 %v1501_v6  ;;  %v1503_v8 = vmul.f32 1.442695, %v1499_v7  ;;  %v1500_v9 = vsub.f32 %v1488_v13, %v1497_v23  ;;  %v2715_v7 = vld [vmem:[#allocation2] sm:$0xff] }
 0x6b0   : > { %2693 = vpow2.f32 %v1503_v8  ;;  %v1505_v10 = vmul.f32 1.442695, %v1500_v9  ;;  %v2716_v9 = vld [vmem:[#allocation2 + $0x10] sm:$0xff] }
 0x6b2   : > { %2695 = vpow2.f32 %v1505_v10 }
 0x6b8   : > { %v2692_v43 = vpop.eup %2691 }
 0x6b9   : > { %v1507_v11 = vsel %vm982_vm5, %v2692_v43, 0.0 }
 0x6ba   : > { %v2694_v12 = vpop.eup %2693  ;;  %1508 = vadd.xlane.f32.xlu0 %v1507_v11 }
 0x6bb   : > { %v1510_v18 = vsel %vm982_vm5, %v2694_v12, 0.0 }
 0x6bc   : > { %v2696_v16 = vpop.eup %2695 }
 0x6bd   : > { %v1513_v17 = vsel %vm982_vm5, %v2696_v16, 0.0 }
 0x6be   : > { %1514 = vadd.xlane.f32.xlu1 %v1513_v17  ;;  %1511 = vadd.xlane.f32.xlu0 %v1510_v18 }
 0x6cf   : > { %1526 = vrot.lane.b32.xlu1 %v3022_v36, %s2771_s23 }
 0x6d3   : > { %2607 = vrot.lane.b32.xlu1 %v2606_v54, %s2770_s30 }
 0x6d4   : > { %1524 = vrot.lane.b32.xlu0 %v2983_v14, %s2771_s23 }
 0x6d7   : > { %1593 = vrot.lane.b32.xlu1 %v2466_v50, %s2770_s30 }
 0x6d8   : > { %2612 = vrot.lane.b32.xlu0 %v2611_v59, %s2769_s29 }
 0x6db   : > { %1605 = vrot.lane.b32.xlu1 %v2482_v55, %s2769_s29 }
 0x747   : > { %v1509_v19 = vpop.xlane.xlu0 %1508 }
 0x748   : > { %2697 = vrcp.f32 %v1509_v19 }
 0x74b   : > { %v1512_v20 = vpop.xlane.xlu0 %1511  ;;  %v1515_v22 = vpop.xlane.xlu1 %1514 }
 0x74c   : > { %2699 = vrcp.f32 %v1512_v20 }
 0x74d   : > { %2701 = vrcp.f32 %v1515_v22 }
 0x74f   : > { %v1525_v24 = vpop.permute.xlu0 %1524  ;;  %v1527_v36 = vpop.permute.xlu1 %1526 }
 0x750   : > { %2492 = vmatprep.subr.bf16.mxu0 %v1525_v24  ;;  %v1536_v25 = vsel %vm1026_vm3, %v1527_v36, 0 }
 0x751   : > { %2493 = vmatpush3.bf16.msra.mxu0 %v1525_v24 }
 0x752   : > { %2555 = vmatprep.subr.msk.bf16.mxu0 %vm1026_vm3, %v1527_v36  ;;  %v2698_v14 = vpop.eup %2697 }
 0x753   : > { %v1519_v28 = vmul.f32 %v2698_v14, %v2692_v43  ;;  %v2608_v44 = vpop.permute.xlu1 %2607  ;;  %v2613_v48 = vpop.permute.xlu0 %2612  ;;  %v2717_v43 = vld [vmem:[#allocation2 + $0x8] sm:$0xff] }
 0x754   : > { %v2610_v50 = vunpack.i.h.bf16 %v2608_v44  ;;  %v2609_v51 = vunpack.i.l.bf16 %v2608_v44  ;;  %v2615_v53 = vunpack.i.h.bf16 %v2613_v48  ;;  %v2614_v54 = vunpack.i.l.bf16 %v2613_v48 }
 0x755   : > { %2495 = vmatpush3.bf16.msra.mxu0 %v1536_v25 }
 0x756   : > { %v2700_v26 = vpop.eup %2699  ;;  %2500 = vmatprep.subr.bf16.mxu0 %v2633_v34  ;;  %v1623_v55 = vsel %vm916_vm2, %v3141_v49, %v2610_v50  ;;  %v1622_v56 = vsel %vm916_vm2, %v3139_v47, %v2609_v51 }
 0x757   : > { %v2702_v27 = vpop.eup %2701  ;;  %v1520_v29 = vmul.f32 %v2700_v26, %v2694_v12  ;;  %v1594_v45 = vpop.permute.xlu1 %1593  ;;  %v1626_v63 = vsel %vm1625_vm6, %v1622_v56, %v2614_v54  ;;  %v1627_v0 = vsel %vm1625_vm6, %v1623_v55, %v2615_v53  ;;  %v2350_v53 = vld [vmem:[%s3328_s8] ss:$0 sm:$0xff] }
 0x758   : > { %v1521_v30 = vmul.f32 %v2702_v27, %v2696_v16  ;;  %v1624_v58 = vsel %vm916_vm2, %v3137_v46, %v1594_v45  ;;  %v2343_v46 = vld [vmem:[%s3327_s3] ss:$0 sm:$0xff] }
 0x759   : > { %v1522_v31 = vpack.c.bf16 %v1520_v29, %v1519_v28 }
 0x75a   : > { %v1523_v32 = vpack.c.bf16 %v1521_v30, %v1521_v30 }
 0x75b   : > { %2496 = vmatprep.mubr.msk.bf16.mxu0 %vm982_vm5, %v1522_v31  ;;  %v1606_v52 = vpop.permute.xlu1 %1605 }
 0x75c   : > { %2497 = vmatmul.mubr.msk.bf16.vlgmr.msra.gmra.mrb[8].mxu0 %vm982_vm5, %v1523_v32  ;;  %v1628_v60 = vsel %vm1625_vm6, %v1624_v58, %v1606_v52 }
 0x75d   : > { %2501 = vmatpush3.bf16.msra.mxu0 %v2633_v34  ;;  %v2637_v34 = vld [vmem:[%s2932_s4] sm:$0xff]  }
 0x75e   : > { %2502 = vmatprep.subr.bf16.mxu0 %v2634_v33  ;;  %2512 = vmatprep.subr.bf16.mxu1 %v2637_v34 }
 0x75f   : > { %2513 = vmatpush3.bf16.msra.mxu1 %v2637_v34 }
 0x761   : > { %2503 = vmatpush3.bf16.msra.mxu0 %v2634_v33  ;;  %v2638_v33 = vld [vmem:[%s2932_s4 + $0x8] sm:$0xff]  }
 0x762   : > { %2504 = vmatprep.subr.bf16.mxu0 %v2635_v35  ;;  %2514 = vmatprep.subr.bf16.mxu1 %v2638_v33 }
 0x763   : > { %2515 = vmatpush3.bf16.msra.mxu1 %v2638_v33 }
 0x765   : > { %2505 = vmatpush3.bf16.msra.mxu0 %v2635_v35  ;;  %v2639_v35 = vld [vmem:[%s2932_s4 + $0x10] sm:$0xff]  }
 0x766   : > { %2506 = vmatprep.subr.bf16.mxu0 %v2636_v37  ;;  %2516 = vmatprep.subr.bf16.mxu1 %v2639_v35 }
 0x767   : > { %2517 = vmatpush3.bf16.msra.mxu1 %v2639_v35 }
 0x769   : > { %2507 = vmatpush3.bf16.msra.mxu0 %v2636_v37  ;;  %v2640_v37 = vld [vmem:[%s2932_s4 + $0x18] sm:$0xff]  }
 0x76a   : > { %2518 = vmatprep.subr.bf16.mxu1 %v2640_v37 }
 0x76b   : > { %2519 = vmatpush3.bf16.msra.mxu1 %v2640_v37 }
 0x82f   : > { %v2498_v38 = vpop.f32.mrb[8].mxu0 }
 0x830   : > { %1617 = vrot.lane.b32.xlu1 %v2498_v38, %s2765_s27  ;;  %v1572_v39 = vpop.f32.mrb[9].mxu0 }
 0x831   : > { %v2499_v40 = vpop.f32.mrb[10].mxu0 }
 0x832   : > { %v1575_v41 = vpop.f32.mrb[11].mxu0 }
 0x833   : > { %v2616_v42 = vpack.i.bf16 %v1575_v41, %v1572_v39 }
 0x835   : > { %2617 = vrot.lane.b32.xlu0 %v2616_v42, %s2765_s27 }
 0x8a2   : > { %v1618_v57 = vpop.permute.xlu1 %1617 }
 0x8a3   : > { %v1632_v1 = vsel %vm1629_vm7, %v1628_v60, %v1618_v57  ;;  %v2351_v60 = vld [vmem:[%s3330_s21] ss:$0 sm:$0xff] }
 0x8a4   : > { %v1634_v3 = vpack.c.bf16 %v1632_v1, %v1632_v1 }
 0x8a7   : > { %v2618_v59 = vpop.permute.xlu0 %2617 }
 0x8a8   : > { %v2620_v61 = vunpack.i.h.bf16 %v2618_v59  ;;  %v2619_v62 = vunpack.i.l.bf16 %v2618_v59 }
 0x8aa   : > { %v1630_v13 = vsel %vm1629_vm7, %v1626_v63, %v2619_v62  ;;  %v1631_v2 = vsel %vm1629_vm7, %v1627_v0, %v2620_v61 }
 0x8ab   : > { %v1633_v49 = vpack.c.bf16 %v1631_v2, %v1630_v13  ;;  %v2641_v2 = vld [vmem:[%s2941_s24] sm:$0xff]  }
 0x8ac   : > { %2524 = vmatprep.subr.bf16.mxu0 %v2641_v2 }
 0x8ad   : > { %2508 = vmatprep.mubr.msk.bf16.mxu0 %vm722_vm1, %v1633_v49  ;;  %v2642_v49 = vld [vmem:[%s2941_s24 + $0x8] sm:$0xff]  }
 0x8ae   : > { %2509 = vmatmul.mubr.msk.bf16.vlgmr.msra.gmra.mrb[12].mxu0 %vm722_vm1, %v1634_v3  ;;  %v2643_v3 = vld [vmem:[%s2941_s24 + $0x10] sm:$0xff]  }
 0x8af   : > { %2525 = vmatpush3.bf16.msra.mxu0 %v2641_v2 }
 0x8b0   : > { %2526 = vmatprep.subr.bf16.mxu0 %v2642_v49 }
 0x8b3   : > { %2527 = vmatpush3.bf16.msra.mxu0 %v2642_v49 }
 0x8b4   : > { %2528 = vmatprep.subr.bf16.mxu0 %v2643_v3 }
 0x8b7   : > { %2529 = vmatpush3.bf16.msra.mxu0 %v2643_v3 }
 0x981   : > { %v2510_v47 = vpop.f32.mrb[12].mxu0 }
 0x982   : > { %v1714_v4 = vpop.f32.mrb[13].mxu0  ;;  %v1723_v5 = vadd.f32 %v2510_v47, %v2343_v46  ;;  %v2645_v47 = vld [vmem:[%s2941_s24 + $0x20] sm:$0xff]  }
 0x983   : > { %v1715_v15 = vadd.f32 %v2343_v46, %v1714_v4  ;;  %v2511_v21 = vpop.f32.mrb[14].mxu0  ;;  %v2646_v4 = vld [vmem:[%s2941_s24 + $0x28] sm:$0xff]  }
 0x984   : > { %v1717_v6 = vpop.f32.mrb[15].mxu0  ;;  %v3188_v10 = vadd.f32 %v2716_v9, %v1723_v5  ;;  %v2647_v5 = vld [vmem:[%s2941_s24 + $0x30] sm:$0xff]   ;;  %v2352_v21 = vld [vmem:[%s688_s5] ss:$0 sm:$0xff] }
 0x985   : > { %v3186_v23 = vadd.f32 %v2715_v7, %v1715_v15  ;;  %v1718_v8 = vadd.f32 %v2343_v46, %v1717_v6  ;;  %v2644_v46 = vld [vmem:[%s2941_s24 + $0x18] sm:$0xff]  }
 0x986   : > { %v1739_v17 = vsel %vm722_vm1, %v3188_v10, 0.0  ;;  %2530 = vmatprep.subr.bf16.mxu0 %v2644_v46  ;;  %v2648_v15 = vld [vmem:[%s2941_s24 + $0x38] sm:$0xff]  }
 0x987   : > { %v3190_v11 = vadd.f32 %v2717_v43, %v1718_v8  ;;  %v1733_v12 = vsel %vm722_vm1, %v3186_v23, 0.0  ;;  %2531 = vmatpush3.bf16.msra.mxu0 %v2644_v46 }
 0x988   : > { %1734 = vadd.xlane.f32.xlu0 %v1733_v12  ;;  %2532 = vmatprep.subr.bf16.mxu0 %v2645_v47 }
 0x989   : > { %v1736_v16 = vsel %vm722_vm1, %v3190_v11, 0.0 }
 0x98a   : > { %1737 = vadd.xlane.f32.xlu1 %v1736_v16 }
 0x98b   : > { %2533 = vmatpush3.bf16.msra.mxu0 %v2645_v47 }
 0x98c   : > { %1740 = vadd.xlane.f32.xlu0 %v1739_v17  ;;  %2534 = vmatprep.subr.bf16.mxu0 %v2646_v4 }
 0x98f   : > { %2535 = vmatpush3.bf16.msra.mxu0 %v2646_v4 }
 0x990   : > { %2536 = vmatprep.subr.bf16.mxu0 %v2647_v5 }
 0x993   : > { %2537 = vmatpush3.bf16.msra.mxu0 %v2647_v5 }
 0x994   : > { %2538 = vmatprep.subr.bf16.mxu0 %v2648_v15 }
 0x997   : > { %2539 = vmatpush3.bf16.msra.mxu0 %v2648_v15 }
 0xa15   : > { %v1735_v18 = vpop.xlane.xlu0 %1734 }
 0xa16   : > { %v1742_v19 = vmul.f32 0.015625, %v1735_v18 }
 0xa17   : > { %v1738_v20 = vpop.xlane.xlu1 %1737 }
 0xa18   : > { %v1745_v22 = vsub.f32 %v3186_v23, %v1742_v19  ;;  %v1743_v24 = vmul.f32 0.015625, %v1738_v20 }
 0xa19   : > { %v1741_v36 = vpop.xlane.xlu0 %1740 }
 0xa1a   : > { %v1746_v14 = vsub.f32 %v3190_v11, %v1743_v24  ;;  %v1744_v25 = vmul.f32 0.015625, %v1741_v36  ;;  %v1748_v26 = vmul.f32 %v1745_v22, %v1745_v22 }
 0xa1c   : > { %v1747_v27 = vsub.f32 %v3188_v10, %v1744_v25  ;;  %v1751_v28 = vsel %vm722_vm1, %v1748_v26, 0.0  ;;  %v1749_v29 = vmul.f32 %v1746_v14, %v1746_v14 }
 0xa1d   : > { %1752 = vadd.xlane.f32.xlu0 %v1751_v28 }
 0xa1e   : > { %v1750_v30 = vmul.f32 %v1747_v27, %v1747_v27  ;;  %v1754_v31 = vsel %vm722_vm1, %v1749_v29, 0.0 }
 0xa20   : > { %v1757_v32 = vsel %vm722_vm1, %v1750_v30, 0.0 }
 0xa21   : > { %1755 = vadd.xlane.f32.xlu0 %v1754_v31  ;;  %1758 = vadd.xlane.f32.xlu1 %v1757_v32 }
 0xaaa   : > { %v1753_v38 = vpop.xlane.xlu0 %1752 }
 0xaab   : > { %v1760_v39 = vmul.f32 0.015625, %v1753_v38 }
 0xaad   : > { %v1763_v40 = vadd.f32 1e-05, %v1760_v39 }
 0xaae   : > { %v1759_v41 = vpop.xlane.xlu1 %1758  ;;  %v1756_v42 = vpop.xlane.xlu0 %1755 }
 0xaaf   : > { %2703 = vrsqrt.f32 %v1763_v40  ;;  %v1762_v44 = vmul.f32 0.015625, %v1759_v41  ;;  %v1761_v45 = vmul.f32 0.015625, %v1756_v42 }
 0xab1   : > { %v1765_v48 = vadd.f32 1e-05, %v1762_v44  ;;  %v1764_v50 = vadd.f32 1e-05, %v1761_v45 }
 0xab3   : > { %2705 = vrsqrt.f32 %v1765_v48 }
 0xab4   : > { %2707 = vrsqrt.f32 %v1764_v50 }
 0xab9   : > { %v2704_v51 = vpop.eup %2703 }
 0xaba   : > { %v1769_v52 = vmul.f32 %v2704_v51, %v1745_v22  ;;  %v2359_v51 = vld [vmem:[%s696_s26] ss:$0 sm:$0xff] }
 0xabc   : > { %v1778_v58 = vmul.f32 %v2350_v53, %v1769_v52 }
 0xabd   : > { %v2706_v54 = vpop.eup %2705 }
 0xabe   : > { %v2708_v55 = vpop.eup %2707  ;;  %v1771_v56 = vmul.f32 %v2706_v54, %v1747_v27  ;;  %v1787_v63 = vadd.f32 %v2351_v60, %v1778_v58 }
 0xabf   : > { %v1770_v57 = vmul.f32 %v2708_v55, %v1746_v14 }
 0xac0   : > { %v1780_v59 = vmul.f32 %v2350_v53, %v1771_v56 }
 0xac1   : > { %v1779_v61 = vmul.f32 %v2350_v53, %v1770_v57 }
 0xac2   : > { %v1789_v62 = vadd.f32 %v2351_v60, %v1780_v59 }
 0xac3   : > { %v1788_v0 = vadd.f32 %v2351_v60, %v1779_v61 }
 0xac4   : > { %v1791_v1 = vpack.c.bf16 %v1789_v62, %v1789_v62 }
 0xac5   : > { %v1790_v13 = vpack.c.bf16 %v1788_v0, %v1787_v63 }
 0xac7   : > { %2520 = vmatprep.mubr.msk.bf16.mxu1 %vm722_vm1, %v1790_v13 }
 0xac8   : > { %2521 = vmatmul.mubr.msk.bf16.vlgmr.msra.gmra.mrb[28].mxu1 %vm722_vm1, %v1791_v1 }
 0xb9b   : > { %v2522_v6 = vpop.f32.mrb[28].mxu1 }
 0xb9c   : > { %v1880_v7 = vadd.f32 %v2522_v6, %v2352_v21  ;;  %v1871_v8 = vpop.f32.mrb[29].mxu1 }
 0xb9d   : > { %v1872_v9 = vadd.f32 %v2352_v21, %v1871_v8  ;;  %v2523_v43 = vpop.f32.mrb[30].mxu1 }
 0xb9e   : > { %v1887_v12 = vmul.f32 %v1880_v7, %v1880_v7  ;;  %v1874_v16 = vpop.f32.mrb[31].mxu1 }
 0xb9f   : > { %v1885_v17 = vmul.f32 %v1872_v9, %v1872_v9  ;;  %v1875_v18 = vadd.f32 %v2352_v21, %v1874_v16 }
 0xba0   : > { %v1890_v19 = vmul.f32 %v1887_v12, %v1880_v7 }
 0xba1   : > { %v1888_v20 = vmul.f32 %v1885_v17, %v1872_v9  ;;  %v1886_v22 = vmul.f32 %v1875_v18, %v1875_v18 }
 0xba2   : > { %v1893_v24 = vmul.f32 0.044715, %v1890_v19 }
 0xba3   : > { %v1891_v36 = vmul.f32 0.044715, %v1888_v20  ;;  %v1889_v14 = vmul.f32 %v1886_v22, %v1875_v18 }
 0xba4   : > { %v1896_v25 = vadd.f32 %v1893_v24, %v1880_v7 }
 0xba5   : > { %v1894_v26 = vadd.f32 %v1891_v36, %v1872_v9  ;;  %v1892_v27 = vmul.f32 0.044715, %v1889_v14 }
 0xba6   : > { %v1899_v28 = vmul.f32 0.7978846, %v1896_v25 }
 0xba7   : > { %v1897_v29 = vmul.f32 0.7978846, %v1894_v26  ;;  %v1895_v30 = vadd.f32 %v1892_v27, %v1875_v18 }
 0xba8   : > { %2709 = vtanh.f32 %v1899_v28 }
 0xba9   : > { %2711 = vtanh.f32 %v1897_v29  ;;  %v1898_v31 = vmul.f32 0.7978846, %v1895_v30 }
 0xbab   : > { %2713 = vtanh.f32 %v1898_v31 }
 0xbb2   : > { %v2710_v32 = vpop.eup %2709 }
 0xbb3   : > { %v2712_v34 = vpop.eup %2711  ;;  %v1905_v33 = vadd.f32 1.0, %v2710_v32 }
 0xbb4   : > { %v1903_v35 = vadd.f32 1.0, %v2712_v34 }
 0xbb5   : > { %v2714_v37 = vpop.eup %2713  ;;  %v1908_v38 = vmul.f32 0.5, %v1905_v33 }
 0xbb6   : > { %v1904_v39 = vadd.f32 1.0, %v2714_v37  ;;  %v1906_v40 = vmul.f32 0.5, %v1903_v35 }
 0xbb7   : > { %v1911_v42 = vmul.f32 %v1908_v38, %v1880_v7 }
 0xbb8   : > { %v1907_v41 = vmul.f32 0.5, %v1904_v39  ;;  %v1909_v44 = vmul.f32 %v1906_v40, %v1872_v9 }
 0xbb9   : > { %v1913_v50 = vpack.c.bf16 %v1911_v42, %v1911_v42 }
 0xbba   : > { %v1910_v45 = vmul.f32 %v1907_v41, %v1875_v18 }
 0xbbc   : > { %v1912_v48 = vpack.c.bf16 %v1910_v45, %v1909_v44 }
 0xbbe   : > { %2540 = vmatprep.mubr.bf16.mxu0 %v1912_v48 }
 0xbbf   : > { %2541 = vmatmul.mubr.bf16.vlgmr.msra.gmra.mrb[16].mxu0 %v1913_v50 }
 0xc92   : > { %v2542_v52 = vpop.f32.mrb[16].mxu0  ;;  %2039 = sbr.rel (%p2368_p8) target bundleno = 3227 (0xc9b), region = 88 }
 0xc93   : > { %v2028_v53 = vadd.f32 %v2542_v52, %v2359_v51  ;;  %v2019_v54 = vpop.f32.mrb[17].mxu0 }
 0xc94   : > { %v2020_v55 = vadd.f32 %v2359_v51, %v2019_v54  ;;  %v2543_v56 = vpop.f32.mrb[18].mxu0 }
 0xc95   : > { %v2035_v57 = vadd.f32 %v2028_v53, %v3188_v10  ;;  %v2022_v58 = vpop.f32.mrb[19].mxu0 }
 0xc96   : > { %v2033_v59 = vadd.f32 %v2020_v55, %v3186_v23  ;;  %v2023_v60 = vadd.f32 %v2359_v51, %v2022_v58 }
 0xc97   : > { %2042 = vst.msk [vmem:[#allocation2 + $0x10] sm:$0xff] (!%p2368_p8), %vm722_vm1, %v2035_v57 }
 0xc98   : > { %v2034_v61 = vadd.f32 %v2023_v60, %v3190_v11  ;;  %2040 = vst.msk [vmem:[#allocation2] sm:$0xff] (!%p2368_p8), %vm722_vm1, %v2033_v59 }
 0xc9a   : > { %2041 = vst.msk [vmem:[#allocation2 + $0x8] sm:$0xff] %vm722_vm1, %v2034_v61 }
 0xc9b PF: > { %s3333_s25 = sld [smem:[#allocation3_spill]] }
 0xca1   : > { %p2369_p9 = scmp.ne.s32.totalorder %s3333_s25, 1 }
 0xca2   : > { %v2049_v10 = vsel (!%p2369_p9), %vm722_vm1, %v2033_v59, 0.0  ;;  %v2055_v23 = vsel (!%p2369_p9), %vm722_vm1, %v2035_v57, 0.0  ;;  %v2052_v11 = vsel (!%p2369_p9), %vm722_vm1, %v2034_v61, 0.0  ;;  %s3334_s29 = sld [smem:[#allocation16_spill]] (!%p2369_p9)  ;;  %s3335_s17 = sld [smem:[#allocation17_spill]] (!%p2369_p9) }
 0xca3   : > { %2046 = sbr.rel (%p2369_p9) target bundleno = 3553 (0xde1), region = 92  ;;  %2050 = vadd.xlane.f32.xlu0 (!%p2369_p9), %v2049_v10  ;;  %2056 = vadd.xlane.f32.xlu1 (!%p2369_p9), %v2055_v23 }
 0xca7   : > { %2053 = vadd.xlane.f32.xlu0 (!%p2369_p9), %v2052_v11 }
 0xca8   : > { %v2370_v22 = vld [vmem:[%s3334_s29] ss:$0 sm:$0xff] (!%p2369_p9) }
 0xca9   : > { %v2371_v36 = vld [vmem:[%s3335_s17] ss:$0 sm:$0xff] (!%p2369_p9) }
 0xd30   : > { %v2051_v62 = vpop.xlane.xlu0 %2050  ;;  %v2057_v63 = vpop.xlane.xlu1 %2056 }
 0xd31   : > { %v2058_v0 = vmul.f32 0.015625, %v2051_v62  ;;  %v2060_v1 = vmul.f32 0.015625, %v2057_v63 }
 0xd33   : > { %v2061_v13 = vsub.f32 %v2033_v59, %v2058_v0  ;;  %v2063_v2 = vsub.f32 %v2035_v57, %v2060_v1 }
 0xd34   : > { %v2054_v49 = vpop.xlane.xlu0 %2053 }
 0xd35   : > { %v2059_v3 = vmul.f32 0.015625, %v2054_v49  ;;  %v2064_v46 = vmul.f32 %v2061_v13, %v2061_v13  ;;  %v2066_v47 = vmul.f32 %v2063_v2, %v2063_v2 }
 0xd37   : > { %v2062_v4 = vsub.f32 %v2034_v61, %v2059_v3  ;;  %v2067_v5 = vsel %vm722_vm1, %v2064_v46, 0.0  ;;  %v2073_v15 = vsel %vm722_vm1, %v2066_v47, 0.0 }
 0xd38   : > { %2068 = vadd.xlane.f32.xlu1 %v2067_v5 }
 0xd39   : > { %v2065_v21 = vmul.f32 %v2062_v4, %v2062_v4 }
 0xd3b   : > { %v2070_v6 = vsel %vm722_vm1, %v2065_v21, 0.0 }
 0xd3c   : > { %2074 = vadd.xlane.f32.xlu1 %v2073_v15  ;;  %2071 = vadd.xlane.f32.xlu0 %v2070_v6 }
 0xdc5   : > { %v2069_v7 = vpop.xlane.xlu1 %2068 }
 0xdc6   : > { %v2076_v8 = vmul.f32 0.015625, %v2069_v7 }
 0xdc8   : > { %v2079_v9 = vadd.f32 1e-05, %v2076_v8 }
 0xdc9   : > { %v2075_v43 = vpop.xlane.xlu1 %2074  ;;  %v2072_v12 = vpop.xlane.xlu0 %2071 }
 0xdca   : > { %2718 = vrsqrt.f32 %v2079_v9  ;;  %v2078_v16 = vmul.f32 0.015625, %v2075_v43  ;;  %v2077_v17 = vmul.f32 0.015625, %v2072_v12 }
 0xdcc   : > { %v2081_v18 = vadd.f32 1e-05, %v2078_v16  ;;  %v2080_v19 = vadd.f32 1e-05, %v2077_v17 }
 0xdce   : > { %2720 = vrsqrt.f32 %v2081_v18 }
 0xdcf   : > { %2722 = vrsqrt.f32 %v2080_v19 }
 0xdd4   : > { %v2719_v20 = vpop.eup %2718 }
 0xdd5   : > { %v2085_v24 = vmul.f32 %v2719_v20, %v2061_v13 }
 0xdd7   : > { %v2094_v14 = vmul.f32 %v2370_v22, %v2085_v24 }
 0xdd8   : > { %v2721_v25 = vpop.eup %2720 }
 0xdd9   : > { %v2723_v26 = vpop.eup %2722  ;;  %v2103_v27 = vadd.f32 %v2371_v36, %v2094_v14  ;;  %v2087_v28 = vmul.f32 %v2721_v25, %v2063_v2 }
 0xdda   : > { %v2086_v29 = vmul.f32 %v2723_v26, %v2062_v4 }
 0xddb   : > { %2106 = vst.msk [vmem:[%s2950_s15] sm:$0xff] %vm722_vm1, %v2103_v27  ;;  %v2096_v30 = vmul.f32 %v2370_v22, %v2087_v28 }
 0xddc   : > { %v2095_v31 = vmul.f32 %v2370_v22, %v2086_v29 }
 0xddd   : > { %v2105_v32 = vadd.f32 %v2371_v36, %v2096_v30 }
 0xdde   : > { %v2104_v34 = vadd.f32 %v2371_v36, %v2095_v31 }
 0xddf   : > { %2108 = vst.msk [vmem:[%s2950_s15 + $0x10] sm:$0xff] %vm722_vm1, %v2105_v32 }
 0xde0   : > { %2107 = vst.msk [vmem:[%s2950_s15 + $0x8] sm:$0xff] %vm722_vm1, %v2104_v34 }
 0xde1 PF: > { %s3336_s14 = sld [smem:[#allocation6_spill]]  ;;  %s3337_s18 = sld [smem:[#allocation4_spill]] }
 0xde2   : > { %s3338_s19 = sld [smem:[#allocation5_spill]]  ;;  %s3339_s20 = sld [smem:[#allocation7_spill]] }
 0xde3   : > { %s3340_s21 = sld [smem:[#allocation8_spill]] }
 0xde7   : > { %s25_s22 = sadd.s32 1, %s3336_s14  }
 0xde8   : > { %p22_p10 = scmp.ge.s32.totalorder %s25_s22, 6  }
 0xdea   :  { %24 = sbr.rel (!%p22_p10) target bundleno = 10 (0xa), region = 158 }

</bundles_post_ra>
